<compile_context>
chip_gen: v5e
topology: v5e:2x2
jax: 0.10.0
libtpu: 0.0.40
codegen_flags: <defaults>
</compile_context>

<pallas_src>
import numpy as np

import jax
import jax.numpy as jnp
from jax.experimental import pallas as pl
from jax.experimental.pallas import tpu as pltpu


# ---------------------------------------------------------------------------
# Host-side constant 0/1 "row gather" matrices for the 3x3 / stride-2 / pad-1
# convolutions.  S[t, i*Ho+j, m] = 1 iff flat input index m == the tap
# (kh, kw = divmod(t, 3)) source pixel of output pixel (i, j).
# ---------------------------------------------------------------------------
def _make_selection(hi, ho):
    k, pad, stride = 3, 1, 2
    s = np.zeros((k * k, ho * ho, hi * hi), np.float32)
    for kh in range(k):
        for kw in range(k):
            t = kh * k + kw
            for i in range(ho):
                for j in range(ho):
                    r = stride * i + kh - pad
                    c = stride * j + kw - pad
                    if 0 <= r < hi and 0 <= c < hi:
                        s[t, i * ho + j, r * hi + c] = 1.0
    return s


_SEL_16_TO_8 = _make_selection(16, 8)   # (9, 64, 256)  conv2
_SEL_8_TO_4 = _make_selection(8, 4)     # (9, 16, 64)   conv3


# ---------------------------------------------------------------------------
# Weight re-layouts (pure layout plumbing, done once in the jitted wrapper).
# ---------------------------------------------------------------------------
def _prep_w1(w1):
    """PyTorch (64, 3, 5, 5) -> (9, 12, 64): the 5x5/s2 conv expressed as a
    stride-1 3x3 conv over the 2x2 space-to-depth input (12 channels)."""
    wt = jnp.transpose(w1, (2, 3, 1, 0))                 # (kh, kw, c, co)
    wt = jnp.pad(wt, ((0, 1), (0, 1), (0, 0), (0, 0)))   # (6, 6, 3, 64)
    wt = wt.reshape(3, 2, 3, 2, 3, 64)                   # (rh, ph, rq, pw, c, co)
    wt = wt.transpose(0, 2, 1, 3, 4, 5)                  # (rh, rq, ph, pw, c, co)
    return wt.reshape(9, 12, 64)                         # t = rh*3+rq ; m = ph*6+pw*3+c


def _prep_w3x3(w):
    """PyTorch (64, 64, 3, 3) -> (9, 64, 64) with tap-major layout."""
    return jnp.transpose(w, (2, 3, 1, 0)).reshape(9, 64, 64)


def _space_to_depth_input(x_nchw):
    """(N, 3, 32, 32) NCHW -> (N, 18, 18, 12): pad by 2, fold 2x2 into channels."""
    n = x_nchw.shape[0]
    x = jnp.transpose(x_nchw, (0, 2, 3, 1)).astype(jnp.float32)       # (N,32,32,3)
    xp = jnp.pad(x, ((0, 0), (2, 2), (2, 2), (0, 0)))                 # (N,36,36,3)
    z = xp.reshape(n, 18, 2, 18, 2, 3).transpose(0, 1, 3, 2, 4, 5)    # (N,18,18,2,2,3)
    return z.reshape(n, 18, 18, 12)


# ---------------------------------------------------------------------------
# The fused Pallas kernel: whole forward pass for one image per grid step.
# ---------------------------------------------------------------------------
def _disc_kernel(z1_ref, w1_ref, b1_ref, s2_ref, w2_ref, b2_ref,
                 s3_ref, w3_ref, b3_ref, wfc_ref, bfc_ref, o_ref):
    f32, bf16 = jnp.float32, jnp.bfloat16

    # ---- conv1: 5x5/s2/p2 == stride-1 3x3 conv over space-to-depth input ----
    z1 = z1_ref[0]                                        # (18, 18, 12) bf16
    acc1 = jnp.zeros((256, 64), f32)
    for t in range(9):
        rh, rq = divmod(t, 3)
        piece = z1[rh:rh + 16, rq:rq + 16, :].reshape(256, 12)
        acc1 = acc1 + jnp.dot(piece, w1_ref[t], preferred_element_type=f32)
    y1 = acc1 + b1_ref[...]                               # f32 epilogue
    y1 = jnp.where(y1 >= 0.0, y1, 0.2 * y1)               # LeakyReLU(0.2)
    # TODO(synk): Dropout(0.4) -> identity (eval mode).
    y1 = y1.astype(bf16)                                  # (256, 64), row = h*16+w

    # ---- conv2: 3x3/s2/p1 via per-tap gather-matmul + weight matmul ----
    acc2 = jnp.zeros((64, 64), f32)
    for t in range(9):
        g = jnp.dot(s2_ref[t], y1, preferred_element_type=f32)   # (64, 64) gather
        acc2 = acc2 + jnp.dot(g.astype(bf16), w2_ref[t],
                              preferred_element_type=f32)
    y2 = acc2 + b2_ref[...]
    y2 = jnp.where(y2 >= 0.0, y2, 0.2 * y2)
    y2 = y2.astype(bf16)                                  # (64, 64), row = h*8+w

    # ---- conv3: 3x3/s2/p1, same scheme ----
    acc3 = jnp.zeros((16, 64), f32)
    for t in range(9):
        g = jnp.dot(s3_ref[t], y2, preferred_element_type=f32)   # (16, 64)
        acc3 = acc3 + jnp.dot(g.astype(bf16), w3_ref[t],
                              preferred_element_type=f32)
    y3 = acc3 + b3_ref[...]
    y3 = jnp.where(y3 >= 0.0, y3, 0.2 * y3)               # (16, 64) f32, row = h*4+w

    # ---- Linear(1024 -> 1) + Sigmoid as VPU multiply + reduction ----
    p = y3 * wfc_ref[...]                                 # (16, 64) f32
    s = jnp.sum(p, axis=1, keepdims=True)                 # (16, 1)
    s = jnp.sum(s, axis=0, keepdims=True)                 # (1, 1)
    s = s + bfc_ref[...]
    o_ref[...] = (1.0 / (1.0 + jnp.exp(-s))).reshape(1, 1, 1)


# ---------------------------------------------------------------------------
# Full forward pass (wrapper does only layout plumbing + one pallas_call).
# ---------------------------------------------------------------------------
def discriminator_forward(x_nchw, params):
    n = x_nchw.shape[0]

    z1 = _space_to_depth_input(x_nchw).astype(jnp.bfloat16)          # (N,18,18,12)
    w1p = _prep_w1(params["w1"]).astype(jnp.bfloat16)                 # (9,12,64)
    w2p = _prep_w3x3(params["w2"]).astype(jnp.bfloat16)               # (9,64,64)
    w3p = _prep_w3x3(params["w3"]).astype(jnp.bfloat16)               # (9,64,64)
    b1 = params["b1"].reshape(1, 64).astype(jnp.float32)
    b2 = params["b2"].reshape(1, 64).astype(jnp.float32)
    b3 = params["b3"].reshape(1, 64).astype(jnp.float32)
    s2 = jnp.asarray(_SEL_16_TO_8, jnp.bfloat16)                      # (9,64,256)
    s3 = jnp.asarray(_SEL_8_TO_4, jnp.bfloat16)                       # (9,16,64)
    # nn.Linear(64*4*4, 1): PyTorch flatten is (C, H, W); reorder to (H, W, C).
    wfc2 = params["w_fc"].reshape(64, 4, 4).transpose(1, 2, 0)
    wfc2 = wfc2.reshape(16, 64).astype(jnp.float32)                   # (16,64)
    bfc = params["b_fc"].reshape(1, 1).astype(jnp.float32)

    out3 = pl.pallas_call(
        _disc_kernel,
        out_shape=jax.ShapeDtypeStruct((n, 1, 1), jnp.float32),
        grid=(n,),
        in_specs=[
            pl.BlockSpec((1, 18, 18, 12), lambda b: (b, 0, 0, 0)),   # z1 (per image)
            pl.BlockSpec((9, 12, 64), lambda b: (0, 0, 0)),          # w1p
            pl.BlockSpec((1, 64), lambda b: (0, 0)),                 # b1
            pl.BlockSpec((9, 64, 256), lambda b: (0, 0, 0)),         # s2
            pl.BlockSpec((9, 64, 64), lambda b: (0, 0, 0)),          # w2p
            pl.BlockSpec((1, 64), lambda b: (0, 0)),                 # b2
            pl.BlockSpec((9, 16, 64), lambda b: (0, 0, 0)),          # s3
            pl.BlockSpec((9, 64, 64), lambda b: (0, 0, 0)),          # w3p
            pl.BlockSpec((1, 64), lambda b: (0, 0)),                 # b3
            pl.BlockSpec((16, 64), lambda b: (0, 0)),                # wfc2
            pl.BlockSpec((1, 1), lambda b: (0, 0)),                  # bfc
        ],
        out_specs=pl.BlockSpec((1, 1, 1), lambda b: (b, 0, 0)),
        compiler_params=pltpu.CompilerParams(
            dimension_semantics=("parallel",)),
    )(z1, w1p, b1, s2, w2p, b2, s3, w3p, b3, wfc2, bfc)

    return out3.reshape(n, 1)


# ---------------------------------------------------------------------------
# Pure-JAX reference (mirrors the PyTorch module) for a tolerance check.
# ---------------------------------------------------------------------------
def _reference_forward(x, params):
    def conv(a, w, b, stride, pad):
        y = jax.lax.conv_general_dilated(
            a, w, window_strides=(stride, stride),
            padding=[(pad, pad), (pad, pad)],
            dimension_numbers=("NCHW", "OIHW", "NCHW"))
        return y + b.reshape(1, -1, 1, 1)

    a = conv(x.astype(jnp.float32), params["w1"], params["b1"], 2, 2)
    a = jnp.where(a >= 0, a, 0.2 * a)
    a = conv(a, params["w2"], params["b2"], 2, 1)
    a = jnp.where(a >= 0, a, 0.2 * a)
    a = conv(a, params["w3"], params["b3"], 2, 1)
    a = jnp.where(a >= 0, a, 0.2 * a)
    a = a.reshape(a.shape[0], -1)                         # (N, 1024), CHW order
    logit = a @ params["w_fc"].T + params["b_fc"]
    return jax.nn.sigmoid(logit)


# ---------------------------------------------------------------------------
# Deterministic parameter initialization (shapes from Discriminator.__init__).
# ---------------------------------------------------------------------------
def init_params(key):
    keys = jax.random.split(key, 8)
    scale = 0.05
    return {
        "w1": scale * jax.random.normal(keys[0], (64, 3, 5, 5), jnp.float32),
        "b1": scale * jax.random.normal(keys[1], (64,), jnp.float32),
        "w2": scale * jax.random.normal(keys[2], (64, 64, 3, 3), jnp.float32),
        "b2": scale * jax.random.normal(keys[3], (64,), jnp.float32),
        "w3": scale * jax.random.normal(keys[4], (64, 64, 3, 3), jnp.float32),
        "b3": scale * jax.random.normal(keys[5], (64,), jnp.float32),
        "w_fc": scale * jax.random.normal(keys[6], (1, 64 * 4 * 4), jnp.float32),
        "b_fc": scale * jax.random.normal(keys[7], (1,), jnp.float32),
    }


if __name__ == "__main__":
    root = jax.random.PRNGKey(0)
    k_params, k_x = jax.random.split(root)

    params = init_params(k_params)
    # Input spatial size 32x32 is implied by Linear(64*4*4, 1): 32 -> 16 -> 8 -> 4.
    x = jax.random.normal(k_x, (2, 3, 32, 32), jnp.float32)

    fwd = jax.jit(discriminator_forward)
    out = fwd(x, params)
    jax.block_until_ready(out)

    ref = jax.jit(_reference_forward)(x, params)
    err = float(jnp.max(jnp.abs(out - ref)))

    assert out.shape == (2, 1), out.shape
    assert bool(jnp.all((out >= 0.0) & (out <= 1.0))), "sigmoid output out of range"
    assert err < 5e-2, f"mismatch vs pure-JAX reference: {err}"
    print("KERNEL_OK")
</pallas_src>

<mosaic_0001>
module attributes {stable_mosaic.version = 11 : i64} {
  func.func @_disc_kernel(%arg0: i32, %arg1: memref<1x18x18x12xbf16, #tpu.memory_space<vmem>>, %arg2: memref<9x12x64xbf16, #tpu.memory_space<vmem>>, %arg3: memref<1x64xf32, #tpu.memory_space<vmem>>, %arg4: memref<9x64x256xbf16, #tpu.memory_space<vmem>>, %arg5: memref<9x64x64xbf16, #tpu.memory_space<vmem>>, %arg6: memref<1x64xf32, #tpu.memory_space<vmem>>, %arg7: memref<9x16x64xbf16, #tpu.memory_space<vmem>>, %arg8: memref<9x64x64xbf16, #tpu.memory_space<vmem>>, %arg9: memref<1x64xf32, #tpu.memory_space<vmem>>, %arg10: memref<16x64xf32, #tpu.memory_space<vmem>>, %arg11: memref<1x1xf32, #tpu.memory_space<vmem>>, %arg12: memref<1x1x1xf32, #tpu.memory_space<vmem>>) attributes {dimension_semantics = [#tpu.dimension_semantics<parallel>], iteration_bounds = array<i64: 2>, scalar_prefetch = 0 : i64, scratch_operands = 0 : i64, tpu.core_type = #tpu.core_type<tc>, window_params = [{transform_indices = @transform_0, window_bounds = array<i64: 1, 18, 18, 12>}, {pipeline_mode = #tpu.pipeline_mode<synchronous>, transform_indices = @transform_1, window_bounds = array<i64: 9, 12, 64>}, {pipeline_mode = #tpu.pipeline_mode<synchronous>, transform_indices = @transform_2, window_bounds = array<i64: 1, 64>}, {pipeline_mode = #tpu.pipeline_mode<synchronous>, transform_indices = @transform_3, window_bounds = array<i64: 9, 64, 256>}, {pipeline_mode = #tpu.pipeline_mode<synchronous>, transform_indices = @transform_4, window_bounds = array<i64: 9, 64, 64>}, {pipeline_mode = #tpu.pipeline_mode<synchronous>, transform_indices = @transform_5, window_bounds = array<i64: 1, 64>}, {pipeline_mode = #tpu.pipeline_mode<synchronous>, transform_indices = @transform_6, window_bounds = array<i64: 9, 16, 64>}, {pipeline_mode = #tpu.pipeline_mode<synchronous>, transform_indices = @transform_7, window_bounds = array<i64: 9, 64, 64>}, {pipeline_mode = #tpu.pipeline_mode<synchronous>, transform_indices = @transform_8, window_bounds = array<i64: 1, 64>}, {pipeline_mode = #tpu.pipeline_mode<synchronous>, transform_indices = @transform_9, window_bounds = array<i64: 16, 64>}, {pipeline_mode = #tpu.pipeline_mode<synchronous>, transform_indices = @transform_10, window_bounds = array<i64: 1, 1>}, {transform_indices = @transform_11, window_bounds = array<i64: 1, 1, 1>}]} {
    %c0 = arith.constant 0 : index
    %c0_0 = arith.constant 0 : index
    %c0_1 = arith.constant 0 : index
    %c0_2 = arith.constant 0 : index
    %0 = vector.load %arg1[%c0, %c0_0, %c0_1, %c0_2] : memref<1x18x18x12xbf16, #tpu.memory_space<vmem>>, vector<1x18x18x12xbf16>
    %1 = vector.shape_cast %0 : vector<1x18x18x12xbf16> to vector<18x18x12xbf16>
    %cst = arith.constant 0.000000e+00 : f32
    %2 = vector.broadcast %cst : f32 to vector<256x64xf32>
    %3 = vector.extract_strided_slice %1 {offsets = [0, 0, 0], sizes = [16, 16, 12], strides = [1, 1, 1]} : vector<18x18x12xbf16> to vector<16x16x12xbf16>
    %4 = vector.shape_cast %3 : vector<16x16x12xbf16> to vector<256x12xbf16>
    %c0_3 = arith.constant 0 : index
    %c0_4 = arith.constant 0 : index
    %c0_5 = arith.constant 0 : index
    %5 = vector.load %arg2[%c0_3, %c0_4, %c0_5] : memref<9x12x64xbf16, #tpu.memory_space<vmem>>, vector<1x12x64xbf16>
    %6 = vector.shape_cast %5 : vector<1x12x64xbf16> to vector<12x64xbf16>
    %cst_6 = arith.constant dense<0.000000e+00> : vector<256x64xf32>
    %7 = tpu.matmul %4, %6, %cst_6 {dimension_numbers = #tpu.dot_dimension_numbers<[1], [0], [0], [1], [0, 0, 1, 1], [], []>} : vector<256x12xbf16>, vector<12x64xbf16>, vector<256x64xf32> -> vector<256x64xf32>
    %8 = arith.addf %2, %7 : vector<256x64xf32>
    %9 = vector.extract_strided_slice %1 {offsets = [0, 1, 0], sizes = [16, 16, 12], strides = [1, 1, 1]} : vector<18x18x12xbf16> to vector<16x16x12xbf16>
    %10 = vector.shape_cast %9 : vector<16x16x12xbf16> to vector<256x12xbf16>
    %c1 = arith.constant 1 : index
    %c0_7 = arith.constant 0 : index
    %c0_8 = arith.constant 0 : index
    %11 = vector.load %arg2[%c1, %c0_7, %c0_8] : memref<9x12x64xbf16, #tpu.memory_space<vmem>>, vector<1x12x64xbf16>
    %12 = vector.shape_cast %11 : vector<1x12x64xbf16> to vector<12x64xbf16>
    %cst_9 = arith.constant dense<0.000000e+00> : vector<256x64xf32>
    %13 = tpu.matmul %10, %12, %cst_9 {dimension_numbers = #tpu.dot_dimension_numbers<[1], [0], [0], [1], [0, 0, 1, 1], [], []>} : vector<256x12xbf16>, vector<12x64xbf16>, vector<256x64xf32> -> vector<256x64xf32>
    %14 = arith.addf %8, %13 : vector<256x64xf32>
    %15 = vector.extract_strided_slice %1 {offsets = [0, 2, 0], sizes = [16, 16, 12], strides = [1, 1, 1]} : vector<18x18x12xbf16> to vector<16x16x12xbf16>
    %16 = vector.shape_cast %15 : vector<16x16x12xbf16> to vector<256x12xbf16>
    %c2 = arith.constant 2 : index
    %c0_10 = arith.constant 0 : index
    %c0_11 = arith.constant 0 : index
    %17 = vector.load %arg2[%c2, %c0_10, %c0_11] : memref<9x12x64xbf16, #tpu.memory_space<vmem>>, vector<1x12x64xbf16>
    %18 = vector.shape_cast %17 : vector<1x12x64xbf16> to vector<12x64xbf16>
    %cst_12 = arith.constant dense<0.000000e+00> : vector<256x64xf32>
    %19 = tpu.matmul %16, %18, %cst_12 {dimension_numbers = #tpu.dot_dimension_numbers<[1], [0], [0], [1], [0, 0, 1, 1], [], []>} : vector<256x12xbf16>, vector<12x64xbf16>, vector<256x64xf32> -> vector<256x64xf32>
    %20 = arith.addf %14, %19 : vector<256x64xf32>
    %21 = vector.extract_strided_slice %1 {offsets = [1, 0, 0], sizes = [16, 16, 12], strides = [1, 1, 1]} : vector<18x18x12xbf16> to vector<16x16x12xbf16>
    %22 = vector.shape_cast %21 : vector<16x16x12xbf16> to vector<256x12xbf16>
    %c3 = arith.constant 3 : index
    %c0_13 = arith.constant 0 : index
    %c0_14 = arith.constant 0 : index
    %23 = vector.load %arg2[%c3, %c0_13, %c0_14] : memref<9x12x64xbf16, #tpu.memory_space<vmem>>, vector<1x12x64xbf16>
    %24 = vector.shape_cast %23 : vector<1x12x64xbf16> to vector<12x64xbf16>
    %cst_15 = arith.constant dense<0.000000e+00> : vector<256x64xf32>
    %25 = tpu.matmul %22, %24, %cst_15 {dimension_numbers = #tpu.dot_dimension_numbers<[1], [0], [0], [1], [0, 0, 1, 1], [], []>} : vector<256x12xbf16>, vector<12x64xbf16>, vector<256x64xf32> -> vector<256x64xf32>
    %26 = arith.addf %20, %25 : vector<256x64xf32>
    %27 = vector.extract_strided_slice %1 {offsets = [1, 1, 0], sizes = [16, 16, 12], strides = [1, 1, 1]} : vector<18x18x12xbf16> to vector<16x16x12xbf16>
    %28 = vector.shape_cast %27 : vector<16x16x12xbf16> to vector<256x12xbf16>
    %c4 = arith.constant 4 : index
    %c0_16 = arith.constant 0 : index
    %c0_17 = arith.constant 0 : index
    %29 = vector.load %arg2[%c4, %c0_16, %c0_17] : memref<9x12x64xbf16, #tpu.memory_space<vmem>>, vector<1x12x64xbf16>
    %30 = vector.shape_cast %29 : vector<1x12x64xbf16> to vector<12x64xbf16>
    %cst_18 = arith.constant dense<0.000000e+00> : vector<256x64xf32>
    %31 = tpu.matmul %28, %30, %cst_18 {dimension_numbers = #tpu.dot_dimension_numbers<[1], [0], [0], [1], [0, 0, 1, 1], [], []>} : vector<256x12xbf16>, vector<12x64xbf16>, vector<256x64xf32> -> vector<256x64xf32>
    %32 = arith.addf %26, %31 : vector<256x64xf32>
    %33 = vector.extract_strided_slice %1 {offsets = [1, 2, 0], sizes = [16, 16, 12], strides = [1, 1, 1]} : vector<18x18x12xbf16> to vector<16x16x12xbf16>
    %34 = vector.shape_cast %33 : vector<16x16x12xbf16> to vector<256x12xbf16>
    %c5 = arith.constant 5 : index
    %c0_19 = arith.constant 0 : index
    %c0_20 = arith.constant 0 : index
    %35 = vector.load %arg2[%c5, %c0_19, %c0_20] : memref<9x12x64xbf16, #tpu.memory_space<vmem>>, vector<1x12x64xbf16>
    %36 = vector.shape_cast %35 : vector<1x12x64xbf16> to vector<12x64xbf16>
    %cst_21 = arith.constant dense<0.000000e+00> : vector<256x64xf32>
    %37 = tpu.matmul %34, %36, %cst_21 {dimension_numbers = #tpu.dot_dimension_numbers<[1], [0], [0], [1], [0, 0, 1, 1], [], []>} : vector<256x12xbf16>, vector<12x64xbf16>, vector<256x64xf32> -> vector<256x64xf32>
    %38 = arith.addf %32, %37 : vector<256x64xf32>
    %39 = vector.extract_strided_slice %1 {offsets = [2, 0, 0], sizes = [16, 16, 12], strides = [1, 1, 1]} : vector<18x18x12xbf16> to vector<16x16x12xbf16>
    %40 = vector.shape_cast %39 : vector<16x16x12xbf16> to vector<256x12xbf16>
    %c6 = arith.constant 6 : index
    %c0_22 = arith.constant 0 : index
    %c0_23 = arith.constant 0 : index
    %41 = vector.load %arg2[%c6, %c0_22, %c0_23] : memref<9x12x64xbf16, #tpu.memory_space<vmem>>, vector<1x12x64xbf16>
    %42 = vector.shape_cast %41 : vector<1x12x64xbf16> to vector<12x64xbf16>
    %cst_24 = arith.constant dense<0.000000e+00> : vector<256x64xf32>
    %43 = tpu.matmul %40, %42, %cst_24 {dimension_numbers = #tpu.dot_dimension_numbers<[1], [0], [0], [1], [0, 0, 1, 1], [], []>} : vector<256x12xbf16>, vector<12x64xbf16>, vector<256x64xf32> -> vector<256x64xf32>
    %44 = arith.addf %38, %43 : vector<256x64xf32>
    %45 = vector.extract_strided_slice %1 {offsets = [2, 1, 0], sizes = [16, 16, 12], strides = [1, 1, 1]} : vector<18x18x12xbf16> to vector<16x16x12xbf16>
    %46 = vector.shape_cast %45 : vector<16x16x12xbf16> to vector<256x12xbf16>
    %c7 = arith.constant 7 : index
    %c0_25 = arith.constant 0 : index
    %c0_26 = arith.constant 0 : index
    %47 = vector.load %arg2[%c7, %c0_25, %c0_26] : memref<9x12x64xbf16, #tpu.memory_space<vmem>>, vector<1x12x64xbf16>
    %48 = vector.shape_cast %47 : vector<1x12x64xbf16> to vector<12x64xbf16>
    %cst_27 = arith.constant dense<0.000000e+00> : vector<256x64xf32>
    %49 = tpu.matmul %46, %48, %cst_27 {dimension_numbers = #tpu.dot_dimension_numbers<[1], [0], [0], [1], [0, 0, 1, 1], [], []>} : vector<256x12xbf16>, vector<12x64xbf16>, vector<256x64xf32> -> vector<256x64xf32>
    %50 = arith.addf %44, %49 : vector<256x64xf32>
    %51 = vector.extract_strided_slice %1 {offsets = [2, 2, 0], sizes = [16, 16, 12], strides = [1, 1, 1]} : vector<18x18x12xbf16> to vector<16x16x12xbf16>
    %52 = vector.shape_cast %51 : vector<16x16x12xbf16> to vector<256x12xbf16>
    %c8 = arith.constant 8 : index
    %c0_28 = arith.constant 0 : index
    %c0_29 = arith.constant 0 : index
    %53 = vector.load %arg2[%c8, %c0_28, %c0_29] : memref<9x12x64xbf16, #tpu.memory_space<vmem>>, vector<1x12x64xbf16>
    %54 = vector.shape_cast %53 : vector<1x12x64xbf16> to vector<12x64xbf16>
    %cst_30 = arith.constant dense<0.000000e+00> : vector<256x64xf32>
    %55 = tpu.matmul %52, %54, %cst_30 {dimension_numbers = #tpu.dot_dimension_numbers<[1], [0], [0], [1], [0, 0, 1, 1], [], []>} : vector<256x12xbf16>, vector<12x64xbf16>, vector<256x64xf32> -> vector<256x64xf32>
    %56 = arith.addf %50, %55 : vector<256x64xf32>
    %c0_31 = arith.constant 0 : index
    %c0_32 = arith.constant 0 : index
    %57 = vector.load %arg3[%c0_31, %c0_32] : memref<1x64xf32, #tpu.memory_space<vmem>>, vector<1x64xf32>
    %58 = vector.broadcast %57 : vector<1x64xf32> to vector<256x64xf32>
    %59 = arith.addf %56, %58 : vector<256x64xf32>
    %cst_33 = arith.constant 0.000000e+00 : f32
    %60 = vector.broadcast %cst_33 : f32 to vector<256x64xf32>
    %61 = arith.cmpf oge, %59, %60 : vector<256x64xf32>
    %cst_34 = arith.constant 2.000000e-01 : f32
    %62 = vector.broadcast %cst_34 : f32 to vector<256x64xf32>
    %63 = arith.mulf %62, %59 : vector<256x64xf32>
    %64 = arith.select %61, %59, %63 : vector<256x64xi1>, vector<256x64xf32>
    %65 = arith.truncf %64 : vector<256x64xf32> to vector<256x64xbf16>
    %cst_35 = arith.constant 0.000000e+00 : f32
    %66 = vector.broadcast %cst_35 : f32 to vector<64x64xf32>
    %c0_36 = arith.constant 0 : index
    %c0_37 = arith.constant 0 : index
    %c0_38 = arith.constant 0 : index
    %67 = vector.load %arg4[%c0_36, %c0_37, %c0_38] : memref<9x64x256xbf16, #tpu.memory_space<vmem>>, vector<1x64x256xbf16>
    %68 = vector.shape_cast %67 : vector<1x64x256xbf16> to vector<64x256xbf16>
    %cst_39 = arith.constant dense<0.000000e+00> : vector<64x64xf32>
    %69 = tpu.matmul %68, %65, %cst_39 {dimension_numbers = #tpu.dot_dimension_numbers<[1], [0], [0], [1], [0, 0, 1, 1], [], []>} : vector<64x256xbf16>, vector<256x64xbf16>, vector<64x64xf32> -> vector<64x64xf32>
    %70 = arith.truncf %69 : vector<64x64xf32> to vector<64x64xbf16>
    %c0_40 = arith.constant 0 : index
    %c0_41 = arith.constant 0 : index
    %c0_42 = arith.constant 0 : index
    %71 = vector.load %arg5[%c0_40, %c0_41, %c0_42] : memref<9x64x64xbf16, #tpu.memory_space<vmem>>, vector<1x64x64xbf16>
    %72 = vector.shape_cast %71 : vector<1x64x64xbf16> to vector<64x64xbf16>
    %cst_43 = arith.constant dense<0.000000e+00> : vector<64x64xf32>
    %73 = tpu.matmul %70, %72, %cst_43 {dimension_numbers = #tpu.dot_dimension_numbers<[1], [0], [0], [1], [0, 0, 1, 1], [], []>} : vector<64x64xbf16>, vector<64x64xbf16>, vector<64x64xf32> -> vector<64x64xf32>
    %74 = arith.addf %66, %73 : vector<64x64xf32>
    %c1_44 = arith.constant 1 : index
    %c0_45 = arith.constant 0 : index
    %c0_46 = arith.constant 0 : index
    %75 = vector.load %arg4[%c1_44, %c0_45, %c0_46] : memref<9x64x256xbf16, #tpu.memory_space<vmem>>, vector<1x64x256xbf16>
    %76 = vector.shape_cast %75 : vector<1x64x256xbf16> to vector<64x256xbf16>
    %cst_47 = arith.constant dense<0.000000e+00> : vector<64x64xf32>
    %77 = tpu.matmul %76, %65, %cst_47 {dimension_numbers = #tpu.dot_dimension_numbers<[1], [0], [0], [1], [0, 0, 1, 1], [], []>} : vector<64x256xbf16>, vector<256x64xbf16>, vector<64x64xf32> -> vector<64x64xf32>
    %78 = arith.truncf %77 : vector<64x64xf32> to vector<64x64xbf16>
    %c1_48 = arith.constant 1 : index
    %c0_49 = arith.constant 0 : index
    %c0_50 = arith.constant 0 : index
    %79 = vector.load %arg5[%c1_48, %c0_49, %c0_50] : memref<9x64x64xbf16, #tpu.memory_space<vmem>>, vector<1x64x64xbf16>
    %80 = vector.shape_cast %79 : vector<1x64x64xbf16> to vector<64x64xbf16>
    %cst_51 = arith.constant dense<0.000000e+00> : vector<64x64xf32>
    %81 = tpu.matmul %78, %80, %cst_51 {dimension_numbers = #tpu.dot_dimension_numbers<[1], [0], [0], [1], [0, 0, 1, 1], [], []>} : vector<64x64xbf16>, vector<64x64xbf16>, vector<64x64xf32> -> vector<64x64xf32>
    %82 = arith.addf %74, %81 : vector<64x64xf32>
    %c2_52 = arith.constant 2 : index
    %c0_53 = arith.constant 0 : index
    %c0_54 = arith.constant 0 : index
    %83 = vector.load %arg4[%c2_52, %c0_53, %c0_54] : memref<9x64x256xbf16, #tpu.memory_space<vmem>>, vector<1x64x256xbf16>
    %84 = vector.shape_cast %83 : vector<1x64x256xbf16> to vector<64x256xbf16>
    %cst_55 = arith.constant dense<0.000000e+00> : vector<64x64xf32>
    %85 = tpu.matmul %84, %65, %cst_55 {dimension_numbers = #tpu.dot_dimension_numbers<[1], [0], [0], [1], [0, 0, 1, 1], [], []>} : vector<64x256xbf16>, vector<256x64xbf16>, vector<64x64xf32> -> vector<64x64xf32>
    %86 = arith.truncf %85 : vector<64x64xf32> to vector<64x64xbf16>
    %c2_56 = arith.constant 2 : index
    %c0_57 = arith.constant 0 : index
    %c0_58 = arith.constant 0 : index
    %87 = vector.load %arg5[%c2_56, %c0_57, %c0_58] : memref<9x64x64xbf16, #tpu.memory_space<vmem>>, vector<1x64x64xbf16>
    %88 = vector.shape_cast %87 : vector<1x64x64xbf16> to vector<64x64xbf16>
    %cst_59 = arith.constant dense<0.000000e+00> : vector<64x64xf32>
    %89 = tpu.matmul %86, %88, %cst_59 {dimension_numbers = #tpu.dot_dimension_numbers<[1], [0], [0], [1], [0, 0, 1, 1], [], []>} : vector<64x64xbf16>, vector<64x64xbf16>, vector<64x64xf32> -> vector<64x64xf32>
    %90 = arith.addf %82, %89 : vector<64x64xf32>
    %c3_60 = arith.constant 3 : index
    %c0_61 = arith.constant 0 : index
    %c0_62 = arith.constant 0 : index
    %91 = vector.load %arg4[%c3_60, %c0_61, %c0_62] : memref<9x64x256xbf16, #tpu.memory_space<vmem>>, vector<1x64x256xbf16>
    %92 = vector.shape_cast %91 : vector<1x64x256xbf16> to vector<64x256xbf16>
    %cst_63 = arith.constant dense<0.000000e+00> : vector<64x64xf32>
    %93 = tpu.matmul %92, %65, %cst_63 {dimension_numbers = #tpu.dot_dimension_numbers<[1], [0], [0], [1], [0, 0, 1, 1], [], []>} : vector<64x256xbf16>, vector<256x64xbf16>, vector<64x64xf32> -> vector<64x64xf32>
    %94 = arith.truncf %93 : vector<64x64xf32> to vector<64x64xbf16>
    %c3_64 = arith.constant 3 : index
    %c0_65 = arith.constant 0 : index
    %c0_66 = arith.constant 0 : index
    %95 = vector.load %arg5[%c3_64, %c0_65, %c0_66] : memref<9x64x64xbf16, #tpu.memory_space<vmem>>, vector<1x64x64xbf16>
    %96 = vector.shape_cast %95 : vector<1x64x64xbf16> to vector<64x64xbf16>
    %cst_67 = arith.constant dense<0.000000e+00> : vector<64x64xf32>
    %97 = tpu.matmul %94, %96, %cst_67 {dimension_numbers = #tpu.dot_dimension_numbers<[1], [0], [0], [1], [0, 0, 1, 1], [], []>} : vector<64x64xbf16>, vector<64x64xbf16>, vector<64x64xf32> -> vector<64x64xf32>
    %98 = arith.addf %90, %97 : vector<64x64xf32>
    %c4_68 = arith.constant 4 : index
    %c0_69 = arith.constant 0 : index
    %c0_70 = arith.constant 0 : index
    %99 = vector.load %arg4[%c4_68, %c0_69, %c0_70] : memref<9x64x256xbf16, #tpu.memory_space<vmem>>, vector<1x64x256xbf16>
    %100 = vector.shape_cast %99 : vector<1x64x256xbf16> to vector<64x256xbf16>
    %cst_71 = arith.constant dense<0.000000e+00> : vector<64x64xf32>
    %101 = tpu.matmul %100, %65, %cst_71 {dimension_numbers = #tpu.dot_dimension_numbers<[1], [0], [0], [1], [0, 0, 1, 1], [], []>} : vector<64x256xbf16>, vector<256x64xbf16>, vector<64x64xf32> -> vector<64x64xf32>
    %102 = arith.truncf %101 : vector<64x64xf32> to vector<64x64xbf16>
    %c4_72 = arith.constant 4 : index
    %c0_73 = arith.constant 0 : index
    %c0_74 = arith.constant 0 : index
    %103 = vector.load %arg5[%c4_72, %c0_73, %c0_74] : memref<9x64x64xbf16, #tpu.memory_space<vmem>>, vector<1x64x64xbf16>
    %104 = vector.shape_cast %103 : vector<1x64x64xbf16> to vector<64x64xbf16>
    %cst_75 = arith.constant dense<0.000000e+00> : vector<64x64xf32>
    %105 = tpu.matmul %102, %104, %cst_75 {dimension_numbers = #tpu.dot_dimension_numbers<[1], [0], [0], [1], [0, 0, 1, 1], [], []>} : vector<64x64xbf16>, vector<64x64xbf16>, vector<64x64xf32> -> vector<64x64xf32>
    %106 = arith.addf %98, %105 : vector<64x64xf32>
    %c5_76 = arith.constant 5 : index
    %c0_77 = arith.constant 0 : index
    %c0_78 = arith.constant 0 : index
    %107 = vector.load %arg4[%c5_76, %c0_77, %c0_78] : memref<9x64x256xbf16, #tpu.memory_space<vmem>>, vector<1x64x256xbf16>
    %108 = vector.shape_cast %107 : vector<1x64x256xbf16> to vector<64x256xbf16>
    %cst_79 = arith.constant dense<0.000000e+00> : vector<64x64xf32>
    %109 = tpu.matmul %108, %65, %cst_79 {dimension_numbers = #tpu.dot_dimension_numbers<[1], [0], [0], [1], [0, 0, 1, 1], [], []>} : vector<64x256xbf16>, vector<256x64xbf16>, vector<64x64xf32> -> vector<64x64xf32>
    %110 = arith.truncf %109 : vector<64x64xf32> to vector<64x64xbf16>
    %c5_80 = arith.constant 5 : index
    %c0_81 = arith.constant 0 : index
    %c0_82 = arith.constant 0 : index
    %111 = vector.load %arg5[%c5_80, %c0_81, %c0_82] : memref<9x64x64xbf16, #tpu.memory_space<vmem>>, vector<1x64x64xbf16>
    %112 = vector.shape_cast %111 : vector<1x64x64xbf16> to vector<64x64xbf16>
    %cst_83 = arith.constant dense<0.000000e+00> : vector<64x64xf32>
    %113 = tpu.matmul %110, %112, %cst_83 {dimension_numbers = #tpu.dot_dimension_numbers<[1], [0], [0], [1], [0, 0, 1, 1], [], []>} : vector<64x64xbf16>, vector<64x64xbf16>, vector<64x64xf32> -> vector<64x64xf32>
    %114 = arith.addf %106, %113 : vector<64x64xf32>
    %c6_84 = arith.constant 6 : index
    %c0_85 = arith.constant 0 : index
    %c0_86 = arith.constant 0 : index
    %115 = vector.load %arg4[%c6_84, %c0_85, %c0_86] : memref<9x64x256xbf16, #tpu.memory_space<vmem>>, vector<1x64x256xbf16>
    %116 = vector.shape_cast %115 : vector<1x64x256xbf16> to vector<64x256xbf16>
    %cst_87 = arith.constant dense<0.000000e+00> : vector<64x64xf32>
    %117 = tpu.matmul %116, %65, %cst_87 {dimension_numbers = #tpu.dot_dimension_numbers<[1], [0], [0], [1], [0, 0, 1, 1], [], []>} : vector<64x256xbf16>, vector<256x64xbf16>, vector<64x64xf32> -> vector<64x64xf32>
    %118 = arith.truncf %117 : vector<64x64xf32> to vector<64x64xbf16>
    %c6_88 = arith.constant 6 : index
    %c0_89 = arith.constant 0 : index
    %c0_90 = arith.constant 0 : index
    %119 = vector.load %arg5[%c6_88, %c0_89, %c0_90] : memref<9x64x64xbf16, #tpu.memory_space<vmem>>, vector<1x64x64xbf16>
    %120 = vector.shape_cast %119 : vector<1x64x64xbf16> to vector<64x64xbf16>
    %cst_91 = arith.constant dense<0.000000e+00> : vector<64x64xf32>
    %121 = tpu.matmul %118, %120, %cst_91 {dimension_numbers = #tpu.dot_dimension_numbers<[1], [0], [0], [1], [0, 0, 1, 1], [], []>} : vector<64x64xbf16>, vector<64x64xbf16>, vector<64x64xf32> -> vector<64x64xf32>
    %122 = arith.addf %114, %121 : vector<64x64xf32>
    %c7_92 = arith.constant 7 : index
    %c0_93 = arith.constant 0 : index
    %c0_94 = arith.constant 0 : index
    %123 = vector.load %arg4[%c7_92, %c0_93, %c0_94] : memref<9x64x256xbf16, #tpu.memory_space<vmem>>, vector<1x64x256xbf16>
    %124 = vector.shape_cast %123 : vector<1x64x256xbf16> to vector<64x256xbf16>
    %cst_95 = arith.constant dense<0.000000e+00> : vector<64x64xf32>
    %125 = tpu.matmul %124, %65, %cst_95 {dimension_numbers = #tpu.dot_dimension_numbers<[1], [0], [0], [1], [0, 0, 1, 1], [], []>} : vector<64x256xbf16>, vector<256x64xbf16>, vector<64x64xf32> -> vector<64x64xf32>
    %126 = arith.truncf %125 : vector<64x64xf32> to vector<64x64xbf16>
    %c7_96 = arith.constant 7 : index
    %c0_97 = arith.constant 0 : index
    %c0_98 = arith.constant 0 : index
    %127 = vector.load %arg5[%c7_96, %c0_97, %c0_98] : memref<9x64x64xbf16, #tpu.memory_space<vmem>>, vector<1x64x64xbf16>
    %128 = vector.shape_cast %127 : vector<1x64x64xbf16> to vector<64x64xbf16>
    %cst_99 = arith.constant dense<0.000000e+00> : vector<64x64xf32>
    %129 = tpu.matmul %126, %128, %cst_99 {dimension_numbers = #tpu.dot_dimension_numbers<[1], [0], [0], [1], [0, 0, 1, 1], [], []>} : vector<64x64xbf16>, vector<64x64xbf16>, vector<64x64xf32> -> vector<64x64xf32>
    %130 = arith.addf %122, %129 : vector<64x64xf32>
    %c8_100 = arith.constant 8 : index
    %c0_101 = arith.constant 0 : index
    %c0_102 = arith.constant 0 : index
    %131 = vector.load %arg4[%c8_100, %c0_101, %c0_102] : memref<9x64x256xbf16, #tpu.memory_space<vmem>>, vector<1x64x256xbf16>
    %132 = vector.shape_cast %131 : vector<1x64x256xbf16> to vector<64x256xbf16>
    %cst_103 = arith.constant dense<0.000000e+00> : vector<64x64xf32>
    %133 = tpu.matmul %132, %65, %cst_103 {dimension_numbers = #tpu.dot_dimension_numbers<[1], [0], [0], [1], [0, 0, 1, 1], [], []>} : vector<64x256xbf16>, vector<256x64xbf16>, vector<64x64xf32> -> vector<64x64xf32>
    %134 = arith.truncf %133 : vector<64x64xf32> to vector<64x64xbf16>
    %c8_104 = arith.constant 8 : index
    %c0_105 = arith.constant 0 : index
    %c0_106 = arith.constant 0 : index
    %135 = vector.load %arg5[%c8_104, %c0_105, %c0_106] : memref<9x64x64xbf16, #tpu.memory_space<vmem>>, vector<1x64x64xbf16>
    %136 = vector.shape_cast %135 : vector<1x64x64xbf16> to vector<64x64xbf16>
    %cst_107 = arith.constant dense<0.000000e+00> : vector<64x64xf32>
    %137 = tpu.matmul %134, %136, %cst_107 {dimension_numbers = #tpu.dot_dimension_numbers<[1], [0], [0], [1], [0, 0, 1, 1], [], []>} : vector<64x64xbf16>, vector<64x64xbf16>, vector<64x64xf32> -> vector<64x64xf32>
    %138 = arith.addf %130, %137 : vector<64x64xf32>
    %c0_108 = arith.constant 0 : index
    %c0_109 = arith.constant 0 : index
    %139 = vector.load %arg6[%c0_108, %c0_109] : memref<1x64xf32, #tpu.memory_space<vmem>>, vector<1x64xf32>
    %140 = vector.broadcast %139 : vector<1x64xf32> to vector<64x64xf32>
    %141 = arith.addf %138, %140 : vector<64x64xf32>
    %cst_110 = arith.constant 0.000000e+00 : f32
    %142 = vector.broadcast %cst_110 : f32 to vector<64x64xf32>
    %143 = arith.cmpf oge, %141, %142 : vector<64x64xf32>
    %cst_111 = arith.constant 2.000000e-01 : f32
    %144 = vector.broadcast %cst_111 : f32 to vector<64x64xf32>
    %145 = arith.mulf %144, %141 : vector<64x64xf32>
    %146 = arith.select %143, %141, %145 : vector<64x64xi1>, vector<64x64xf32>
    %147 = arith.truncf %146 : vector<64x64xf32> to vector<64x64xbf16>
    %cst_112 = arith.constant 0.000000e+00 : f32
    %148 = vector.broadcast %cst_112 : f32 to vector<16x64xf32>
    %c0_113 = arith.constant 0 : index
    %c0_114 = arith.constant 0 : index
    %c0_115 = arith.constant 0 : index
    %149 = vector.load %arg7[%c0_113, %c0_114, %c0_115] : memref<9x16x64xbf16, #tpu.memory_space<vmem>>, vector<1x16x64xbf16>
    %150 = vector.shape_cast %149 : vector<1x16x64xbf16> to vector<16x64xbf16>
    %cst_116 = arith.constant dense<0.000000e+00> : vector<16x64xf32>
    %151 = tpu.matmul %150, %147, %cst_116 {dimension_numbers = #tpu.dot_dimension_numbers<[1], [0], [0], [1], [0, 0, 1, 1], [], []>} : vector<16x64xbf16>, vector<64x64xbf16>, vector<16x64xf32> -> vector<16x64xf32>
    %152 = arith.truncf %151 : vector<16x64xf32> to vector<16x64xbf16>
    %c0_117 = arith.constant 0 : index
    %c0_118 = arith.constant 0 : index
    %c0_119 = arith.constant 0 : index
    %153 = vector.load %arg8[%c0_117, %c0_118, %c0_119] : memref<9x64x64xbf16, #tpu.memory_space<vmem>>, vector<1x64x64xbf16>
    %154 = vector.shape_cast %153 : vector<1x64x64xbf16> to vector<64x64xbf16>
    %cst_120 = arith.constant dense<0.000000e+00> : vector<16x64xf32>
    %155 = tpu.matmul %152, %154, %cst_120 {dimension_numbers = #tpu.dot_dimension_numbers<[1], [0], [0], [1], [0, 0, 1, 1], [], []>} : vector<16x64xbf16>, vector<64x64xbf16>, vector<16x64xf32> -> vector<16x64xf32>
    %156 = arith.addf %148, %155 : vector<16x64xf32>
    %c1_121 = arith.constant 1 : index
    %c0_122 = arith.constant 0 : index
    %c0_123 = arith.constant 0 : index
    %157 = vector.load %arg7[%c1_121, %c0_122, %c0_123] : memref<9x16x64xbf16, #tpu.memory_space<vmem>>, vector<1x16x64xbf16>
    %158 = vector.shape_cast %157 : vector<1x16x64xbf16> to vector<16x64xbf16>
    %cst_124 = arith.constant dense<0.000000e+00> : vector<16x64xf32>
    %159 = tpu.matmul %158, %147, %cst_124 {dimension_numbers = #tpu.dot_dimension_numbers<[1], [0], [0], [1], [0, 0, 1, 1], [], []>} : vector<16x64xbf16>, vector<64x64xbf16>, vector<16x64xf32> -> vector<16x64xf32>
    %160 = arith.truncf %159 : vector<16x64xf32> to vector<16x64xbf16>
    %c1_125 = arith.constant 1 : index
    %c0_126 = arith.constant 0 : index
    %c0_127 = arith.constant 0 : index
    %161 = vector.load %arg8[%c1_125, %c0_126, %c0_127] : memref<9x64x64xbf16, #tpu.memory_space<vmem>>, vector<1x64x64xbf16>
    %162 = vector.shape_cast %161 : vector<1x64x64xbf16> to vector<64x64xbf16>
    %cst_128 = arith.constant dense<0.000000e+00> : vector<16x64xf32>
    %163 = tpu.matmul %160, %162, %cst_128 {dimension_numbers = #tpu.dot_dimension_numbers<[1], [0], [0], [1], [0, 0, 1, 1], [], []>} : vector<16x64xbf16>, vector<64x64xbf16>, vector<16x64xf32> -> vector<16x64xf32>
    %164 = arith.addf %156, %163 : vector<16x64xf32>
    %c2_129 = arith.constant 2 : index
    %c0_130 = arith.constant 0 : index
    %c0_131 = arith.constant 0 : index
    %165 = vector.load %arg7[%c2_129, %c0_130, %c0_131] : memref<9x16x64xbf16, #tpu.memory_space<vmem>>, vector<1x16x64xbf16>
    %166 = vector.shape_cast %165 : vector<1x16x64xbf16> to vector<16x64xbf16>
    %cst_132 = arith.constant dense<0.000000e+00> : vector<16x64xf32>
    %167 = tpu.matmul %166, %147, %cst_132 {dimension_numbers = #tpu.dot_dimension_numbers<[1], [0], [0], [1], [0, 0, 1, 1], [], []>} : vector<16x64xbf16>, vector<64x64xbf16>, vector<16x64xf32> -> vector<16x64xf32>
    %168 = arith.truncf %167 : vector<16x64xf32> to vector<16x64xbf16>
    %c2_133 = arith.constant 2 : index
    %c0_134 = arith.constant 0 : index
    %c0_135 = arith.constant 0 : index
    %169 = vector.load %arg8[%c2_133, %c0_134, %c0_135] : memref<9x64x64xbf16, #tpu.memory_space<vmem>>, vector<1x64x64xbf16>
    %170 = vector.shape_cast %169 : vector<1x64x64xbf16> to vector<64x64xbf16>
    %cst_136 = arith.constant dense<0.000000e+00> : vector<16x64xf32>
    %171 = tpu.matmul %168, %170, %cst_136 {dimension_numbers = #tpu.dot_dimension_numbers<[1], [0], [0], [1], [0, 0, 1, 1], [], []>} : vector<16x64xbf16>, vector<64x64xbf16>, vector<16x64xf32> -> vector<16x64xf32>
    %172 = arith.addf %164, %171 : vector<16x64xf32>
    %c3_137 = arith.constant 3 : index
    %c0_138 = arith.constant 0 : index
    %c0_139 = arith.constant 0 : index
    %173 = vector.load %arg7[%c3_137, %c0_138, %c0_139] : memref<9x16x64xbf16, #tpu.memory_space<vmem>>, vector<1x16x64xbf16>
    %174 = vector.shape_cast %173 : vector<1x16x64xbf16> to vector<16x64xbf16>
    %cst_140 = arith.constant dense<0.000000e+00> : vector<16x64xf32>
    %175 = tpu.matmul %174, %147, %cst_140 {dimension_numbers = #tpu.dot_dimension_numbers<[1], [0], [0], [1], [0, 0, 1, 1], [], []>} : vector<16x64xbf16>, vector<64x64xbf16>, vector<16x64xf32> -> vector<16x64xf32>
    %176 = arith.truncf %175 : vector<16x64xf32> to vector<16x64xbf16>
    %c3_141 = arith.constant 3 : index
    %c0_142 = arith.constant 0 : index
    %c0_143 = arith.constant 0 : index
    %177 = vector.load %arg8[%c3_141, %c0_142, %c0_143] : memref<9x64x64xbf16, #tpu.memory_space<vmem>>, vector<1x64x64xbf16>
    %178 = vector.shape_cast %177 : vector<1x64x64xbf16> to vector<64x64xbf16>
    %cst_144 = arith.constant dense<0.000000e+00> : vector<16x64xf32>
    %179 = tpu.matmul %176, %178, %cst_144 {dimension_numbers = #tpu.dot_dimension_numbers<[1], [0], [0], [1], [0, 0, 1, 1], [], []>} : vector<16x64xbf16>, vector<64x64xbf16>, vector<16x64xf32> -> vector<16x64xf32>
    %180 = arith.addf %172, %179 : vector<16x64xf32>
    %c4_145 = arith.constant 4 : index
    %c0_146 = arith.constant 0 : index
    %c0_147 = arith.constant 0 : index
    %181 = vector.load %arg7[%c4_145, %c0_146, %c0_147] : memref<9x16x64xbf16, #tpu.memory_space<vmem>>, vector<1x16x64xbf16>
    %182 = vector.shape_cast %181 : vector<1x16x64xbf16> to vector<16x64xbf16>
    %cst_148 = arith.constant dense<0.000000e+00> : vector<16x64xf32>
    %183 = tpu.matmul %182, %147, %cst_148 {dimension_numbers = #tpu.dot_dimension_numbers<[1], [0], [0], [1], [0, 0, 1, 1], [], []>} : vector<16x64xbf16>, vector<64x64xbf16>, vector<16x64xf32> -> vector<16x64xf32>
    %184 = arith.truncf %183 : vector<16x64xf32> to vector<16x64xbf16>
    %c4_149 = arith.constant 4 : index
    %c0_150 = arith.constant 0 : index
    %c0_151 = arith.constant 0 : index
    %185 = vector.load %arg8[%c4_149, %c0_150, %c0_151] : memref<9x64x64xbf16, #tpu.memory_space<vmem>>, vector<1x64x64xbf16>
    %186 = vector.shape_cast %185 : vector<1x64x64xbf16> to vector<64x64xbf16>
    %cst_152 = arith.constant dense<0.000000e+00> : vector<16x64xf32>
    %187 = tpu.matmul %184, %186, %cst_152 {dimension_numbers = #tpu.dot_dimension_numbers<[1], [0], [0], [1], [0, 0, 1, 1], [], []>} : vector<16x64xbf16>, vector<64x64xbf16>, vector<16x64xf32> -> vector<16x64xf32>
    %188 = arith.addf %180, %187 : vector<16x64xf32>
    %c5_153 = arith.constant 5 : index
    %c0_154 = arith.constant 0 : index
    %c0_155 = arith.constant 0 : index
    %189 = vector.load %arg7[%c5_153, %c0_154, %c0_155] : memref<9x16x64xbf16, #tpu.memory_space<vmem>>, vector<1x16x64xbf16>
    %190 = vector.shape_cast %189 : vector<1x16x64xbf16> to vector<16x64xbf16>
    %cst_156 = arith.constant dense<0.000000e+00> : vector<16x64xf32>
    %191 = tpu.matmul %190, %147, %cst_156 {dimension_numbers = #tpu.dot_dimension_numbers<[1], [0], [0], [1], [0, 0, 1, 1], [], []>} : vector<16x64xbf16>, vector<64x64xbf16>, vector<16x64xf32> -> vector<16x64xf32>
    %192 = arith.truncf %191 : vector<16x64xf32> to vector<16x64xbf16>
    %c5_157 = arith.constant 5 : index
    %c0_158 = arith.constant 0 : index
    %c0_159 = arith.constant 0 : index
    %193 = vector.load %arg8[%c5_157, %c0_158, %c0_159] : memref<9x64x64xbf16, #tpu.memory_space<vmem>>, vector<1x64x64xbf16>
    %194 = vector.shape_cast %193 : vector<1x64x64xbf16> to vector<64x64xbf16>
    %cst_160 = arith.constant dense<0.000000e+00> : vector<16x64xf32>
    %195 = tpu.matmul %192, %194, %cst_160 {dimension_numbers = #tpu.dot_dimension_numbers<[1], [0], [0], [1], [0, 0, 1, 1], [], []>} : vector<16x64xbf16>, vector<64x64xbf16>, vector<16x64xf32> -> vector<16x64xf32>
    %196 = arith.addf %188, %195 : vector<16x64xf32>
    %c6_161 = arith.constant 6 : index
    %c0_162 = arith.constant 0 : index
    %c0_163 = arith.constant 0 : index
    %197 = vector.load %arg7[%c6_161, %c0_162, %c0_163] : memref<9x16x64xbf16, #tpu.memory_space<vmem>>, vector<1x16x64xbf16>
    %198 = vector.shape_cast %197 : vector<1x16x64xbf16> to vector<16x64xbf16>
    %cst_164 = arith.constant dense<0.000000e+00> : vector<16x64xf32>
    %199 = tpu.matmul %198, %147, %cst_164 {dimension_numbers = #tpu.dot_dimension_numbers<[1], [0], [0], [1], [0, 0, 1, 1], [], []>} : vector<16x64xbf16>, vector<64x64xbf16>, vector<16x64xf32> -> vector<16x64xf32>
    %200 = arith.truncf %199 : vector<16x64xf32> to vector<16x64xbf16>
    %c6_165 = arith.constant 6 : index
    %c0_166 = arith.constant 0 : index
    %c0_167 = arith.constant 0 : index
    %201 = vector.load %arg8[%c6_165, %c0_166, %c0_167] : memref<9x64x64xbf16, #tpu.memory_space<vmem>>, vector<1x64x64xbf16>
    %202 = vector.shape_cast %201 : vector<1x64x64xbf16> to vector<64x64xbf16>
    %cst_168 = arith.constant dense<0.000000e+00> : vector<16x64xf32>
    %203 = tpu.matmul %200, %202, %cst_168 {dimension_numbers = #tpu.dot_dimension_numbers<[1], [0], [0], [1], [0, 0, 1, 1], [], []>} : vector<16x64xbf16>, vector<64x64xbf16>, vector<16x64xf32> -> vector<16x64xf32>
    %204 = arith.addf %196, %203 : vector<16x64xf32>
    %c7_169 = arith.constant 7 : index
    %c0_170 = arith.constant 0 : index
    %c0_171 = arith.constant 0 : index
    %205 = vector.load %arg7[%c7_169, %c0_170, %c0_171] : memref<9x16x64xbf16, #tpu.memory_space<vmem>>, vector<1x16x64xbf16>
    %206 = vector.shape_cast %205 : vector<1x16x64xbf16> to vector<16x64xbf16>
    %cst_172 = arith.constant dense<0.000000e+00> : vector<16x64xf32>
    %207 = tpu.matmul %206, %147, %cst_172 {dimension_numbers = #tpu.dot_dimension_numbers<[1], [0], [0], [1], [0, 0, 1, 1], [], []>} : vector<16x64xbf16>, vector<64x64xbf16>, vector<16x64xf32> -> vector<16x64xf32>
    %208 = arith.truncf %207 : vector<16x64xf32> to vector<16x64xbf16>
    %c7_173 = arith.constant 7 : index
    %c0_174 = arith.constant 0 : index
    %c0_175 = arith.constant 0 : index
    %209 = vector.load %arg8[%c7_173, %c0_174, %c0_175] : memref<9x64x64xbf16, #tpu.memory_space<vmem>>, vector<1x64x64xbf16>
    %210 = vector.shape_cast %209 : vector<1x64x64xbf16> to vector<64x64xbf16>
    %cst_176 = arith.constant dense<0.000000e+00> : vector<16x64xf32>
    %211 = tpu.matmul %208, %210, %cst_176 {dimension_numbers = #tpu.dot_dimension_numbers<[1], [0], [0], [1], [0, 0, 1, 1], [], []>} : vector<16x64xbf16>, vector<64x64xbf16>, vector<16x64xf32> -> vector<16x64xf32>
    %212 = arith.addf %204, %211 : vector<16x64xf32>
    %c8_177 = arith.constant 8 : index
    %c0_178 = arith.constant 0 : index
    %c0_179 = arith.constant 0 : index
    %213 = vector.load %arg7[%c8_177, %c0_178, %c0_179] : memref<9x16x64xbf16, #tpu.memory_space<vmem>>, vector<1x16x64xbf16>
    %214 = vector.shape_cast %213 : vector<1x16x64xbf16> to vector<16x64xbf16>
    %cst_180 = arith.constant dense<0.000000e+00> : vector<16x64xf32>
    %215 = tpu.matmul %214, %147, %cst_180 {dimension_numbers = #tpu.dot_dimension_numbers<[1], [0], [0], [1], [0, 0, 1, 1], [], []>} : vector<16x64xbf16>, vector<64x64xbf16>, vector<16x64xf32> -> vector<16x64xf32>
    %216 = arith.truncf %215 : vector<16x64xf32> to vector<16x64xbf16>
    %c8_181 = arith.constant 8 : index
    %c0_182 = arith.constant 0 : index
    %c0_183 = arith.constant 0 : index
    %217 = vector.load %arg8[%c8_181, %c0_182, %c0_183] : memref<9x64x64xbf16, #tpu.memory_space<vmem>>, vector<1x64x64xbf16>
    %218 = vector.shape_cast %217 : vector<1x64x64xbf16> to vector<64x64xbf16>
    %cst_184 = arith.constant dense<0.000000e+00> : vector<16x64xf32>
    %219 = tpu.matmul %216, %218, %cst_184 {dimension_numbers = #tpu.dot_dimension_numbers<[1], [0], [0], [1], [0, 0, 1, 1], [], []>} : vector<16x64xbf16>, vector<64x64xbf16>, vector<16x64xf32> -> vector<16x64xf32>
    %220 = arith.addf %212, %219 : vector<16x64xf32>
    %c0_185 = arith.constant 0 : index
    %c0_186 = arith.constant 0 : index
    %221 = vector.load %arg9[%c0_185, %c0_186] : memref<1x64xf32, #tpu.memory_space<vmem>>, vector<1x64xf32>
    %222 = vector.broadcast %221 : vector<1x64xf32> to vector<16x64xf32>
    %223 = arith.addf %220, %222 : vector<16x64xf32>
    %cst_187 = arith.constant 0.000000e+00 : f32
    %224 = vector.broadcast %cst_187 : f32 to vector<16x64xf32>
    %225 = arith.cmpf oge, %223, %224 : vector<16x64xf32>
    %cst_188 = arith.constant 2.000000e-01 : f32
    %226 = vector.broadcast %cst_188 : f32 to vector<16x64xf32>
    %227 = arith.mulf %226, %223 : vector<16x64xf32>
    %228 = arith.select %225, %223, %227 : vector<16x64xi1>, vector<16x64xf32>
    %c0_189 = arith.constant 0 : index
    %c0_190 = arith.constant 0 : index
    %229 = vector.load %arg10[%c0_189, %c0_190] : memref<16x64xf32, #tpu.memory_space<vmem>>, vector<16x64xf32>
    %230 = arith.mulf %228, %229 : vector<16x64xf32>
    %cst_191 = arith.constant dense<0.000000e+00> : vector<16xf32>
    %231 = vector.multi_reduction <add>, %230, %cst_191 [1] : vector<16x64xf32> to vector<16xf32>
    %232 = vector.shape_cast %231 : vector<16xf32> to vector<16x1xf32>
    %cst_192 = arith.constant dense<0.000000e+00> : vector<1xf32>
    %233 = vector.multi_reduction <add>, %232, %cst_192 [0] : vector<16x1xf32> to vector<1xf32>
    %234 = vector.shape_cast %233 : vector<1xf32> to vector<1x1xf32>
    %c0_193 = arith.constant 0 : index
    %c0_194 = arith.constant 0 : index
    %235 = vector.load %arg11[%c0_193, %c0_194] : memref<1x1xf32, #tpu.memory_space<vmem>>, vector<1x1xf32>
    %236 = arith.addf %234, %235 : vector<1x1xf32>
    %cst_195 = arith.constant 0.000000e+00 : f32
    %237 = vector.broadcast %cst_195 : f32 to vector<1x1xf32>
    %238 = arith.subf %237, %236 : vector<1x1xf32>
    %239 = math.exp %238 : vector<1x1xf32>
    %cst_196 = arith.constant 1.000000e+00 : f32
    %240 = vector.broadcast %cst_196 : f32 to vector<1x1xf32>
    %241 = arith.addf %240, %239 : vector<1x1xf32>
    %cst_197 = arith.constant 1.000000e+00 : f32
    %242 = vector.broadcast %cst_197 : f32 to vector<1x1xf32>
    %243 = arith.divf %242, %241 : vector<1x1xf32>
    %244 = vector.shape_cast %243 : vector<1x1xf32> to vector<1x1x1xf32>
    %c0_198 = arith.constant 0 : index
    %c0_199 = arith.constant 0 : index
    %c0_200 = arith.constant 0 : index
    %245 = vector.load %arg12[%c0_198, %c0_199, %c0_200] : memref<1x1x1xf32, #tpu.memory_space<vmem>>, vector<1x1x1xf32>
    tpu.vector_store %arg12[%c0_198, %c0_199, %c0_200], %244 {strides = array<i32>} : memref<1x1x1xf32, #tpu.memory_space<vmem>>, vector<1x1x1xf32>,
    return
  }
  func.func @transform_0(%arg0: i32) -> (i32, i32, i32, i32) {
    %c0_i32 = arith.constant 0 : i32
    %c0_i32_0 = arith.constant 0 : i32
    %c0_i32_1 = arith.constant 0 : i32
    %c0_i32_2 = arith.constant 0 : i32
    return %arg0, %c0_i32, %c0_i32_0, %c0_i32_1 : i32, i32, i32, i32
  }
  func.func @transform_1(%arg0: i32) -> (i32, i32, i32) {
    %c0_i32 = arith.constant 0 : i32
    %c0_i32_0 = arith.constant 0 : i32
    %c0_i32_1 = arith.constant 0 : i32
    %c0_i32_2 = arith.constant 0 : i32
    return %c0_i32, %c0_i32_0, %c0_i32_1 : i32, i32, i32
  }
  func.func @transform_2(%arg0: i32) -> (i32, i32) {
    %c0_i32 = arith.constant 0 : i32
    %c0_i32_0 = arith.constant 0 : i32
    %c0_i32_1 = arith.constant 0 : i32
    return %c0_i32, %c0_i32_0 : i32, i32
  }
  func.func @transform_3(%arg0: i32) -> (i32, i32, i32) {
    %c0_i32 = arith.constant 0 : i32
    %c0_i32_0 = arith.constant 0 : i32
    %c0_i32_1 = arith.constant 0 : i32
    %c0_i32_2 = arith.constant 0 : i32
    return %c0_i32, %c0_i32_0, %c0_i32_1 : i32, i32, i32
  }
  func.func @transform_4(%arg0: i32) -> (i32, i32, i32) {
    %c0_i32 = arith.constant 0 : i32
    %c0_i32_0 = arith.constant 0 : i32
    %c0_i32_1 = arith.constant 0 : i32
    %c0_i32_2 = arith.constant 0 : i32
    return %c0_i32, %c0_i32_0, %c0_i32_1 : i32, i32, i32
  }
  func.func @transform_5(%arg0: i32) -> (i32, i32) {
    %c0_i32 = arith.constant 0 : i32
    %c0_i32_0 = arith.constant 0 : i32
    %c0_i32_1 = arith.constant 0 : i32
    return %c0_i32, %c0_i32_0 : i32, i32
  }
  func.func @transform_6(%arg0: i32) -> (i32, i32, i32) {
    %c0_i32 = arith.constant 0 : i32
    %c0_i32_0 = arith.constant 0 : i32
    %c0_i32_1 = arith.constant 0 : i32
    %c0_i32_2 = arith.constant 0 : i32
    return %c0_i32, %c0_i32_0, %c0_i32_1 : i32, i32, i32
  }
  func.func @transform_7(%arg0: i32) -> (i32, i32, i32) {
    %c0_i32 = arith.constant 0 : i32
    %c0_i32_0 = arith.constant 0 : i32
    %c0_i32_1 = arith.constant 0 : i32
    %c0_i32_2 = arith.constant 0 : i32
    return %c0_i32, %c0_i32_0, %c0_i32_1 : i32, i32, i32
  }
  func.func @transform_8(%arg0: i32) -> (i32, i32) {
    %c0_i32 = arith.constant 0 : i32
    %c0_i32_0 = arith.constant 0 : i32
    %c0_i32_1 = arith.constant 0 : i32
    return %c0_i32, %c0_i32_0 : i32, i32
  }
  func.func @transform_9(%arg0: i32) -> (i32, i32) {
    %c0_i32 = arith.constant 0 : i32
    %c0_i32_0 = arith.constant 0 : i32
    %c0_i32_1 = arith.constant 0 : i32
    return %c0_i32, %c0_i32_0 : i32, i32
  }
  func.func @transform_10(%arg0: i32) -> (i32, i32) {
    %c0_i32 = arith.constant 0 : i32
    %c0_i32_0 = arith.constant 0 : i32
    %c0_i32_1 = arith.constant 0 : i32
    return %c0_i32, %c0_i32_0 : i32, i32
  }
  func.func @transform_11(%arg0: i32) -> (i32, i32, i32) {
    %c0_i32 = arith.constant 0 : i32
    %c0_i32_0 = arith.constant 0 : i32
    %c0_i32_1 = arith.constant 0 : i32
    return %arg0, %c0_i32, %c0_i32_0 : i32, i32, i32
  }
}

</mosaic_0001>

<bundles_post_ra>
// kernel: discriminator_forward.1
= control target key start
LH: loop header
LB: loop body
LE: loop exit
PB: predicated region body
PF: predicated region fallthrough
CT: control target
= control target key end

     0   :  { %s6653_s19 = smov 0   ;;  %s8783_s0 = inlined_call_operand.vmem [shape: bf16[2,18,18,12], index: 0, kind: input, shape index: {}]   ;;  %s8784_s1 = inlined_call_operand.vmem [shape: bf16[9,12,64], index: 1, kind: input, shape index: {}]   ;;  %s8785_s2 = inlined_call_operand.vmem [shape: f32[1,64], index: 2, kind: input, shape index: {}]   ;;  %s8786_s3 = inlined_call_operand.vmem [shape: bf16[9,64,256], index: 3, kind: input, shape index: {}]   ;;  %s8787_s4 = inlined_call_operand.vmem [shape: bf16[9,64,64], index: 4, kind: input, shape index: {}]   ;;  %s8788_s5 = inlined_call_operand.vmem [shape: f32[1,64], index: 5, kind: input, shape index: {}]   ;;  %s8789_s6 = inlined_call_operand.vmem [shape: bf16[9,16,64], index: 6, kind: input, shape index: {}]   ;;  %s8790_s7 = inlined_call_operand.vmem [shape: bf16[9,64,64], index: 7, kind: input, shape index: {}]   ;;  %s8791_s8 = inlined_call_operand.vmem [shape: f32[1,64], index: 8, kind: input, shape index: {}]   ;;  %s8792_s9 = inlined_call_operand.vmem [shape: f32[16,64], index: 9, kind: input, shape index: {}]   ;;  %s8793_s10 = inlined_call_operand.<no memory space> [shape: f32[1,1], index: 10, kind: input, shape index: {}]   ;;  %s8794_s11 = inlined_call_operand.vmem [shape: f32[2,1,1], index: 11, kind: output, shape index: {}]  }
   0x1   :  { %v16_v0 = vstv %s8793_s10 }
   0x2   :  { %17 = vst [vmem:[#allocation2] sm:$0x1] %v16_v0 }
   0x3 LB: > { %s5210_s20 = sadd.s32 4294967295, %s6588_s19   ;;  %p5214_p0 = scmp.ge.s32.totalorder %s6588_s19, 1  ;;  %s6588_s19 = sphi %s6653_s19, %s23_s19  }
   0x4   : > { %p339_p1 = scmp.lt.s32.totalorder %s6588_s19, 3 }
   0x6   : > { %p340_p2 = pnand %p5214_p0, %p339_p1 }
   0x8   : > { %343 = sbr.rel (%p340_p2) target bundleno = 2593 (0xa21), region = 64 }
   0xd   : > { %vm934_vm0 = vcmask 1045504   ;;  %v5342_v1 = vld [vmem:[%s8784_s1 + $0x10] sm:$0xf]  ;;  %v6398_v2 = vld [vmem:[%s8784_s1 + $0x10] sm:$0x30]  ;;  %p377_p3 = scmp.lt.s32.totalorder %s5210_s20, 1 }
   0xe   : > { %v5343_v3 = vor.u32 %v6398_v2, %v5342_v1  ;;  %v5368_v4 = vld [vmem:[%s8784_s1 + $0x18] sm:$0xf]  ;;  %v6399_v5 = vld [vmem:[%s8784_s1 + $0x18] sm:$0x30]  ;;  %vm1268_vm1 = vcmask 1042432   ;;  %vm1269_vm2 = vcmask 1046532  }
   0xf   : > { %v5369_v6 = vor.u32 %v6399_v5, %v5368_v4  ;;  %s8892_s20 = smov (!%p377_p3, %s5210_s20), 1  ;;  %v5220_v7 = vld [vmem:[%s8784_s1 + $0x8] sm:$0xf]  ;;  %v6397_v8 = vld [vmem:[%s8784_s1 + $0x8] sm:$0x30]  ;;  %vm885_vm3 = vcmask 97280   ;;  %vm6697_vm4 = vmor %vm1268_vm1, %vm1269_vm2 }
  0x10   : > { %v1488_v9 = vsel %vm934_vm0, %v5343_v3, 0  ;;  %v5221_v10 = vor.u32 %v6397_v8, %v5220_v7  ;;  %v5304_v11 = vld [vmem:[%s8784_s1] sm:$0xf]  ;;  %v6396_v12 = vld [vmem:[%s8784_s1] sm:$0x30]  ;;  %s6558_s17 = smul.u32 216, %s8892_s20 }
  0x11   : > { %1497 = vmatpush.bf16.msra.mxu2 %v1488_v9  ;;  %v1628_v13 = vsel %vm934_vm0, %v5369_v6, 0  ;;  %v5305_v14 = vor.u32 %v6396_v12, %v5304_v11  ;;  %vm442_vm5 = vsmask.f32 3328  ;;  %vm443_vm6 = vsmask.f32 7440 }
  0x12   : > { %1637 = vmatpush.bf16.msra.mxu3 %v1628_v13  ;;  %v936_v15 = vsel %vm934_vm0, %v5221_v10, 0  ;;  %s6694_s22 = scalar_lea.vmem %s8783_s0, %s6558_s17  ;;  %vm6716_vm7 = vmor %vm442_vm5, %vm443_vm6  ;;  %s384_s17 = scalar_lea.vmem %s8794_s11, %s8892_s20 }
  0x13   : > { %945 = vmatpush.bf16.msra.mxu0 %v936_v15  ;;  %v1161_v17 = vsel %vm934_vm0, %v5305_v14, 0  ;;  %v386_v18 = vld [vmem:[%s6694_s22] sm:$0xf]  ;;  %v387_v19 = vld [vmem:[%s6694_s22 + $0x4] sm:$0xf]  ;;  %v6379_v24 = vld [vmem:[%s6694_s22 + $0xc] sm:$0xff] }
  0x14   : > { %v388_v20 = vld [vmem:[%s6694_s22 + $0x8] sm:$0x1]  ;;  %1170 = vmatpush.bf16.msra.mxu1 %v1161_v17  ;;  %v5322_v21 = vrot.slane %v386_v18, 9  ;;  %v1273_v22 = vrot.slane %v387_v19, 5  ;;  %v446_v25 = vshrl.u32 %v386_v18, 16  ;;  %v6378_v26 = vld [vmem:[%s6694_s22] sm:$0xff] }
  0x15   : > { %v1276_v23 = vrot.slane %v388_v20, 5  ;;  %v449_v27 = vshll.u32 %v386_v18, 16  ;;  %v455_v28 = vshll.u32 %v387_v19, 16  ;;  %v459_v29 = vshrl.u32 %v387_v19, 16  ;;  %5370 = vmatmul.msk.bf16.vlgmr.msra.gmra.mxu3 %vm885_vm3, %v6379_v24  ;;  %v389_v34 = vld [vmem:[%s6694_s22 + $0xc] sm:$0xf] }
  0x16   : > { %v465_v30 = vshll.u32 %v388_v20, 16  ;;  %v1274_v31 = vsel %vm6697_vm4, %v5322_v21, %v1273_v22  ;;  %v1275_v32 = vrot.slane %v1273_v22, 4  ;;  %v448_v33 = vrot.slane %v446_v25, 4  ;;  %v390_v39 = vld [vmem:[%s6694_s22 + $0x10] sm:$0xf]  ;;  %v6380_v8 = vld [vmem:[%s6694_s22 + $0x18] sm:$0xff] }
  0x17   : > { %5306 = vmatmul.msk.bf16.vlgmr.msra.gmra.mxu1 %vm885_vm3, %v6378_v26  ;;  %v1386_v35 = vunpack.c.l.b16 %v1274_v31  ;;  %v451_v36 = vrot.slane %v449_v27, 5  ;;  %v457_v37 = vrot.slane %v455_v28, 5  ;;  %v461_v38 = vrot.slane %v459_v29, 4  ;;  %v391_v46 = vld [vmem:[%s6694_s22 + $0x14] sm:$0x1] }
  0x18   : > { %v1277_v40 = vsel %vm6697_vm4, %v1275_v32, %v1276_v23  ;;  %v467_v44 = vrot.slane %v465_v30, 5  ;;  %v1280_v47 = vrot.slane %v390_v39, 5  ;;  %v470_v48 = vshrl.u32 %v389_v34, 16  ;;  %v392_v12 = vld [vmem:[%s6694_s22 + $0x18] sm:$0xf] }
  0x19   : > { %v1387_v41 = vunpack.c.l.b16 %v1277_v40  ;;  %v452_v42 = vor.u32 %v451_v36, %v448_v33  ;;  %v462_v43 = vor.u32 %v461_v38, %v457_v37  ;;  %v473_v49 = vshll.u32 %v389_v34, 16  ;;  %v393_v13 = vld [vmem:[%s6694_s22 + $0x1c] sm:$0xf]  ;;  %v394_v28 = vld [vmem:[%s6694_s22 + $0x20] sm:$0x1] }
  0x1a   : > { %v5323_v53 = vrot.slane %v389_v34, 9  ;;  %v472_v54 = vrot.slane %v470_v48, 4  ;;  %v479_v56 = vshll.u32 %v390_v39, 16  ;;  %v1283_v59 = vrot.slane %v391_v46, 5 }
  0x1b   : > { %v1418_v50 = vpack.c.b16 %v1387_v41, %v1386_v35  ;;  %v453_v51 = vrot.slane %v452_v42, 4  ;;  %v463_v52 = vrot.slane %v462_v43, 4  ;;  %v475_v55 = vrot.slane %v473_v49, 5  ;;  %v6381_v41 = vld [vmem:[%s6694_s22 + $0x24] sm:$0xff] }
  0x1c   : > { %v483_v60 = vshrl.u32 %v390_v39, 16  ;;  %v1282_v63 = vrot.slane %v1280_v47, 4  ;;  %v481_v0 = vrot.slane %v479_v56, 5  ;;  %v489_v3 = vshll.u32 %v391_v46, 16  ;;  %v395_v42 = vld [vmem:[%s6694_s22 + $0x24] sm:$0xf] }
  0x1d   : > { %5344 = vmatmul.msk.bf16.vlgmr.msra.gmra.mxu2 %vm885_vm3, %v1418_v50  ;;  %v458_v57 = vsel %vm6716_vm7, %v453_v51, %v457_v37  ;;  %v468_v58 = vsel %vm6716_vm7, %v463_v52, %v467_v44  ;;  %v476_v1 = vor.u32 %v475_v55, %v472_v54  ;;  %v1281_v6 = vsel %vm6697_vm4, %v5323_v53, %v1280_v47  ;;  %v396_v43 = vld [vmem:[%s6694_s22 + $0x28] sm:$0xf] }
  0x1e   : > { %v832_v61 = vunpack.c.l.b16 %v458_v57  ;;  %v833_v62 = vunpack.c.l.b16 %v468_v58  ;;  %v485_v2 = vrot.slane %v483_v60, 4  ;;  %v1284_v7 = vsel %vm6697_vm4, %v1282_v63, %v1283_v59 }
  0x1f   : > { %v477_v9 = vrot.slane %v476_v1, 4  ;;  %v491_v11 = vrot.slane %v489_v3, 5  ;;  %v1388_v14 = vunpack.c.l.b16 %v1281_v6  ;;  %v1389_v15 = vunpack.c.l.b16 %v1284_v7 }
  0x20   : > { %v864_v4 = vpack.c.b16 %v833_v62, %v832_v61  ;;  %v486_v5 = vor.u32 %v485_v2, %v481_v0  ;;  %v494_v17 = vshrl.u32 %v392_v12, 16  ;;  %v497_v18 = vshll.u32 %v392_v12, 16 }
  0x21   : > { %v482_v19 = vsel %vm6716_vm7, %v477_v9, %v481_v0  ;;  %v503_v21 = vshll.u32 %v393_v13, 16  ;;  %v507_v22 = vshrl.u32 %v393_v13, 16  ;;  %v6740_v23 = vpack.c.b16 %v1389_v15, %v1388_v14  ;;  %v397_v0 = vld [vmem:[%s6694_s22 + $0x2c] sm:$0x1]  ;;  %v398_v14 = vld [vmem:[%s6694_s22 + $0x30] sm:$0xf] }
  0x22   : > { %5222 = vmatmul.msk.bf16.vlgmr.msra.gmra.mxu0 %vm885_vm3, %v864_v4  ;;  %v487_v10 = vrot.slane %v486_v5, 4  ;;  %v1287_v25 = vrot.slane %v393_v13, 5  ;;  %v834_v26 = vunpack.c.l.b16 %v482_v19  ;;  %v496_v29 = vrot.slane %v494_v17, 4  ;;  %v6382_v13 = vld [vmem:[%s6694_s22 + $0x30] sm:$0xff] }
  0x23   : > { %v505_v30 = vrot.slane %v503_v21, 5  ;;  %v509_v31 = vrot.slane %v507_v22, 4  ;;  %v5324_v32 = vrot.slane %v392_v12, 9  ;;  %v1290_v34 = vrot.slane %v394_v28, 5  ;;  %v399_v15 = vld [vmem:[%s6694_s22 + $0x34] sm:$0xf] }
  0x24   : > { %v492_v20 = vsel %vm6716_vm7, %v487_v10, %v491_v11  ;;  %v1289_v33 = vrot.slane %v1287_v25, 4  ;;  %v513_v38 = vshll.u32 %v394_v28, 16  ;;  %v518_v50 = vshrl.u32 %v395_v42, 16 }
  0x25   : > { %5371 = vmatmul.msk.bf16.gmra.mxu3 %vm885_vm3, %v6380_v8  ;;  %v835_v27 = vunpack.c.l.b16 %v492_v20  ;;  %v510_v37 = vor.u32 %v509_v31, %v505_v30  ;;  %v1288_v39 = vsel %vm6697_vm4, %v5324_v32, %v1287_v25  ;;  %v521_v51 = vshll.u32 %v395_v42, 16 }
  0x26   : > { %v1291_v40 = vsel %vm6697_vm4, %v1289_v33, %v1290_v34  ;;  %v515_v47 = vrot.slane %v513_v38, 5  ;;  %v1390_v48 = vunpack.c.l.b16 %v1288_v39  ;;  %v527_v52 = vshll.u32 %v396_v43, 16 }
  0x27   : > { %5307 = vmatmul.msk.bf16.gmra.mxu1 %vm885_vm3, %v6379_v24  ;;  %v499_v24 = vrot.slane %v497_v18, 5  ;;  %v6745_v35 = vpack.c.b16 %v835_v27, %v834_v26  ;;  %v511_v46 = vrot.slane %v510_v37, 4  ;;  %v1391_v49 = vunpack.c.l.b16 %v1291_v40 }
  0x28   : > { %v531_v53 = vshrl.u32 %v396_v43, 16  ;;  %v520_v57 = vrot.slane %v518_v50, 4  ;;  %v523_v58 = vrot.slane %v521_v51, 5  ;;  %v529_v59 = vrot.slane %v527_v52, 5  ;;  %v401_v50 = vld [vmem:[%s6694_s22 + $0x3c] sm:$0xf] }
  0x29   : > { %v500_v36 = vor.u32 %v499_v24, %v496_v29  ;;  %v516_v55 = vsel %vm6716_vm7, %v511_v46, %v515_v47  ;;  %v6762_v56 = vpack.c.b16 %v1391_v49, %v1390_v48  ;;  %v1294_v63 = vrot.slane %v396_v43, 5  ;;  %v6383_v46 = vld [vmem:[%s6694_s22 + $0x3c] sm:$0xff] }
  0x2a   : > { %v533_v60 = vrot.slane %v531_v53, 4  ;;  %v837_v62 = vunpack.c.l.b16 %v516_v55  ;;  %v524_v1 = vor.u32 %v523_v58, %v520_v57  ;;  %v537_v3 = vshll.u32 %v397_v0, 16  ;;  %v402_v51 = vld [vmem:[%s6694_s22 + $0x40] sm:$0xf] }
  0x2b   : > { %v501_v44 = vrot.slane %v500_v36, 4  ;;  %v5325_v5 = vrot.slane %v395_v42, 9  ;;  %v1296_v6 = vrot.slane %v1294_v63, 4  ;;  %v1297_v7 = vrot.slane %v397_v0, 5 }
  0x2c   : > { %v534_v2 = vor.u32 %v533_v60, %v529_v59  ;;  %v539_v10 = vrot.slane %v537_v3, 5  ;;  %v542_v21 = vshrl.u32 %v398_v14, 16  ;;  %v545_v22 = vshll.u32 %v398_v14, 16 }
  0x2d   : > { %5345 = vmatmul.msk.bf16.gmra.mxu2 %vm885_vm3, %v6740_v23  ;;  %v506_v54 = vsel %vm6716_vm7, %v501_v44, %v505_v30  ;;  %v1295_v11 = vsel %vm6697_vm4, %v5325_v5, %v1294_v63  ;;  %v1298_v12 = vsel %vm6697_vm4, %v1296_v6, %v1297_v7  ;;  %v551_v25 = vshll.u32 %v399_v15, 16  ;;  %v400_v30 = vld [vmem:[%s6694_s22 + $0x38] sm:$0x1] }
  0x2e   : > { %v836_v61 = vunpack.c.l.b16 %v506_v54  ;;  %v535_v9 = vrot.slane %v534_v2, 4  ;;  %v1392_v17 = vunpack.c.l.b16 %v1295_v11  ;;  %v1393_v18 = vunpack.c.l.b16 %v1298_v12 }
  0x2f   : > { %v555_v26 = vshrl.u32 %v399_v15, 16  ;;  %v1301_v24 = vrot.slane %v399_v15, 5  ;;  %v544_v31 = vrot.slane %v542_v21, 4  ;;  %v547_v32 = vrot.slane %v545_v22, 5 }
  0x30   : > { %v6767_v4 = vpack.c.b16 %v837_v62, %v836_v61  ;;  %v540_v20 = vsel %vm6716_vm7, %v535_v9, %v539_v10  ;;  %v6784_v27 = vpack.c.b16 %v1393_v18, %v1392_v17  ;;  %v553_v33 = vrot.slane %v551_v25, 5  ;;  %v6384_v17 = vld [vmem:[%s6694_s22 + $0x48] sm:$0xff] }
  0x31   : > { %v839_v29 = vunpack.c.l.b16 %v540_v20  ;;  %v557_v34 = vrot.slane %v555_v26, 4  ;;  %v5326_v37 = vrot.slane %v398_v14, 9  ;;  %v1304_v38 = vrot.slane %v400_v30, 5  ;;  %v404_v18 = vld [vmem:[%s6694_s22 + $0x48] sm:$0xf] }
  0x32   : > { %5223 = vmatmul.msk.bf16.gmra.mxu0 %vm885_vm3, %v6745_v35  ;;  %v1303_v39 = vrot.slane %v1301_v24, 4  ;;  %v548_v40 = vor.u32 %v547_v32, %v544_v31  ;;  %v561_v42 = vshll.u32 %v400_v30, 16  ;;  %v566_v57 = vshrl.u32 %v401_v50, 16 }
  0x33   : > { %v1302_v43 = vsel %vm6697_vm4, %v5326_v37, %v1301_v24  ;;  %v569_v58 = vshll.u32 %v401_v50, 16  ;;  %v579_v60 = vshrl.u32 %v402_v51, 16  ;;  %v1308_v62 = vrot.slane %v402_v51, 5 }
  0x34   : > { %v1305_v44 = vsel %vm6697_vm4, %v1303_v39, %v1304_v38  ;;  %v549_v47 = vrot.slane %v548_v40, 4  ;;  %v563_v49 = vrot.slane %v561_v42, 5  ;;  %v1394_v52 = vunpack.c.l.b16 %v1302_v43  ;;  %v406_v43 = vld [vmem:[%s6694_s22 + $0x50] sm:$0x1] }
  0x35   : > { %5372 = vmatmul.msk.bf16.gmra.mxu3 %vm885_vm3, %v6381_v41  ;;  %v1395_v53 = vunpack.c.l.b16 %v1305_v44  ;;  %v568_v2 = vrot.slane %v566_v57, 4  ;;  %v571_v3 = vrot.slane %v569_v58, 5  ;;  %v581_v6 = vrot.slane %v579_v60, 4  ;;  %v6385_v58 = vld [vmem:[%s6694_s22 + $0x54] sm:$0xff] }
  0x36   : > { %v554_v54 = vsel %vm6716_vm7, %v549_v47, %v553_v33  ;;  %v5327_v7 = vrot.slane %v401_v50, 9  ;;  %v609_v47 = vshll.u32 %v406_v43, 16  ;;  %v408_v60 = vld [vmem:[%s6694_s22 + $0x58] sm:$0xf] }
  0x37   : > { %5308 = vmatmul.msk.bf16.gmra.mxu1 %vm885_vm3, %v6380_v8  ;;  %v525_v8 = vrot.slane %v524_v1, 4  ;;  %v6806_v61 = vpack.c.b16 %v1395_v53, %v1394_v52  ;;  %v840_v63 = vunpack.c.l.b16 %v554_v54  ;;  %v403_v1 = vld [vmem:[%s6694_s22 + $0x44] sm:$0x1]  ;;  %v572_v11 = vor.u32 %v571_v3, %v568_v2 }
  0x38   : > { %v1311_v9 = vrot.slane %v403_v1, 5  ;;  %v1309_v14 = vsel %vm6697_vm4, %v5327_v7, %v1308_v62  ;;  %v611_v54 = vrot.slane %v609_v47, 5 }
  0x39   : > { %v530_v19 = vsel %vm6716_vm7, %v525_v8, %v529_v59  ;;  %v575_v59 = vshll.u32 %v402_v51, 16  ;;  %v1310_v8 = vrot.slane %v1308_v62, 4  ;;  %v573_v20 = vrot.slane %v572_v11, 4 }
  0x3a   : > { %v838_v28 = vunpack.c.l.b16 %v530_v19  ;;  %v405_v19 = vld [vmem:[%s6694_s22 + $0x4c] sm:$0xf]  ;;  %v1396_v25 = vunpack.c.l.b16 %v1309_v14  ;;  %v1318_v51 = vrot.slane %v406_v43, 5  ;;  %v1322_v11 = vrot.slane %v408_v60, 5 }
  0x3b   : > { %v577_v5 = vrot.slane %v575_v59, 5  ;;  %v1312_v15 = vsel %vm6697_vm4, %v1310_v8, %v1311_v9  ;;  %v599_v24 = vshll.u32 %v405_v19, 16  ;;  %v603_v30 = vshrl.u32 %v405_v19, 16  ;;  %v407_v59 = vld [vmem:[%s6694_s22 + $0x54] sm:$0xf] }
  0x3c   : > { %v6789_v36 = vpack.c.b16 %v839_v29, %v838_v28  ;;  %v1397_v26 = vunpack.c.l.b16 %v1312_v15  ;;  %v590_v28 = vshrl.u32 %v404_v18, 16  ;;  %v593_v29 = vshll.u32 %v404_v18, 16 }
  0x3d   : > { %5346 = vmatmul.msk.bf16.gmra.mxu2 %vm885_vm3, %v6762_v56  ;;  %v582_v12 = vor.u32 %v581_v6, %v577_v5  ;;  %v578_v31 = vsel %vm6716_vm7, %v573_v20, %v577_v5  ;;  %v601_v38 = vrot.slane %v599_v24, 5  ;;  %v605_v39 = vrot.slane %v603_v30, 4  ;;  %v6386_v24 = vld [vmem:[%s6694_s22 + $0x60] sm:$0xff] }
  0x3e   : > { %v595_v37 = vrot.slane %v593_v29, 5  ;;  %v842_v40 = vunpack.c.l.b16 %v578_v31  ;;  %v1315_v42 = vrot.slane %v405_v19, 5  ;;  %v614_v2 = vshrl.u32 %v407_v59, 16 }
  0x3f   : > { %v583_v21 = vrot.slane %v582_v12, 4  ;;  %v617_v3 = vshll.u32 %v407_v59, 16  ;;  %v623_v5 = vshll.u32 %v408_v60, 16  ;;  %v627_v6 = vshrl.u32 %v408_v60, 16  ;;  %v409_v12 = vld [vmem:[%s6694_s22 + $0x5c] sm:$0x1] }
  0x40   : > { %v1317_v50 = vrot.slane %v1315_v42, 4  ;;  %v5329_v19 = vrot.slane %v407_v59, 9  ;;  %v1325_v20 = vrot.slane %v409_v12, 5 }
  0x41   : > { %v619_v14 = vrot.slane %v617_v3, 5  ;;  %v625_v15 = vrot.slane %v623_v5, 5  ;;  %v6387_v5 = vld [vmem:[%s6694_s22 + $0x6c] sm:$0xff] }
  0x42   : > { %5224 = vmatmul.msk.bf16.gmra.mxu0 %vm885_vm3, %v6767_v4  ;;  %v1319_v57 = vsel %vm6697_vm4, %v1317_v50, %v1318_v51 }
  0x45   : > { %5373 = vmatmul.msk.bf16.gmra.mxu3 %vm885_vm3, %v6382_v13 }
  0x47   : > { %5309 = vmatmul.msk.bf16.gmra.mxu1 %vm885_vm3, %v6381_v41  ;;  %v558_v41 = vor.u32 %v557_v34, %v553_v33  ;;  %v6828_v33 = vpack.c.b16 %v1397_v26, %v1396_v25  ;;  %v592_v34 = vrot.slane %v590_v28, 4  ;;  %v633_v26 = vshll.u32 %v409_v12, 16 }
  0x48   : > { %v1323_v28 = vsel %vm6697_vm4, %v5329_v19, %v1322_v11 }
  0x49   : > { %v559_v48 = vrot.slane %v558_v41, 4  ;;  %v596_v44 = vor.u32 %v595_v37, %v592_v34  ;;  %v410_v34 = vld [vmem:[%s6694_s22 + $0x60] sm:$0xf]  ;;  %v411_v37 = vld [vmem:[%s6694_s22 + $0x64] sm:$0xf] }
  0x4a   : > { %v641_v43 = vshll.u32 %v410_v34, 16  ;;  %v1329_v51 = vrot.slane %v411_v37, 5  ;;  %v5330_v59 = vrot.slane %v410_v34, 9 }
  0x4b   : > { %v564_v55 = vsel %vm6716_vm7, %v559_v48, %v563_v49  ;;  %v5328_v49 = vrot.slane %v404_v18, 9  ;;  %v597_v52 = vrot.slane %v596_v44, 4  ;;  %v629_v18 = vrot.slane %v627_v6, 4  ;;  %v413_v6 = vld [vmem:[%s6694_s22 + $0x6c] sm:$0xf] }
  0x4c   : > { %v841_v0 = vunpack.c.l.b16 %v564_v55  ;;  %v647_v44 = vshll.u32 %v411_v37, 16  ;;  %v1331_v60 = vrot.slane %v1329_v51, 4  ;;  %v665_v19 = vshll.u32 %v413_v6, 16 }
  0x4d   : > { %5347 = vmatmul.msk.bf16.gmra.mxu2 %vm885_vm3, %v6784_v27  ;;  %v1316_v55 = vsel %vm6697_vm4, %v5328_v49, %v1315_v42  ;;  %v630_v25 = vor.u32 %v629_v18, %v625_v15  ;;  %v638_v42 = vshrl.u32 %v410_v34, 16  ;;  %v662_v18 = vshrl.u32 %v413_v6, 16 }
  0x4e   : > { %v6811_v10 = vpack.c.b16 %v841_v0, %v840_v63  ;;  %v1398_v62 = vunpack.c.l.b16 %v1316_v55  ;;  %v1399_v63 = vunpack.c.l.b16 %v1319_v57  ;;  %v602_v0 = vsel %vm6716_vm7, %v597_v52, %v601_v38  ;;  %v412_v52 = vld [vmem:[%s6694_s22 + $0x68] sm:$0x1] }
  0x4f   : > { %v844_v8 = vunpack.c.l.b16 %v602_v0  ;;  %v631_v31 = vrot.slane %v630_v25, 4  ;;  %v649_v55 = vrot.slane %v647_v44, 5 }
  0x50   : > { %v6850_v7 = vpack.c.b16 %v1399_v63, %v1398_v62  ;;  %v1332_v62 = vrot.slane %v412_v52, 5 }
  0x52   : > { %5225 = vmatmul.msk.bf16.gmra.mxu0 %vm885_vm3, %v6789_v36  ;;  %v1333_v3 = vsel %vm6697_vm4, %v1331_v60, %v1332_v62  ;;  %v6908_v60 = vld [vmem:[%s6694_s22 + $0x78] sm:$0xff] }
  0x55   : > { %5374 = vmatmul.msk.bf16.gmra.mxu3 %vm885_vm3, %v6383_v46 }
  0x57   : > { %5310 = vmatmul.msk.bf16.gmra.mxu1 %vm885_vm3, %v6382_v13  ;;  %v585_v13 = vshll.u32 %v403_v1, 16 }
  0x59   : > { %v587_v22 = vrot.slane %v585_v13, 5  ;;  %v616_v13 = vrot.slane %v614_v2, 4  ;;  %v1330_v2 = vsel %vm6697_vm4, %v5330_v59, %v1329_v51 }
  0x5b   : > { %v588_v32 = vsel %vm6716_vm7, %v583_v21, %v587_v22  ;;  %v1324_v21 = vrot.slane %v1322_v11, 4  ;;  %v620_v22 = vor.u32 %v619_v14, %v616_v13  ;;  %v414_v13 = vld [vmem:[%s6694_s22 + $0x70] sm:$0xf]  ;;  %v1402_v14 = vunpack.c.l.b16 %v1330_v2  ;;  %v417_v2 = vld [vmem:[%s6694_s22 + $0x7c] sm:$0xf] }
  0x5c   : > { %v843_v41 = vunpack.c.l.b16 %v588_v32  ;;  %v635_v32 = vrot.slane %v633_v26, 5 }
  0x5d   : > { %5348 = vmatmul.msk.bf16.gmra.mxu2 %vm885_vm3, %v6806_v61  ;;  %v1326_v29 = vsel %vm6697_vm4, %v1324_v21, %v1325_v20  ;;  %v621_v30 = vrot.slane %v620_v22, 4  ;;  %v671_v20 = vshll.u32 %v414_v13, 16  ;;  %v675_v21 = vshrl.u32 %v414_v13, 16 }
  0x5e   : > { %v6833_v48 = vpack.c.b16 %v843_v41, %v842_v40  ;;  %v636_v41 = vsel %vm6716_vm7, %v631_v31, %v635_v32  ;;  %v667_v31 = vrot.slane %v665_v19, 5  ;;  %v695_v19 = vshll.u32 %v417_v2, 16 }
  0x5f   : > { %v626_v40 = vsel %vm6716_vm7, %v621_v30, %v625_v15  ;;  %v847_v50 = vunpack.c.l.b16 %v636_v41  ;;  %v1403_v15 = vunpack.c.l.b16 %v1333_v3  ;;  %v664_v30 = vrot.slane %v662_v18, 4 }
  0x60   : > { %v846_v49 = vunpack.c.l.b16 %v626_v40  ;;  %v5331_v40 = vrot.slane %v413_v6, 9 }
  0x61   : > { %v6894_v26 = vpack.c.b16 %v1403_v15, %v1402_v14 }
  0x62   : > { %5226 = vmatmul.msk.bf16.gmra.mxu0 %vm885_vm3, %v6811_v10 }
  0x63   : > { %8812 = vst [vmem:[#allocation4_spill] sm:$0xff] %v6894_v26 }
  0x65   : > { %5375 = vmatmul.msk.bf16.gmra.mxu3 %vm885_vm3, %v6384_v17 }
  0x67   : > { %5311 = vmatmul.msk.bf16.gmra.mxu1 %vm885_vm3, %v6383_v46  ;;  %v606_v46 = vor.u32 %v605_v39, %v601_v38  ;;  %v1400_v38 = vunpack.c.l.b16 %v1323_v28  ;;  %v1401_v39 = vunpack.c.l.b16 %v1326_v29  ;;  %v1336_v29 = vrot.slane %v414_v13, 5 }
  0x69   : > { %v607_v53 = vrot.slane %v606_v46, 4  ;;  %v651_v46 = vshrl.u32 %v411_v37, 16  ;;  %v6872_v47 = vpack.c.b16 %v1401_v39, %v1400_v38  ;;  %v415_v37 = vld [vmem:[%s6694_s22 + $0x74] sm:$0x1]  ;;  %v673_v38 = vrot.slane %v671_v20, 5 }
  0x6a   : > { %v677_v39 = vrot.slane %v675_v21, 4  ;;  %v1338_v41 = vrot.slane %v1336_v29, 4  ;;  %v699_v20 = vshrl.u32 %v417_v2, 16 }
  0x6b   : > { %v612_v1 = vsel %vm6716_vm7, %v607_v53, %v611_v54  ;;  %8811 = vst [vmem:[#allocation3_spill] sm:$0xff] %v6872_v47  ;;  %v640_v53 = vrot.slane %v638_v42, 4  ;;  %v643_v54 = vrot.slane %v641_v43, 5  ;;  %v653_v57 = vrot.slane %v651_v46, 4 }
  0x6c   : > { %v845_v9 = vunpack.c.l.b16 %v612_v1  ;;  %v657_v1 = vshll.u32 %v412_v52, 16  ;;  %v1339_v42 = vrot.slane %v415_v37, 5  ;;  %v668_v43 = vor.u32 %v667_v31, %v664_v30 }
  0x6d   : > { %5349 = vmatmul.msk.bf16.gmra.mxu2 %vm885_vm3, %v6828_v33  ;;  %v644_v63 = vor.u32 %v643_v54, %v640_v53  ;;  %v654_v0 = vor.u32 %v653_v57, %v649_v55  ;;  %v678_v46 = vor.u32 %v677_v39, %v673_v38  ;;  %v1337_v54 = vsel %vm6697_vm4, %v5331_v40, %v1336_v29  ;;  %v418_v39 = vld [vmem:[%s6694_s22 + $0x80] sm:$0x1] }
  0x6e   : > { %v659_v12 = vrot.slane %v657_v1, 5  ;;  %v669_v57 = vrot.slane %v668_v43, 4  ;;  %v1404_v6 = vunpack.c.l.b16 %v1337_v54  ;;  %v697_v40 = vrot.slane %v695_v19, 5 }
  0x6f   : > { %v655_v11 = vrot.slane %v654_v0, 4  ;;  %v679_v62 = vrot.slane %v678_v46, 4  ;;  %v416_v0 = vld [vmem:[%s6694_s22 + $0x78] sm:$0xf]  ;;  %v705_v54 = vshll.u32 %v418_v39, 16 }
  0x70   : > { %v686_v13 = vshrl.u32 %v416_v0, 16  ;;  %v689_v18 = vshll.u32 %v416_v0, 16 }
  0x71   : > { %v660_v25 = vsel %vm6716_vm7, %v655_v11, %v659_v12  ;;  %v6400_v11 = vld [vmem:[%s8784_s1 + $0x20] sm:$0x30]  ;;  %v674_v12 = vsel %vm6716_vm7, %v669_v57, %v673_v38 }
  0x72   : > { %5227 = vmatmul.msk.bf16.gmra.mxu0 %vm885_vm3, %v6833_v48  ;;  %v849_v34 = vunpack.c.l.b16 %v660_v25  ;;  %v850_v30 = vunpack.c.l.b16 %v674_v12  ;;  %v419_v12 = vld [vmem:[%s6694_s22 + $0x84] sm:$0xf] }
  0x75   : > { %5376 = vmatmul.msk.bf16.gmra.mxu3 %vm885_vm3, %v6385_v58 }
  0x77   : > { %5312 = vmatmul.msk.bf16.gmra.mxu1 %vm885_vm3, %v6384_v17  ;;  %v6855_v17 = vpack.c.b16 %v845_v9, %v844_v8  ;;  %v645_v9 = vrot.slane %v644_v63, 4 }
  0x79   : > { %v650_v22 = vsel %vm6716_vm7, %v645_v9, %v649_v55  ;;  %v1340_v55 = vsel %vm6697_vm4, %v1338_v41, %v1339_v42  ;;  %v5390_v9 = vld [vmem:[%s8784_s1 + $0x20] sm:$0xf]  ;;  %v701_v41 = vrot.slane %v699_v20, 4  ;;  %v710_v20 = vshrl.u32 %v419_v12, 16 }
  0x7a   : > { %v848_v32 = vunpack.c.l.b16 %v650_v22  ;;  %v5391_v14 = vor.u32 %v6400_v11, %v5390_v9  ;;  %v707_v9 = vrot.slane %v705_v54, 5  ;;  %v5333_v54 = vrot.slane %v419_v12, 9 }
  0x7c   : > { %v6899_v44 = vpack.c.b16 %v849_v34, %v848_v32  ;;  %v1790_v22 = vsel %vm934_vm0, %v5391_v14, 0  ;;  %v1343_v34 = vrot.slane %v417_v2, 5  ;;  %v6944_v2 = vld [vmem:[%s6694_s22 + $0x84] sm:$0xff] }
  0x7d   : > { %5350 = vmatmul.msk.bf16.gmra.mxu2 %vm885_vm3, %v6850_v7  ;;  %1799 = vmatpush.bf16.msrb.mxu0 %v1790_v22 }
  0x7e   : > { %v1345_v46 = vrot.slane %v1343_v34, 4 }
  0x82   : > { %5228 = vmatmul.msk.bf16.gmra.mxu0 %vm885_vm3, %v6855_v17 }
  0x85   : > { %5377 = vmatmul.msk.bf16.gmra.mxu3 %vm885_vm3, %v6386_v24 }
  0x87   : > { %5313 = vmatmul.msk.bf16.gmra.mxu1 %vm885_vm3, %v6385_v58  ;;  %v6877_v58 = vpack.c.b16 %v847_v50, %v846_v49  ;;  %v681_v49 = vshll.u32 %v415_v37, 16  ;;  %v688_v37 = vrot.slane %v686_v13, 4  ;;  %v420_v13 = vld [vmem:[%s6694_s22 + $0x88] sm:$0xf] }
  0x89   : > { %v683_v63 = vrot.slane %v681_v49, 5  ;;  %v1346_v49 = vrot.slane %v418_v39, 5 }
  0x8b   : > { %v684_v15 = vsel %vm6716_vm7, %v679_v62, %v683_v63  ;;  %v1347_v63 = vsel %vm6697_vm4, %v1345_v46, %v1346_v49  ;;  %v421_v46 = vld [vmem:[%s6694_s22 + $0x8c] sm:$0x1] }
  0x8c   : > { %v851_v31 = vunpack.c.l.b16 %v684_v15  ;;  %v1407_v15 = vunpack.c.l.b16 %v1347_v63 }
  0x8d   : > { %5351 = vmatmul.msk.bf16.gmra.mxu2 %vm885_vm3, %v6872_v47 }
  0x92   : > { %5229 = vmatmul.msk.bf16.gmra.mxu0 %vm885_vm3, %v6877_v58 }
  0x94   : > { %v1172_v8 = vpop.f32.mrf.mxu1 }
  0x95   : > { %5378 = vmatmul.msk.bf16.gmra.mxu3 %vm885_vm3, %v6387_v5 }
  0x97   : > { %5314 = vmatmul.msk.bf16.gmra.mxu1 %vm885_vm3, %v6386_v24 }
  0x98   : > { %v1639_v28 = vpop.f32.mrf.mxu3 }
  0x9c   : > { %v1174_v24 = vpop.f32.mrf.mxu1 }
  0x9d   : > { %5352 = vmatmul.msk.bf16.gmra.mxu2 %vm885_vm3, %v6894_v26 }
  0x9f   : > { %v947_v50 = vpop.f32.mrf.mxu0 }
  0xa0   : > { %v1173_v51 = vadd.f32 %v1172_v8, %v947_v50  ;;  %v1499_v52 = vpop.f32.mrf.mxu2  ;;  %v1641_v53 = vpop.f32.mrf.mxu3  ;;  %v1405_v8 = vunpack.c.l.b16 %v1340_v55  ;;  %v6935_v50 = vpack.c.b16 %v851_v31, %v850_v30 }
  0xa2   : > { %v1579_v59 = vadd.f32 %v1499_v52, %v1173_v51  ;;  %5230 = vmatmul.msk.bf16.gmra.mxu0 %vm885_vm3, %v6899_v44  ;;  %v6928_v29 = vpack.c.b16 %v1405_v8, %v1404_v6  ;;  %v702_v52 = vor.u32 %v701_v41, %v697_v40 }
  0xa4   : > { %v1177_v1 = vpop.f32.mrf.mxu1  ;;  %v6912_v3 = vadd.f32 %v1639_v28, %v1579_v59  ;;  %v703_v8 = vrot.slane %v702_v52, 4 }
  0xa5   : > { %5379 = vmatmul.msk.bf16.gmra.mxu3 %vm885_vm3, %v6908_v60 }
  0xa6   : > { %v708_v19 = vsel %vm6716_vm7, %v703_v8, %v707_v9 }
  0xa7   : > { %5315 = vmatmul.msk.bf16.gmra.mxu1 %vm885_vm3, %v6387_v5  ;;  %v949_v21 = vpop.f32.mrf.mxu0  ;;  %v691_v5 = vrot.slane %v689_v18, 5 }
  0xa8   : > { %v1175_v25 = vadd.f32 %v1174_v24, %v949_v21  ;;  %v1501_v28 = vpop.f32.mrf.mxu2  ;;  %v1644_v32 = vpop.f32.mrf.mxu3  ;;  %v5332_v24 = vrot.slane %v416_v0, 9  ;;  %v713_v21 = vshll.u32 %v419_v12, 16 }
  0xa9   : > { %v692_v51 = vor.u32 %v691_v5, %v688_v37  ;;  %v853_v37 = vunpack.c.l.b16 %v708_v19  ;;  %v1350_v5 = vrot.slane %v420_v13, 5 }
  0xaa   : > { %v1580_v38 = vadd.f32 %v1501_v28, %v1175_v25  ;;  %v719_v25 = vshll.u32 %v420_v13, 16  ;;  %v723_v28 = vshrl.u32 %v420_v13, 16  ;;  %v715_v41 = vrot.slane %v713_v21, 5  ;;  %v422_v21 = vld [vmem:[%s6694_s22 + $0x90] sm:$0xf] }
  0xab   : > { %v693_v6 = vrot.slane %v692_v51, 4  ;;  %v1351_v13 = vsel %vm6697_vm4, %v5333_v54, %v1350_v5 }
  0xac   : > { %v1179_v42 = vpop.f32.mrf.mxu1  ;;  %v6931_v43 = vadd.f32 %v1641_v53, %v1580_v38  ;;  %v1344_v53 = vsel %vm6697_vm4, %v5332_v24, %v1343_v34  ;;  %v721_v49 = vrot.slane %v719_v25, 5  ;;  %v725_v51 = vrot.slane %v723_v28, 4 }
  0xad   : > { %5353 = vmatmul.msk.bf16.gmra.mxu2 %vm885_vm3, %v6928_v29  ;;  %v1406_v14 = vunpack.c.l.b16 %v1344_v53  ;;  %v698_v18 = vsel %vm6716_vm7, %v693_v6, %v697_v40  ;;  %v712_v40 = vrot.slane %v710_v20, 4  ;;  %v1408_v25 = vunpack.c.l.b16 %v1351_v13 }
  0xae   : > { %v852_v34 = vunpack.c.l.b16 %v698_v18  ;;  %v726_v63 = vor.u32 %v725_v51, %v721_v49 }
  0xaf   : > { %v952_v55 = vpop.f32.mrf.mxu0 }
  0xb0   : > { %v1178_v57 = vadd.f32 %v1177_v1, %v952_v55  ;;  %v1504_v59 = vpop.f32.mrf.mxu2  ;;  %v1646_v62 = vpop.f32.mrf.mxu3  ;;  %v1352_v55 = vrot.slane %v1350_v5, 4  ;;  %v727_v19 = vrot.slane %v726_v63, 4 }
  0xb2   : > { %v1581_v0 = vadd.f32 %v1504_v59, %v1178_v57  ;;  %5231 = vmatmul.msk.bf16.gmra.mxu0 %vm885_vm3, %v6935_v50  ;;  %v1353_v57 = vrot.slane %v421_v46, 5  ;;  %v716_v59 = vor.u32 %v715_v41, %v712_v40 }
  0xb4   : > { %v1182_v11 = vpop.f32.mrf.mxu1  ;;  %v6947_v1 = vadd.f32 %v1644_v32, %v1581_v0  ;;  %v6958_v32 = vpack.c.b16 %v1407_v15, %v1406_v14  ;;  %v729_v0 = vshll.u32 %v421_v46, 16  ;;  %v1354_v12 = vsel %vm6697_vm4, %v1352_v55, %v1353_v57  ;;  %v6974_v14 = vld [vmem:[%s6694_s22 + $0x90] sm:$0xff] }
  0xb5   : > { %5380 = vmatmul.msk.bf16.gmra.mxu3 %vm885_vm3, %v6944_v2  ;;  %v717_v15 = vrot.slane %v716_v59, 4  ;;  %v1409_v28 = vunpack.c.l.b16 %v1354_v12  ;;  %v424_v59 = vld [vmem:[%s6694_s22 + $0x98] sm:$0x1] }
  0xb6   : > { %v731_v20 = vrot.slane %v729_v0, 5  ;;  %v1360_v12 = vrot.slane %v424_v59, 5 }
  0xb7   : > { %5316 = vmatmul.msk.bf16.gmra.mxu1 %vm885_vm3, %v6908_v60  ;;  %v954_v22 = vpop.f32.mrf.mxu0  ;;  %v6988_v46 = vpack.c.b16 %v1409_v28, %v1408_v25  ;;  %v753_v25 = vshll.u32 %v424_v59, 16 }
  0xb8   : > { %v1180_v30 = vadd.f32 %v1179_v42, %v954_v22  ;;  %v1506_v31 = vpop.f32.mrf.mxu2  ;;  %v1649_v38 = vpop.f32.mrf.mxu3  ;;  %v6965_v42 = vpack.c.b16 %v853_v37, %v852_v34  ;;  %v423_v22 = vld [vmem:[%s6694_s22 + $0x94] sm:$0xf]  ;;  %v737_v34 = vshll.u32 %v422_v21, 16 }
  0xb9   : > { %v747_v5 = vshrl.u32 %v423_v22, 16  ;;  %v1357_v55 = vrot.slane %v423_v22, 5 }
  0xba   : > { %v1582_v39 = vadd.f32 %v1506_v31, %v1180_v30  ;;  %v722_v30 = vsel %vm6716_vm7, %v717_v15, %v721_v49  ;;  %v734_v31 = vshrl.u32 %v422_v21, 16  ;;  %v739_v63 = vrot.slane %v737_v34, 5 }
  0xbb   : > { %v854_v51 = vunpack.c.l.b16 %v722_v30  ;;  %v1359_v13 = vrot.slane %v1357_v55, 4 }
  0xbc   : > { %v1184_v24 = vpop.f32.mrf.mxu1  ;;  %v6961_v52 = vadd.f32 %v1646_v62, %v1582_v39  ;;  %v743_v39 = vshll.u32 %v423_v22, 16 }
  0xbd   : > { %5354 = vmatmul.msk.bf16.gmra.mxu2 %vm885_vm3, %v6958_v32  ;;  %v1361_v34 = vsel %vm6697_vm4, %v1359_v13, %v1360_v12 }
  0xbf   : > { %v957_v53 = vpop.f32.mrf.mxu0 }
  0xc0   : > { %v1183_v6 = vadd.f32 %v1182_v11, %v957_v53  ;;  %v1509_v8 = vpop.f32.mrf.mxu2  ;;  %v1651_v9 = vpop.f32.mrf.mxu3  ;;  %v736_v53 = vrot.slane %v734_v31, 4 }
  0xc2   : > { %v1583_v62 = vadd.f32 %v1509_v8, %v1183_v6  ;;  %5232 = vmatmul.msk.bf16.gmra.mxu0 %vm885_vm3, %v6965_v42  ;;  %v745_v6 = vrot.slane %v743_v39, 5  ;;  %v749_v8 = vrot.slane %v747_v5, 4  ;;  %v425_v39 = vld [vmem:[%s6694_s22 + $0x9c] sm:$0xf] }
  0xc3   : > { %v761_v59 = vshll.u32 %v425_v39, 16 }
  0xc4   : > { %v1187_v18 = vpop.f32.mrf.mxu1  ;;  %v6977_v11 = vadd.f32 %v1649_v38, %v1583_v62  ;;  %v732_v38 = vsel %vm6716_vm7, %v727_v19, %v731_v20  ;;  %v740_v19 = vor.u32 %v739_v63, %v736_v53  ;;  %v750_v22 = vor.u32 %v749_v8, %v745_v6 }
  0xc5   : > { %5381 = vmatmul.msk.bf16.gmra.mxu3 %vm885_vm3, %v6974_v14  ;;  %v855_v57 = vunpack.c.l.b16 %v732_v38 }
  0xc6   : > { %v741_v38 = vrot.slane %v740_v19, 4 }
  0xc7   : > { %5317 = vmatmul.msk.bf16.gmra.mxu1 %vm885_vm3, %v6944_v2  ;;  %v959_v37 = vpop.f32.mrf.mxu0  ;;  %v6995_v15 = vpack.c.b16 %v855_v57, %v854_v51  ;;  %v1411_v57 = vunpack.c.l.b16 %v1361_v34  ;;  %v427_v34 = vld [vmem:[%s6694_s22 + $0xa4] sm:$0x1] }
  0xc8   : > { %v1185_v40 = vadd.f32 %v1184_v24, %v959_v37  ;;  %v1511_v41 = vpop.f32.mrf.mxu2  ;;  %v1654_v54 = vpop.f32.mrf.mxu3  ;;  %v5334_v24 = vrot.slane %v422_v21, 9  ;;  %v7004_v37 = vld [vmem:[%s6694_s22 + $0x9c] sm:$0xff]  ;;  %v746_v53 = vsel %vm6716_vm7, %v741_v38, %v745_v6 }
  0xc9   : > { %8814 = vst [vmem:[#allocation6_spill] sm:$0xff] %v7004_v37 }
  0xca   : > { %v1584_v49 = vadd.f32 %v1511_v41, %v1185_v40  ;;  %v751_v40 = vrot.slane %v750_v22, 4  ;;  %v755_v41 = vrot.slane %v753_v25, 5 }
  0xcc   : > { %v1189_v0 = vpop.f32.mrf.mxu1  ;;  %v6991_v62 = vadd.f32 %v1651_v9, %v1584_v49  ;;  %v1358_v9 = vsel %vm6697_vm4, %v5334_v24, %v1357_v55  ;;  %v758_v55 = vshrl.u32 %v425_v39, 16 }
  0xcd   : > { %5355 = vmatmul.msk.bf16.gmra.mxu2 %vm885_vm3, %v6988_v46  ;;  %v1410_v49 = vunpack.c.l.b16 %v1358_v9 }
  0xce   : > { %8813 = vst [vmem:[#allocation5_spill] sm:$0xff] %v6991_v62 }
  0xcf   : > { %v962_v20 = vpop.f32.mrf.mxu0  ;;  %v7018_v19 = vpack.c.b16 %v1411_v57, %v1410_v49 }
  0xd0   : > { %v1188_v28 = vadd.f32 %v1187_v18, %v962_v20  ;;  %v1514_v30 = vpop.f32.mrf.mxu2  ;;  %v1656_v31 = vpop.f32.mrf.mxu3  ;;  %v426_v18 = vld [vmem:[%s6694_s22 + $0xa0] sm:$0xf]  ;;  %v856_v20 = vunpack.c.l.b16 %v746_v53 }
  0xd1   : > { %v767_v63 = vshll.u32 %v426_v18, 16  ;;  %v771_v8 = vshrl.u32 %v426_v18, 16  ;;  %8816 = vst [vmem:[#allocation8_spill] sm:$0xff] %v7018_v19  ;;  %v1364_v25 = vrot.slane %v426_v18, 5 }
  0xd2   : > { %v1585_v21 = vadd.f32 %v1514_v30, %v1188_v28  ;;  %5233 = vmatmul.msk.bf16.gmra.mxu0 %vm885_vm3, %v6995_v15  ;;  %v760_v28 = vrot.slane %v758_v55, 4  ;;  %v763_v30 = vrot.slane %v761_v59, 5  ;;  %v777_v55 = vshll.u32 %v427_v34, 16 }
  0xd3   : > { %v773_v38 = vrot.slane %v771_v8, 4 }
  0xd4   : > { %v1192_v5 = vpop.f32.mrf.mxu1  ;;  %v7008_v51 = vadd.f32 %v1654_v54, %v1585_v21  ;;  %v756_v54 = vsel %vm6716_vm7, %v751_v40, %v755_v41  ;;  %v769_v21 = vrot.slane %v767_v63, 5  ;;  %v1366_v40 = vrot.slane %v1364_v25, 4 }
  0xd5   : > { %5382 = vmatmul.msk.bf16.gmra.mxu3 %vm885_vm3, %v7004_v37  ;;  %v857_v9 = vunpack.c.l.b16 %v756_v54  ;;  %v1367_v41 = vrot.slane %v427_v34, 5  ;;  %v764_v49 = vor.u32 %v763_v30, %v760_v28  ;;  %v428_v28 = vld [vmem:[%s6694_s22 + $0xa8] sm:$0xf] }
  0xd6   : > { %8815 = vst [vmem:[#allocation7_spill] sm:$0xff] %v7008_v51  ;;  %v774_v57 = vor.u32 %v773_v38, %v769_v21  ;;  %v782_v38 = vshrl.u32 %v428_v28, 16 }
  0xd7   : > { %5318 = vmatmul.msk.bf16.gmra.mxu1 %vm885_vm3, %v6974_v14  ;;  %v964_v24 = vpop.f32.mrf.mxu0  ;;  %v7025_v18 = vpack.c.b16 %v857_v9, %v856_v20  ;;  %v779_v20 = vrot.slane %v777_v55, 5 }
  0xd8   : > { %v1190_v13 = vadd.f32 %v1189_v0, %v964_v24  ;;  %v1516_v12 = vpop.f32.mrf.mxu2  ;;  %v1659_v22 = vpop.f32.mrf.mxu3  ;;  %v5335_v0 = vrot.slane %v425_v39, 9  ;;  %v1368_v39 = vsel %vm6697_vm4, %v1366_v40, %v1367_v41  ;;  %v765_v24 = vrot.slane %v764_v49, 4 }
  0xd9   : > { %v1413_v34 = vunpack.c.l.b16 %v1368_v39  ;;  %v785_v40 = vshll.u32 %v428_v28, 16  ;;  %v784_v39 = vrot.slane %v782_v38, 4 }
  0xda   : > { %v1586_v6 = vadd.f32 %v1516_v12, %v1190_v13  ;;  %v7034_v13 = vld [vmem:[%s6694_s22 + $0xa8] sm:$0xff]  ;;  %v775_v12 = vrot.slane %v774_v57, 4 }
  0xdb   : > { %8818 = vst [vmem:[#allocation10_spill] sm:$0xff] %v7034_v13 }
  0xdc   : > { %v1194_v51 = vpop.f32.mrf.mxu1  ;;  %v7021_v62 = vadd.f32 %v1656_v31, %v1586_v6  ;;  %v1365_v31 = vsel %vm6697_vm4, %v5335_v0, %v1364_v25  ;;  %v770_v25 = vsel %vm6716_vm7, %v765_v24, %v769_v21  ;;  %v780_v0 = vsel %vm6716_vm7, %v775_v12, %v779_v20 }
  0xdd   : > { %5356 = vmatmul.msk.bf16.gmra.mxu2 %vm885_vm3, %v7018_v19  ;;  %v1412_v9 = vunpack.c.l.b16 %v1365_v31  ;;  %v858_v21 = vunpack.c.l.b16 %v770_v25 }
  0xde   : > { %8817 = vst [vmem:[#allocation9_spill] sm:$0xff] %v7021_v62 }
  0xdf   : > { %v967_v59 = vpop.f32.mrf.mxu0 }
  0xe0   : > { %v1193_v53 = vadd.f32 %v1192_v5, %v967_v59  ;;  %v1519_v63 = vpop.f32.mrf.mxu2  ;;  %v1661_v8 = vpop.f32.mrf.mxu3  ;;  %v429_v5 = vld [vmem:[%s6694_s22 + $0xac] sm:$0xf]  ;;  %v7048_v59 = vpack.c.b16 %v1413_v34, %v1412_v9 }
  0xe1   : > { %v791_v41 = vshll.u32 %v429_v5, 16  ;;  %v1371_v31 = vrot.slane %v429_v5, 5 }
  0xe2   : > { %v1587_v54 = vadd.f32 %v1519_v63, %v1193_v53  ;;  %5234 = vmatmul.msk.bf16.gmra.mxu0 %vm885_vm3, %v7025_v18  ;;  %8820 = vst [vmem:[#allocation12_spill] sm:$0xff] %v7048_v59  ;;  %v859_v53 = vunpack.c.l.b16 %v780_v0 }
  0xe3   : > { %v793_v12 = vrot.slane %v791_v41, 5  ;;  %v1373_v9 = vrot.slane %v1371_v31, 4 }
  0xe4   : > { %v1197_v30 = vpop.f32.mrf.mxu1  ;;  %v7038_v6 = vadd.f32 %v1659_v22, %v1587_v54  ;;  %v795_v22 = vshrl.u32 %v429_v5, 16  ;;  %v430_v54 = vld [vmem:[%s6694_s22 + $0xb0] sm:$0x1]  ;;  %v7055_v25 = vpack.c.b16 %v859_v53, %v858_v21 }
  0xe5   : > { %5383 = vmatmul.msk.bf16.gmra.mxu3 %vm885_vm3, %v7034_v13  ;;  %v1374_v34 = vrot.slane %v430_v54, 5  ;;  %v801_v38 = vshll.u32 %v430_v54, 16  ;;  %v432_v54 = vld [vmem:[%s6694_s22 + $0xb8] sm:$0xf] }
  0xe6   : > { %8819 = vst [vmem:[#allocation11_spill] sm:$0xff] %v7038_v6  ;;  %v787_v6 = vrot.slane %v785_v40, 5  ;;  %v797_v20 = vrot.slane %v795_v22, 4 }
  0xe7   : > { %5319 = vmatmul.msk.bf16.gmra.mxu1 %vm885_vm3, %v7004_v37  ;;  %v969_v49 = vpop.f32.mrf.mxu0  ;;  %v803_v53 = vrot.slane %v801_v38, 5 }
  0xe8   : > { %v1195_v57 = vadd.f32 %v1194_v51, %v969_v49  ;;  %v1521_v55 = vpop.f32.mrf.mxu2  ;;  %v1664_v63 = vpop.f32.mrf.mxu3  ;;  %v5336_v51 = vrot.slane %v428_v28, 9  ;;  %v788_v0 = vor.u32 %v787_v6, %v784_v39  ;;  %v798_v5 = vor.u32 %v797_v20, %v793_v12 }
  0xea   : > { %v1588_v24 = vadd.f32 %v1521_v55, %v1195_v57  ;;  %v1375_v57 = vsel %vm6697_vm4, %v1373_v9, %v1374_v34  ;;  %v7064_v55 = vld [vmem:[%s6694_s22 + $0xb4] sm:$0xff]  ;;  %v789_v6 = vrot.slane %v788_v0, 4  ;;  %v799_v21 = vrot.slane %v798_v5, 4 }
  0xeb   : > { %v815_v0 = vshll.u32 %v432_v54, 16  ;;  %v819_v5 = vshrl.u32 %v432_v54, 16 }
  0xec   : > { %v1199_v62 = vpop.f32.mrf.mxu1  ;;  %v7051_v37 = vadd.f32 %v1661_v8, %v1588_v24  ;;  %v1372_v8 = vsel %vm6697_vm4, %v5336_v51, %v1371_v31  ;;  %v431_v24 = vld [vmem:[%s6694_s22 + $0xb4] sm:$0xf]  ;;  %v794_v31 = vsel %vm6716_vm7, %v789_v6, %v793_v12  ;;  %v804_v51 = vsel %vm6716_vm7, %v799_v21, %v803_v53  ;;  %v5439_v6 = vld [vmem:[%s8784_s1 + $0x30] sm:$0xf] }
  0xed   : > { %5357 = vmatmul.msk.bf16.gmra.mxu2 %vm885_vm3, %v7048_v59  ;;  %v1414_v20 = vunpack.c.l.b16 %v1372_v8  ;;  %v806_v9 = vshrl.u32 %v431_v24, 16  ;;  %v809_v34 = vshll.u32 %v431_v24, 16  ;;  %v860_v8 = vunpack.c.l.b16 %v794_v31  ;;  %v6402_v21 = vld [vmem:[%s8784_s1 + $0x30] sm:$0x30]  ;;  %v6403_v31 = vld [vmem:[%s8784_s1 + $0x38] sm:$0x30] }
  0xee   : > { %8821 = vst [vmem:[#allocation13_spill] sm:$0xff] %v7051_v37  ;;  %v1378_v12 = vrot.slane %v432_v54, 5  ;;  %v5461_v54 = vld [vmem:[%s8784_s1 + $0x38] sm:$0xf] }
  0xef   : > { %v972_v40 = vpop.f32.mrf.mxu0  ;;  %v808_v37 = vrot.slane %v806_v9, 4 }
  0xf0   : > { %v1198_v41 = vadd.f32 %v1197_v30, %v972_v40  ;;  %v1524_v22 = vpop.f32.mrf.mxu2  ;;  %v1666_v49 = vpop.f32.mrf.mxu3  ;;  %v1415_v40 = vunpack.c.l.b16 %v1375_v57  ;;  %v861_v57 = vunpack.c.l.b16 %v804_v51 }
  0xf2   : > { %v1589_v28 = vadd.f32 %v1524_v22, %v1198_v41  ;;  %5235 = vmatmul.msk.bf16.gmra.mxu0 %vm885_vm3, %v7055_v25  ;;  %v7078_v22 = vpack.c.b16 %v1415_v40, %v1414_v20  ;;  %v817_v20 = vrot.slane %v815_v0, 5  ;;  %v821_v40 = vrot.slane %v819_v5, 4  ;;  %v5413_v0 = vld [vmem:[%s8784_s1 + $0x28] sm:$0xf]  ;;  %v6401_v5 = vld [vmem:[%s8784_s1 + $0x28] sm:$0x30] }
  0xf3   : > { %v7098_v9 = vpack.c.b16 %v861_v57, %v860_v8 }
  0xf4   : > { %v1202_v39 = vpop.f32.mrf.mxu1  ;;  %v7067_v30 = vadd.f32 %v1664_v63, %v1589_v28  ;;  %8823 = vst [vmem:[#allocation15_spill] sm:$0xff] %v7078_v22  ;;  %v822_v8 = vor.u32 %v821_v40, %v817_v20 }
  0xf5   : > { %5384 = vmatmul.msk.bf16.gmra.mxu3 %vm885_vm3, %v7064_v55 }
  0xf6   : > { %8822 = vst [vmem:[#allocation14_spill] sm:$0xff] %v7067_v30  ;;  %v433_v30 = vld [vmem:[%s6694_s22 + $0xbc] sm:$0x1] }
  0xf7   : > { %5320 = vmatmul.msk.bf16.gmra.mxu1 %vm885_vm3, %v7034_v13  ;;  %v974_v63 = vpop.f32.mrf.mxu0  ;;  %v811_v13 = vrot.slane %v809_v34, 5  ;;  %v5337_v34 = vrot.slane %v431_v24, 9  ;;  %v825_v57 = vshll.u32 %v433_v30, 16 }
  0xf8   : > { %v1200_v38 = vadd.f32 %v1199_v62, %v974_v63  ;;  %v1526_v41 = vpop.f32.mrf.mxu2  ;;  %v1669_v28 = vpop.f32.mrf.mxu3  ;;  %v5440_v62 = vor.u32 %v6402_v21, %v5439_v6  ;;  %v5414_v21 = vor.u32 %v6401_v5, %v5413_v0 }
  0xf9   : > { %v827_v40 = vrot.slane %v825_v57, 5 }
  0xfa   : > { %v1590_v53 = vadd.f32 %v1526_v41, %v1200_v38  ;;  %v2076_v59 = vsel %vm934_vm0, %v5440_v62, 0  ;;  %v5462_v38 = vor.u32 %v6403_v31, %v5461_v54  ;;  %v1380_v41 = vrot.slane %v1378_v12, 4 }
  0xfb   : > { %2085 = vmatpush.bf16.msrb.mxu2 %v2076_v59  ;;  %v812_v62 = vor.u32 %v811_v13, %v808_v37  ;;  %v1936_v31 = vsel %vm934_vm0, %v5414_v21, 0  ;;  %v1379_v59 = vsel %vm6697_vm4, %v5337_v34, %v1378_v12  ;;  %v7115_v37 = vld [vmem:[%s6694_s22 + $0xc0] sm:$0xff] }
  0xfc   : > { %v1204_v63 = vpop.f32.mrf.mxu1  ;;  %v7093_v51 = vadd.f32 %v1666_v49, %v1590_v53  ;;  %v1381_v49 = vrot.slane %v433_v30, 5  ;;  %v2238_v6 = vsel %vm934_vm0, %v5462_v38, 0  ;;  %1945 = vmatpush.bf16.msrb.mxu1 %v1936_v31  ;;  %v1416_v5 = vunpack.c.l.b16 %v1379_v59 }
  0xfd   : > { %5358 = vmatmul.msk.bf16.gmra.mxu2 %vm885_vm3, %v7078_v22  ;;  %2247 = vmatpush.bf16.msrb.mxu3 %v2238_v6  ;;  %v813_v30 = vrot.slane %v812_v62, 4 }
  0xfe   : > { %8824 = vst [vmem:[#allocation16_spill] sm:$0xff] %v7093_v51  ;;  %v1382_v38 = vsel %vm6697_vm4, %v1380_v41, %v1381_v49 }
  0xff   : > { %v977_v53 = vpop.f32.mrf.mxu0  ;;  %v1417_v6 = vunpack.c.l.b16 %v1382_v38  ;;  %v818_v34 = vsel %vm6716_vm7, %v813_v30, %v817_v20 }
 0x100   : > { %v1203_v24 = vadd.f32 %v1202_v39, %v977_v53  ;;  %v1529_v54 = vpop.f32.mrf.mxu2  ;;  %v1671_v51 = vpop.f32.mrf.mxu3  ;;  %v823_v39 = vrot.slane %v822_v8, 4  ;;  %v862_v62 = vunpack.c.l.b16 %v818_v34 }
 0x101   : > { %v7127_v53 = vpack.c.b16 %v1417_v6, %v1416_v5 }
 0x102   : > { %v1591_v22 = vadd.f32 %v1529_v54, %v1203_v24  ;;  %5236 = vmatmul.msk.bf16.gmra.mxu0 %vm885_vm3, %v7098_v9  ;;  %v828_v41 = vsel %vm6716_vm7, %v823_v39, %v827_v40 }
 0x103   : > { %v863_v8 = vunpack.c.l.b16 %v828_v41  ;;  %v6574_v41 = vld [vmem:[%s6694_s22 + $0x18] sm:$0xff] }
 0x104   : > { %v1207_v13 = vpop.f32.mrf.mxu1  ;;  %v7117_v0 = vadd.f32 %v1669_v28, %v1591_v22 }
 0x105   : > { %5385 = vmatmul.msk.bf16.gmra.mxu3 %vm885_vm3, %v7115_v37  ;;  %v7133_v54 = vpack.c.b16 %v863_v8, %v862_v62 }
 0x107   : > { %5321 = vmatmul.msk.bf16.gmra.mxu1 %vm885_vm3, %v7064_v55  ;;  %v979_v12 = vpop.f32.mrf.mxu0 }
 0x108   : > { %v1205_v49 = vadd.f32 %v1204_v63, %v979_v12  ;;  %v1531_v21 = vpop.f32.mrf.mxu2  ;;  %v1674_v22 = vpop.f32.mrf.mxu3 }
 0x10a   : > { %v1592_v28 = vadd.f32 %v1531_v21, %v1205_v49 }
 0x10c   : > { %v1209_v57 = vpop.f32.mrf.mxu1  ;;  %v7129_v24 = vadd.f32 %v1671_v51, %v1592_v28 }
 0x10d   : > { %5359 = vmatmul.msk.bf16.gmra.mxu2 %vm885_vm3, %v7127_v53 }
 0x10f   : > { %v982_v20 = vpop.f32.mrf.mxu0 }
 0x110   : > { %v1208_v31 = vadd.f32 %v1207_v13, %v982_v20  ;;  %v1534_v59 = vpop.f32.mrf.mxu2  ;;  %v1676_v63 = vpop.f32.mrf.mxu3 }
 0x112   : > { %v1593_v38 = vadd.f32 %v1534_v59, %v1208_v31  ;;  %5237 = vmatmul.msk.bf16.gmra.mxu0 %vm885_vm3, %v7133_v54 }
 0x114   : > { %v1212_v30 = vpop.f32.mrf.mxu1  ;;  %v7137_v39 = vadd.f32 %v1674_v22, %v1593_v38 }
 0x115   : > { %5463 = vmatmul.msk.bf16.vlgmr.msrb.gmra.mxu3 %vm885_vm3, %v6767_v4 }
 0x117   : > { %5415 = vmatmul.msk.bf16.vlgmr.msrb.gmra.mxu1 %vm885_vm3, %v6740_v23  ;;  %v984_v51 = vpop.f32.mrf.mxu0 }
 0x118   : > { %v1210_v40 = vadd.f32 %v1209_v57, %v984_v51  ;;  %v1536_v5 = vpop.f32.mrf.mxu2  ;;  %v1679_v13 = vpop.f32.mrf.mxu3  ;;  %v6575_v51 = vld [vmem:[%s6694_s22 + $0x24] sm:$0xff] }
 0x11a   : > { %v1594_v6 = vadd.f32 %v1536_v5, %v1210_v40 }
 0x11c   : > { %v1214_v12 = vpop.f32.mrf.mxu1  ;;  %v7143_v34 = vadd.f32 %v1676_v63, %v1594_v6 }
 0x11d   : > { %5441 = vmatmul.msk.bf16.vlgmr.msrb.gmra.mxu2 %vm885_vm3, %v6574_v41 }
 0x11f   : > { %v987_v49 = vpop.f32.mrf.mxu0 }
 0x120   : > { %v1213_v21 = vadd.f32 %v1212_v30, %v987_v49  ;;  %v1539_v22 = vpop.f32.mrf.mxu2  ;;  %v1681_v28 = vpop.f32.mrf.mxu3 }
 0x122   : > { %v1595_v62 = vadd.f32 %v1539_v22, %v1213_v21  ;;  %5392 = vmatmul.msk.bf16.vlgmr.msrb.gmra.mxu0 %vm885_vm3, %v6745_v35 }
 0x124   : > { %v1217_v23 = vpop.f32.mrf.mxu1  ;;  %v7149_v8 = vadd.f32 %v1679_v13, %v1595_v62 }
 0x125   : > { %5464 = vmatmul.msk.bf16.gmra.mxu3 %vm885_vm3, %v6789_v36 }
 0x127   : > { %5416 = vmatmul.msk.bf16.gmra.mxu1 %vm885_vm3, %v6762_v56  ;;  %v989_v57 = vpop.f32.mrf.mxu0 }
 0x128   : > { %v1215_v20 = vadd.f32 %v1214_v12, %v989_v57  ;;  %v1541_v31 = vpop.f32.mrf.mxu2  ;;  %v1684_v59 = vpop.f32.mrf.mxu3 }
 0x12a   : > { %v1596_v63 = vadd.f32 %v1541_v31, %v1215_v20  ;;  %v6576_v20 = vld [vmem:[%s6694_s22 + $0x30] sm:$0xff] }
 0x12c   : > { %v1219_v38 = vpop.f32.mrf.mxu1  ;;  %v7155_v30 = vadd.f32 %v1681_v28, %v1596_v63 }
 0x12d   : > { %5442 = vmatmul.msk.bf16.gmra.mxu2 %vm885_vm3, %v6575_v51 }
 0x12f   : > { %v992_v35 = vpop.f32.mrf.mxu0 }
 0x130   : > { %v1218_v40 = vadd.f32 %v1217_v23, %v992_v35  ;;  %v1544_v5 = vpop.f32.mrf.mxu2  ;;  %v1686_v13 = vpop.f32.mrf.mxu3 }
 0x132   : > { %v1597_v6 = vadd.f32 %v1544_v5, %v1218_v40  ;;  %5393 = vmatmul.msk.bf16.gmra.mxu0 %vm885_vm3, %v6767_v4 }
 0x134   : > { %v1222_v41 = vpop.f32.mrf.mxu1  ;;  %v7161_v12 = vadd.f32 %v1684_v59, %v1597_v6 }
 0x135   : > { %5465 = vmatmul.msk.bf16.gmra.mxu3 %vm885_vm3, %v6811_v10 }
 0x137   : > { %5417 = vmatmul.msk.bf16.gmra.mxu1 %vm885_vm3, %v6784_v27  ;;  %v994_v49 = vpop.f32.mrf.mxu0 }
 0x138   : > { %v1220_v21 = vadd.f32 %v1219_v38, %v994_v49  ;;  %v1546_v22 = vpop.f32.mrf.mxu2  ;;  %v1689_v28 = vpop.f32.mrf.mxu3 }
 0x13a   : > { %v1598_v62 = vadd.f32 %v1546_v22, %v1220_v21  ;;  %v6577_v22 = vld [vmem:[%s6694_s22 + $0x3c] sm:$0xff] }
 0x13c   : > { %v1224_v23 = vpop.f32.mrf.mxu1  ;;  %v7167_v57 = vadd.f32 %v1686_v13, %v1598_v62 }
 0x13d   : > { %5443 = vmatmul.msk.bf16.gmra.mxu2 %vm885_vm3, %v6576_v20 }
 0x13f   : > { %v997_v4 = vpop.f32.mrf.mxu0 }
 0x140   : > { %v1223_v31 = vadd.f32 %v1222_v41, %v997_v4  ;;  %v1549_v59 = vpop.f32.mrf.mxu2  ;;  %v1691_v63 = vpop.f32.mrf.mxu3 }
 0x142   : > { %v1599_v51 = vadd.f32 %v1549_v59, %v1223_v31  ;;  %5394 = vmatmul.msk.bf16.gmra.mxu0 %vm885_vm3, %v6789_v36 }
 0x144   : > { %v1227_v35 = vpop.f32.mrf.mxu1  ;;  %v7173_v38 = vadd.f32 %v1689_v28, %v1599_v51 }
 0x145   : > { %5466 = vmatmul.msk.bf16.gmra.mxu3 %vm885_vm3, %v6833_v48 }
 0x147   : > { %5418 = vmatmul.msk.bf16.gmra.mxu1 %vm885_vm3, %v6806_v61  ;;  %v999_v40 = vpop.f32.mrf.mxu0 }
 0x148   : > { %v1225_v5 = vadd.f32 %v1224_v23, %v999_v40  ;;  %v1551_v13 = vpop.f32.mrf.mxu2  ;;  %v1694_v6 = vpop.f32.mrf.mxu3 }
 0x14a   : > { %v1600_v41 = vadd.f32 %v1551_v13, %v1225_v5 }
 0x14c   : > { %v1229_v49 = vpop.f32.mrf.mxu1  ;;  %v7179_v21 = vadd.f32 %v1691_v63, %v1600_v41  ;;  %v6578_v41 = vld [vmem:[%s6694_s22 + $0x48] sm:$0xff] }
 0x14d   : > { %5444 = vmatmul.msk.bf16.gmra.mxu2 %vm885_vm3, %v6577_v22 }
 0x14f   : > { %v1002_v36 = vpop.f32.mrf.mxu0 }
 0x150   : > { %v1228_v28 = vadd.f32 %v1227_v35, %v1002_v36  ;;  %v1554_v62 = vpop.f32.mrf.mxu2  ;;  %v1696_v20 = vpop.f32.mrf.mxu3 }
 0x152   : > { %v1601_v4 = vadd.f32 %v1554_v62, %v1228_v28  ;;  %5395 = vmatmul.msk.bf16.gmra.mxu0 %vm885_vm3, %v6811_v10 }
 0x154   : > { %v1232_v31 = vpop.f32.mrf.mxu1  ;;  %v7185_v23 = vadd.f32 %v1694_v6, %v1601_v4 }
 0x155   : > { %5467 = vmatmul.msk.bf16.gmra.mxu3 %vm885_vm3, %v6855_v17 }
 0x157   : > { %5419 = vmatmul.msk.bf16.gmra.mxu1 %vm885_vm3, %v6828_v33  ;;  %v1004_v59 = vpop.f32.mrf.mxu0 }
 0x158   : > { %v1230_v63 = vadd.f32 %v1229_v49, %v1004_v59  ;;  %v1556_v51 = vpop.f32.mrf.mxu2  ;;  %v1699_v35 = vpop.f32.mrf.mxu3 }
 0x15a   : > { %v1602_v40 = vadd.f32 %v1556_v51, %v1230_v63 }
 0x15c   : > { %v1234_v5 = vpop.f32.mrf.mxu1  ;;  %v7191_v13 = vadd.f32 %v1696_v20, %v1602_v40 }
 0x15d   : > { %5445 = vmatmul.msk.bf16.gmra.mxu2 %vm885_vm3, %v6578_v41  ;;  %v6579_v41 = vld [vmem:[%s6694_s22 + $0x54] sm:$0xff] }
 0x15f   : > { %v1007_v10 = vpop.f32.mrf.mxu0 }
 0x160   : > { %v1233_v6 = vadd.f32 %v1232_v31, %v1007_v10  ;;  %v1559_v22 = vpop.f32.mrf.mxu2  ;;  %v1701_v36 = vpop.f32.mrf.mxu3 }
 0x162   : > { %v1603_v28 = vadd.f32 %v1559_v22, %v1233_v6  ;;  %5396 = vmatmul.msk.bf16.gmra.mxu0 %vm885_vm3, %v6833_v48 }
 0x164   : > { %v1237_v62 = vpop.f32.mrf.mxu1  ;;  %v7197_v49 = vadd.f32 %v1699_v35, %v1603_v28 }
 0x165   : > { %5468 = vmatmul.msk.bf16.gmra.mxu3 %vm885_vm3, %v6877_v58 }
 0x167   : > { %5420 = vmatmul.msk.bf16.gmra.mxu1 %vm885_vm3, %v6850_v7  ;;  %v1009_v20 = vpop.f32.mrf.mxu0 }
 0x168   : > { %v1235_v4 = vadd.f32 %v1234_v5, %v1009_v20  ;;  %v1561_v59 = vpop.f32.mrf.mxu2  ;;  %v1704_v31 = vpop.f32.mrf.mxu3 }
 0x16a   : > { %v1604_v63 = vadd.f32 %v1561_v59, %v1235_v4 }
 0x16c   : > { %v1239_v51 = vpop.f32.mrf.mxu1  ;;  %v7203_v40 = vadd.f32 %v1701_v36, %v1604_v63 }
 0x16d   : > { %5446 = vmatmul.msk.bf16.gmra.mxu2 %vm885_vm3, %v6579_v41 }
 0x16f   : > { %v1012_v48 = vpop.f32.mrf.mxu0 }
 0x170   : > { %v1238_v35 = vadd.f32 %v1237_v62, %v1012_v48  ;;  %v1564_v10 = vpop.f32.mrf.mxu2  ;;  %v1706_v6 = vpop.f32.mrf.mxu3  ;;  %v6580_v48 = vld [vmem:[%s6694_s22 + $0x60] sm:$0xff] }
 0x172   : > { %v1605_v22 = vadd.f32 %v1564_v10, %v1238_v35  ;;  %5397 = vmatmul.msk.bf16.gmra.mxu0 %vm885_vm3, %v6855_v17 }
 0x174   : > { %v1242_v28 = vpop.f32.mrf.mxu1  ;;  %v7209_v5 = vadd.f32 %v1704_v31, %v1605_v22 }
 0x175   : > { %5469 = vmatmul.msk.bf16.gmra.mxu3 %vm885_vm3, %v6899_v44 }
 0x177   : > { %5421 = vmatmul.msk.bf16.gmra.mxu1 %vm885_vm3, %v6872_v47  ;;  %v1014_v36 = vpop.f32.mrf.mxu0 }
 0x178   : > { %v1240_v20 = vadd.f32 %v1239_v51, %v1014_v36  ;;  %v1566_v4 = vpop.f32.mrf.mxu2  ;;  %v1709_v62 = vpop.f32.mrf.mxu3 }
 0x17a   : > { %v1606_v59 = vadd.f32 %v1566_v4, %v1240_v20 }
 0x17c   : > { %v1244_v63 = vpop.f32.mrf.mxu1  ;;  %v7215_v41 = vadd.f32 %v1706_v6, %v1606_v59 }
 0x17d   : > { %5447 = vmatmul.msk.bf16.gmra.mxu2 %vm885_vm3, %v6580_v48 }
 0x17f   : > { %v1017_v17 = vpop.f32.mrf.mxu0 }
 0x180   : > { %v1243_v31 = vadd.f32 %v1242_v28, %v1017_v17  ;;  %v1569_v35 = vpop.f32.mrf.mxu2  ;;  %v1711_v10 = vpop.f32.mrf.mxu3  ;;  %v6581_v17 = vld [vmem:[%s6694_s22 + $0x6c] sm:$0xff] }
 0x182   : > { %v1607_v22 = vadd.f32 %v1569_v35, %v1243_v31  ;;  %5398 = vmatmul.msk.bf16.gmra.mxu0 %vm885_vm3, %v6877_v58 }
 0x184   : > { %v1247_v47 = vpop.f32.mrf.mxu1  ;;  %v7221_v51 = vadd.f32 %v1709_v62, %v1607_v22 }
 0x185   : > { %5470 = vmatmul.msk.bf16.gmra.mxu3 %vm885_vm3, %v6935_v50 }
 0x186   : > { %8825 = vst [vmem:[#allocation17_spill] sm:$0xff] %v7221_v51 }
 0x187   : > { %5422 = vmatmul.msk.bf16.gmra.mxu1 %vm885_vm3, %v6894_v26  ;;  %v1019_v6 = vpop.f32.mrf.mxu0 }
 0x188   : > { %v1245_v36 = vadd.f32 %v1244_v63, %v1019_v6  ;;  %v1571_v20 = vpop.f32.mrf.mxu2  ;;  %v1714_v28 = vpop.f32.mrf.mxu3 }
 0x18a   : > { %v1608_v4 = vadd.f32 %v1571_v20, %v1245_v36 }
 0x18c   : > { %v1249_v59 = vpop.f32.mrf.mxu1  ;;  %v7227_v48 = vadd.f32 %v1711_v10, %v1608_v4 }
 0x18d   : > { %5448 = vmatmul.msk.bf16.gmra.mxu2 %vm885_vm3, %v6581_v17 }
 0x18f   : > { %v1022_v58 = vpop.f32.mrf.mxu0 }
 0x190   : > { %v1248_v62 = vadd.f32 %v1247_v47, %v1022_v58  ;;  %v1574_v31 = vpop.f32.mrf.mxu2  ;;  %v1716_v35 = vpop.f32.mrf.mxu3 }
 0x192   : > { %v1609_v22 = vadd.f32 %v1574_v31, %v1248_v62  ;;  %5399 = vmatmul.msk.bf16.gmra.mxu0 %vm885_vm3, %v6899_v44 }
 0x194   : > { %v1947_v26 = vpop.f32.mrf.mxu1  ;;  %v7233_v51 = vadd.f32 %v1714_v28, %v1609_v22  ;;  %v5484_v22 = vld [vmem:[%s8784_s1 + $0x40] sm:$0xf] }
 0x195   : > { %5471 = vmatmul.msk.bf16.gmra.mxu3 %vm885_vm3, %v6965_v42 }
 0x197   : > { %5423 = vmatmul.msk.bf16.gmra.mxu1 %vm885_vm3, %v6928_v29  ;;  %v1024_v63 = vpop.f32.mrf.mxu0 }
 0x198   : > { %v1250_v10 = vadd.f32 %v1249_v59, %v1024_v63  ;;  %v1576_v6 = vpop.f32.mrf.mxu2  ;;  %v2249_v36 = vpop.f32.mrf.mxu3 }
 0x19a   : > { %v1610_v47 = vadd.f32 %v1576_v6, %v1250_v10 }
 0x19c   : > { %v1949_v20 = vpop.f32.mrf.mxu1  ;;  %v7239_v4 = vadd.f32 %v1716_v35, %v1610_v47  ;;  %v6404_v35 = vld [vmem:[%s8784_s1 + $0x40] sm:$0x30] }
 0x19d   : > { %5449 = vmatmul.msk.bf16.gmra.mxu2 %vm885_vm3, %v6908_v60  ;;  %v5485_v60 = vor.u32 %v6404_v35, %v5484_v22 }
 0x19f   : > { %v1801_v44 = vpop.f32.mrf.mxu0 }
 0x1a0   : > { %v1881_v28 = vadd.f32 %v1801_v44, %v6912_v3  ;;  %v2087_v17 = vpop.f32.mrf.mxu2  ;;  %v2251_v58 = vpop.f32.mrf.mxu3  ;;  %v2384_v3 = vsel %vm934_vm0, %v5485_v60, 0 }
 0x1a1   : > { %2393 = vmatpush.bf16.msra.mxu0 %v2384_v3 }
 0x1a2   : > { %v2027_v62 = vadd.f32 %v1947_v26, %v1881_v28  ;;  %5400 = vmatmul.msk.bf16.gmra.mxu0 %vm885_vm3, %v6935_v50 }
 0x1a4   : > { %v1952_v31 = vpop.f32.mrf.mxu1  ;;  %v2167_v59 = vadd.f32 %v2087_v17, %v2027_v62 }
 0x1a5   : > { %5472 = vmatmul.msk.bf16.gmra.mxu3 %vm885_vm3, %v6995_v15 }
 0x1a6   : > { %v7252_v63 = vadd.f32 %v2249_v36, %v2167_v59 }
 0x1a7   : > { %5424 = vmatmul.msk.bf16.gmra.mxu1 %vm885_vm3, %v6958_v32  ;;  %v1803_v26 = vpop.f32.mrf.mxu0 }
 0x1a8   : > { %v1882_v50 = vadd.f32 %v1803_v26, %v6931_v43  ;;  %v2089_v10 = vpop.f32.mrf.mxu2  ;;  %v2254_v6 = vpop.f32.mrf.mxu3 }
 0x1aa   : > { %v2028_v47 = vadd.f32 %v1949_v20, %v1882_v50 }
 0x1ac   : > { %v1954_v44 = vpop.f32.mrf.mxu1  ;;  %v2168_v28 = vadd.f32 %v2089_v10, %v2028_v47 }
 0x1ad   : > { %5450 = vmatmul.msk.bf16.gmra.mxu2 %vm885_vm3, %v6944_v2 }
 0x1ae   : > { %v7262_v36 = vadd.f32 %v2251_v58, %v2168_v28 }
 0x1af   : > { %v1806_v17 = vpop.f32.mrf.mxu0 }
 0x1b0   : > { %v1883_v62 = vadd.f32 %v1806_v17, %v6947_v1  ;;  %v2092_v59 = vpop.f32.mrf.mxu2  ;;  %v2256_v22 = vpop.f32.mrf.mxu3 }
 0x1b2   : > { %v2029_v35 = vadd.f32 %v1952_v31, %v1883_v62  ;;  %5401 = vmatmul.msk.bf16.gmra.mxu0 %vm885_vm3, %v6965_v42 }
 0x1b4   : > { %v1957_v43 = vpop.f32.mrf.mxu1  ;;  %v2169_v60 = vadd.f32 %v2092_v59, %v2029_v35 }
 0x1b5   : > { %5473 = vmatmul.msk.bf16.gmra.mxu3 %vm885_vm3, %v7025_v18 }
 0x1b6   : > { %v7267_v26 = vadd.f32 %v2254_v6, %v2169_v60 }
 0x1b7   : > { %5425 = vmatmul.msk.bf16.gmra.mxu1 %vm885_vm3, %v6988_v46  ;;  %v1808_v2 = vpop.f32.mrf.mxu0 }
 0x1b8   : > { %v1884_v20 = vadd.f32 %v1808_v2, %v6961_v52  ;;  %v2094_v1 = vpop.f32.mrf.mxu2  ;;  %v2259_v58 = vpop.f32.mrf.mxu3  ;;  %v8829_v2 = vld [vmem:[#allocation6_spill] sm:$0xff] }
 0x1ba   : > { %v2030_v3 = vadd.f32 %v1954_v44, %v1884_v20  ;;  %v8828_v44 = vld [vmem:[#allocation5_spill] sm:$0xff] }
 0x1bc   : > { %v1959_v31 = vpop.f32.mrf.mxu1  ;;  %v2170_v50 = vadd.f32 %v2094_v1, %v2030_v3 }
 0x1bd   : > { %5451 = vmatmul.msk.bf16.gmra.mxu2 %vm885_vm3, %v6974_v14 }
 0x1be   : > { %v7276_v42 = vadd.f32 %v2256_v22, %v2170_v50 }
 0x1bf   : > { %v1811_v10 = vpop.f32.mrf.mxu0 }
 0x1c0   : > { %8826 = vst [vmem:[#allocation18_spill] sm:$0xff] %v7276_v42  ;;  %v1885_v6 = vadd.f32 %v1811_v10, %v6977_v11  ;;  %v2097_v47 = vpop.f32.mrf.mxu2  ;;  %v2261_v28 = vpop.f32.mrf.mxu3 }
 0x1c2   : > { %v2031_v17 = vadd.f32 %v1957_v43, %v1885_v6  ;;  %5402 = vmatmul.msk.bf16.gmra.mxu0 %vm885_vm3, %v6995_v15 }
 0x1c4   : > { %v1962_v52 = vpop.f32.mrf.mxu1  ;;  %v2171_v62 = vadd.f32 %v2097_v47, %v2031_v17 }
 0x1c5   : > { %5474 = vmatmul.msk.bf16.gmra.mxu3 %vm885_vm3, %v7055_v25 }
 0x1c6   : > { %v7281_v59 = vadd.f32 %v2259_v58, %v2171_v62  ;;  %v8831_v58 = vld [vmem:[#allocation7_spill] sm:$0xff]  ;;  %v8833_v62 = vld [vmem:[#allocation12_spill] sm:$0xff] }
 0x1c7   : > { %5426 = vmatmul.msk.bf16.gmra.mxu1 %vm885_vm3, %v7018_v19  ;;  %v1813_v14 = vpop.f32.mrf.mxu0  ;;  %v8836_v19 = vld [vmem:[#allocation11_spill] sm:$0xff] }
 0x1c8   : > { %8827 = vst [vmem:[#allocation19_spill] sm:$0xff] %v7281_v59  ;;  %v1886_v22 = vadd.f32 %v1813_v14, %v8828_v44  ;;  %v2099_v11 = vpop.f32.mrf.mxu2  ;;  %v2264_v35 = vpop.f32.mrf.mxu3  ;;  %v7305_v14 = vld [vmem:[%s6694_s22 + $0xc4] sm:$0xf] }
 0x1ca   : > { %v2032_v60 = vadd.f32 %v1959_v31, %v1886_v22  ;;  %v8834_v22 = vld [vmem:[#allocation9_spill] sm:$0xff] }
 0x1cc   : > { %v1964_v43 = vpop.f32.mrf.mxu1  ;;  %v2172_v15 = vadd.f32 %v2099_v11, %v2032_v60 }
 0x1cd   : > { %5452 = vmatmul.msk.bf16.gmra.mxu2 %vm885_vm3, %v8829_v2  ;;  %v1765_v2 = vshrl.u32 %v7305_v14, 16 }
 0x1ce   : > { %v7290_v20 = vadd.f32 %v2261_v28, %v2172_v15  ;;  %v7302_v28 = vld [vmem:[%s6694_s22 + $0xc0] sm:$0xf]  ;;  %v1761_v15 = vshll.u32 %v7305_v14, 16 }
 0x1cf   : > { %v1816_v1 = vpop.f32.mrf.mxu0  ;;  %v1752_v60 = vshrl.u32 %v7302_v28, 16 }
 0x1d0   : > { %8830 = vst [vmem:[#allocation5_spill] sm:$0xff] %v7290_v20  ;;  %v1887_v3 = vadd.f32 %v1816_v1, %v8831_v58  ;;  %v2102_v50 = vpop.f32.mrf.mxu2  ;;  %v2266_v10 = vpop.f32.mrf.mxu3 }
 0x1d2   : > { %v2033_v6 = vadd.f32 %v1962_v52, %v1887_v3  ;;  %5403 = vmatmul.msk.bf16.gmra.mxu0 %vm885_vm3, %v7025_v18 }
 0x1d4   : > { %v1967_v47 = vpop.f32.mrf.mxu1  ;;  %v2173_v31 = vadd.f32 %v2102_v50, %v2033_v6  ;;  %v8835_v50 = vld [vmem:[#allocation10_spill] sm:$0xff]  ;;  %v1754_v6 = vrot.slane %v1752_v60, 4 }
 0x1d5   : > { %5475 = vmatmul.msk.bf16.gmra.mxu3 %vm885_vm3, %v7098_v9 }
 0x1d6   : > { %v7295_v17 = vadd.f32 %v2264_v35, %v2173_v31  ;;  %v1755_v35 = vshll.u32 %v7302_v28, 16 }
 0x1d7   : > { %5427 = vmatmul.msk.bf16.gmra.mxu1 %vm885_vm3, %v8833_v62  ;;  %v1818_v44 = vpop.f32.mrf.mxu0 }
 0x1d8   : > { %8832 = vst [vmem:[#allocation6_spill] sm:$0xff] %v7295_v17  ;;  %v1888_v52 = vadd.f32 %v1818_v44, %v8834_v22  ;;  %v2104_v11 = vpop.f32.mrf.mxu2  ;;  %v2269_v18 = vpop.f32.mrf.mxu3  ;;  %v1757_v31 = vrot.slane %v1755_v35, 5  ;;  %v1763_v44 = vrot.slane %v1761_v15, 5  ;;  %v1767_v22 = vrot.slane %v1765_v2, 4  ;;  %v7319_v17 = vld [vmem:[%s6694_s22 + $0xc8] sm:$0x1] }
 0x1da   : > { %v2034_v1 = vadd.f32 %v1964_v43, %v1888_v52  ;;  %v1758_v52 = vor.u32 %v1757_v31, %v1754_v6  ;;  %v7336_v6 = vld [vmem:[%s6694_s22 + $0xcc] sm:$0xf] }
 0x1db   : > { %8840 = vst [vmem:[#allocation10_spill] sm:$0xff] %v7336_v6 }
 0x1dc   : > { %v7312_v58 = vpop.f32.mrf.mxu1  ;;  %v2174_v3 = vadd.f32 %v2104_v11, %v2034_v1  ;;  %v1768_v11 = vor.u32 %v1767_v22, %v1763_v44  ;;  %v1771_v1 = vshll.u32 %v7319_v17, 16  ;;  %v1759_v15 = vrot.slane %v1758_v52, 4 }
 0x1dd   : > { %5453 = vmatmul.msk.bf16.gmra.mxu2 %vm885_vm3, %v8835_v50  ;;  %v2200_v52 = vshrl.u32 %v7336_v6, 16 }
 0x1de   : > { %v7316_v62 = vadd.f32 %v2266_v10, %v2174_v3  ;;  %v1769_v2 = vrot.slane %v1768_v11, 4  ;;  %v1773_v3 = vrot.slane %v1771_v1, 5  ;;  %v2203_v11 = vshll.u32 %v7336_v6, 16 }
 0x1df   : > { %v1821_v20 = vpop.f32.mrf.mxu0 }
 0x1e0   : > { %v1889_v59 = vadd.f32 %v1821_v20, %v8836_v19  ;;  %v2107_v42 = vpop.f32.mrf.mxu2  ;;  %v7322_v43 = vpop.f32.mrf.mxu3  ;;  %v8839_v20 = vld [vmem:[#allocation15_spill] sm:$0xff]  ;;  %v1774_v22 = vsel %vm6716_vm7, %v1769_v2, %v1773_v3 }
 0x1e1   : > { %8837 = vst [vmem:[#allocation7_spill] sm:$0xff] %v7322_v43 }
 0x1e2   : > { %v2035_v60 = vadd.f32 %v1967_v47, %v1889_v59  ;;  %5404 = vmatmul.msk.bf16.gmra.mxu0 %vm885_vm3, %v7055_v25  ;;  %v7339_v59 = vld [vmem:[%s6694_s22 + $0xd0] sm:$0xf] }
 0x1e3   : > { %8841 = vst [vmem:[#allocation11_spill] sm:$0xff] %v7339_v59  ;;  %v8842_v25 = vld [vmem:[#allocation13_spill] sm:$0xff]  ;;  %v2209_v1 = vshll.u32 %v7339_v59, 16 }
 0x1e4   : > { %v7327_v10 = vpop.f32.mrf.mxu1  ;;  %v2175_v35 = vadd.f32 %v2107_v42, %v2035_v60  ;;  %v2213_v60 = vshrl.u32 %v7339_v59, 16 }
 0x1e5   : > { %8838 = vst [vmem:[#allocation9_spill] sm:$0xff] %v7327_v10  ;;  %5476 = vmatmul.msk.bf16.gmra.mxu3 %vm885_vm3, %v7133_v54  ;;  %v8844_v10 = vld [vmem:[#allocation14_spill] sm:$0xff] }
 0x1e6   : > { %v7329_v19 = vadd.f32 %v2269_v18, %v2175_v35  ;;  %v1764_v18 = vsel %vm6716_vm7, %v1759_v15, %v1763_v44  ;;  %v2202_v44 = vrot.slane %v2200_v52, 4  ;;  %v2205_v15 = vrot.slane %v2203_v11, 5 }
 0x1e7   : > { %5428 = vmatmul.msk.bf16.gmra.mxu1 %vm885_vm3, %v8839_v20  ;;  %v1823_v50 = vpop.f32.mrf.mxu0  ;;  %v2215_v2 = vrot.slane %v2213_v60, 4  ;;  %v7366_v20 = vld [vmem:[%s6694_s22 + $0xd4] sm:$0x1] }
 0x1e8   : > { %v7342_v47 = vadd.f32 %v1823_v50, %v8842_v25  ;;  %v7344_v42 = vpop.f32.mrf.mxu2  ;;  %v7346_v31 = vpop.f32.mrf.mxu3  ;;  %v1778_v50 = vunpack.c.l.b16 %v1764_v18  ;;  %v1779_v25 = vunpack.c.l.b16 %v1774_v22  ;;  %8845 = vst [vmem:[#allocation14_spill] sm:$0xff] %v7366_v20  ;;  %v2206_v18 = vor.u32 %v2205_v15, %v2202_v44  ;;  %v8847_v44 = vld [vmem:[#allocation16_spill] sm:$0xff] }
 0x1e9   : > { %8843 = vst [vmem:[#allocation13_spill] sm:$0xff] %v7346_v31  ;;  %v2211_v31 = vrot.slane %v2209_v1, 5  ;;  %v2219_v11 = vshll.u32 %v7366_v20, 16  ;;  %v1916_v1 = vrot.slane %v7305_v14, 5 }
 0x1eb   : > { %v2216_v22 = vor.u32 %v2215_v2, %v2211_v31 }
 0x1ec   : > { %v7356_v35 = vpop.f32.mrf.mxu1 }
 0x1ed   : > { %5454 = vmatmul.msk.bf16.gmra.mxu2 %vm885_vm3, %v7064_v55  ;;  %v1780_v55 = vpack.c.b16 %v1779_v25, %v1778_v50  ;;  %v2217_v60 = vrot.slane %v2216_v22, 4  ;;  %v1918_v50 = vrot.slane %v1916_v1, 4  ;;  %v1919_v25 = vrot.slane %v7319_v17, 5 }
 0x1ef   : > { %v1826_v3 = vpop.f32.mrf.mxu0  ;;  %v1920_v17 = vsel %vm6697_vm4, %v1918_v50, %v1919_v25 }
 0x1f0   : > { %v7361_v43 = vadd.f32 %v1826_v3, %v8844_v10  ;;  %v7363_v6 = vpop.f32.mrf.mxu2  ;;  %v7368_v59 = vpop.f32.mrf.mxu3  ;;  %v2207_v10 = vrot.slane %v2206_v18, 4 }
 0x1f1   : > { %8846 = vst [vmem:[#allocation20_spill] sm:$0xff] %v7368_v59  ;;  %v2221_v59 = vrot.slane %v2219_v11, 5 }
 0x1f2   : > { %5405 = vmatmul.msk.bf16.gmra.mxu0 %vm885_vm3, %v7098_v9  ;;  %v5408_v9 = vrot.slane %v7302_v28, 9  ;;  %v2212_v18 = vsel %vm6716_vm7, %v2207_v10, %v2211_v31 }
 0x1f3   : > { %v2222_v22 = vsel %vm6716_vm7, %v2217_v60, %v2221_v59  ;;  %v2226_v11 = vunpack.c.l.b16 %v2212_v18 }
 0x1f4   : > { %v7372_v52 = vpop.f32.mrf.mxu1  ;;  %v1917_v28 = vsel %vm6697_vm4, %v5408_v9, %v1916_v1  ;;  %v6395_v9 = vld [vmem:[%s6694_s22 + $0xcc] sm:$0xff] }
 0x1f5   : > { %5477 = vmatmul.msk.bf16.gmra.mxu3 %vm885_vm3, %v1780_v55 }
 0x1f7   : > { %5429 = vmatmul.msk.bf16.gmra.mxu1 %vm885_vm3, %v7127_v53  ;;  %v1828_v3 = vpop.f32.mrf.mxu0 }
 0x1f8   : > { %v7382_v15 = vadd.f32 %v1828_v3, %v8847_v44  ;;  %v7384_v2 = vpop.f32.mrf.mxu2  ;;  %v7386_v14 = vpop.f32.mrf.mxu3  ;;  %v2227_v3 = vunpack.c.l.b16 %v2222_v22  ;;  %v1924_v44 = vunpack.c.l.b16 %v1917_v28 }
 0x1f9   : > { %8848 = vst [vmem:[#allocation16_spill] sm:$0xff] %v7386_v14  ;;  %v1925_v14 = vunpack.c.l.b16 %v1920_v17 }
 0x1fa   : > { %v2228_v1 = vpack.c.b16 %v2227_v3, %v2226_v11 }
 0x1fb   : > { %v7409_v10 = vpack.c.b16 %v1925_v14, %v1924_v44 }
 0x1fc   : > { %v7388_v20 = vpop.f32.mrf.mxu1 }
 0x1fd   : > { %8849 = vst [vmem:[#allocation21_spill] sm:$0xff] %v7388_v20  ;;  %5455 = vmatmul.msk.bf16.gmra.mxu2 %vm885_vm3, %v7115_v37 }
 0x1ff   : > { %v1831_v20 = vpop.f32.mrf.mxu0 }
 0x200   : > { %v7401_v31 = vadd.f32 %v1831_v20, %v7117_v0  ;;  %v7403_v45 = vpop.f32.mrf.mxu2  ;;  %v7405_v59 = vpop.f32.mrf.mxu3 }
 0x202   : > { %5406 = vmatmul.msk.bf16.gmra.mxu0 %vm885_vm3, %v7133_v54 }
 0x204   : > { %v7411_v37 = vpop.f32.mrf.mxu1 }
 0x205   : > { %5478 = vmatmul.msk.bf16.gmra.mxu3 %vm885_vm3, %v2228_v1 }
 0x207   : > { %5430 = vmatmul.msk.bf16.gmra.mxu1 %vm885_vm3, %v7409_v10  ;;  %v1833_v60 = vpop.f32.mrf.mxu0 }
 0x208   : > { %v7417_v0 = vadd.f32 %v1833_v60, %v7129_v24  ;;  %v7419_v20 = vpop.f32.mrf.mxu2  ;;  %v7422_v50 = vpop.f32.mrf.mxu3 }
 0x209   : > { %8850 = vst [vmem:[#allocation22_spill] sm:$0xff] %v7422_v50 }
 0x20c   : > { %v7424_v54 = vpop.f32.mrf.mxu1 }
 0x20d   : > { %8851 = vst [vmem:[#allocation23_spill] sm:$0xff] %v7424_v54  ;;  %5456 = vmatmul.msk.bf16.gmra.mxu2 %vm885_vm3, %v6395_v9 }
 0x20f   : > { %v1836_v25 = vpop.f32.mrf.mxu0 }
 0x210   : > { %v7428_v14 = vadd.f32 %v1836_v25, %v7137_v39  ;;  %v7430_v18 = vpop.f32.mrf.mxu2  ;;  %v7432_v22 = vpop.f32.mrf.mxu3 }
 0x211   : > { %8852 = vst [vmem:[#allocation24_spill] sm:$0xff] %v7432_v22 }
 0x212   : > { %5407 = vmatmul.msk.bf16.gmra.mxu0 %vm885_vm3, %v1780_v55 }
 0x214   : > { %v1987_v24 = vpop.f32.mrf.mxu1 }
 0x217   : > { %v1838_v28 = vpop.f32.mrf.mxu0 }
 0x218   : > { %v7436_v17 = vadd.f32 %v1838_v28, %v7143_v34  ;;  %v7438_v11 = vpop.f32.mrf.mxu2  ;;  %v2289_v3 = vpop.f32.mrf.mxu3 }
 0x219   : > { %8853 = vst [vmem:[#allocation25_spill] sm:$0xff] %v7438_v11 }
 0x21c   : > { %v7440_v44 = vpop.f32.mrf.mxu1 }
 0x21d   : > { %8854 = vst [vmem:[#allocation26_spill] sm:$0xff] %v7440_v44 }
 0x21f   : > { %v1841_v1 = vpop.f32.mrf.mxu0 }
 0x220   : > { %v1897_v39 = vadd.f32 %v1841_v1, %v7149_v8  ;;  %v2127_v60 = vpop.f32.mrf.mxu2  ;;  %v7443_v9 = vpop.f32.mrf.mxu3 }
 0x221   : > { %8855 = vst [vmem:[#allocation27_spill] sm:$0xff] %v7443_v9 }
 0x222   : > { %v2043_v25 = vadd.f32 %v1987_v24, %v1897_v39  ;;  %5486 = vmatmul.msk.bf16.vlgmr.msra.gmra.mxu0 %vm885_vm3, %v6762_v56 }
 0x224   : > { %v1992_v55 = vpop.f32.mrf.mxu1  ;;  %v2183_v22 = vadd.f32 %v2127_v60, %v2043_v25 }
 0x226   : > { %v7447_v50 = vadd.f32 %v2289_v3, %v2183_v22 }
 0x227   : > { %v1843_v34 = vpop.f32.mrf.mxu0 }
 0x228   : > { %v7450_v28 = vadd.f32 %v1843_v34, %v7155_v30  ;;  %v7452_v11 = vpop.f32.mrf.mxu2  ;;  %v2294_v44 = vpop.f32.mrf.mxu3 }
 0x22c   : > { %v7454_v54 = vpop.f32.mrf.mxu1 }
 0x22d   : > { %8856 = vst [vmem:[#allocation28_spill] sm:$0xff] %v7454_v54 }
 0x22f   : > { %v1846_v8 = vpop.f32.mrf.mxu0 }
 0x230   : > { %v1899_v1 = vadd.f32 %v1846_v8, %v7161_v12  ;;  %v2132_v24 = vpop.f32.mrf.mxu2  ;;  %v7457_v39 = vpop.f32.mrf.mxu3 }
 0x231   : > { %8857 = vst [vmem:[#allocation29_spill] sm:$0xff] %v7457_v39 }
 0x232   : > { %v2045_v56 = vadd.f32 %v1992_v55, %v1899_v1  ;;  %5487 = vmatmul.msk.bf16.gmra.mxu0 %vm885_vm3, %v6784_v27 }
 0x234   : > { %v2185_v22 = vadd.f32 %v2132_v24, %v2045_v56  ;;  %v1997_v60 = vpop.f32.mrf.mxu1 }
 0x236   : > { %v7461_v3 = vadd.f32 %v2294_v44, %v2185_v22 }
 0x237   : > { %v1848_v30 = vpop.f32.mrf.mxu0 }
 0x238   : > { %v7464_v25 = vadd.f32 %v1848_v30, %v7167_v57  ;;  %v7466_v34 = vpop.f32.mrf.mxu2  ;;  %v2299_v54 = vpop.f32.mrf.mxu3 }
 0x23c   : > { %v7469_v39 = vpop.f32.mrf.mxu1 }
 0x23f   : > { %v1851_v9 = vpop.f32.mrf.mxu0 }
 0x240   : > { %v1901_v12 = vadd.f32 %v1851_v9, %v7173_v38  ;;  %v2137_v8 = vpop.f32.mrf.mxu2  ;;  %v7473_v44 = vpop.f32.mrf.mxu3 }
 0x241   : > { %8858 = vst [vmem:[#allocation30_spill] sm:$0xff] %v7473_v44 }
 0x242   : > { %v2047_v55 = vadd.f32 %v1997_v60, %v1901_v12  ;;  %5488 = vmatmul.msk.bf16.gmra.mxu0 %vm885_vm3, %v6806_v61 }
 0x244   : > { %v2187_v27 = vadd.f32 %v2137_v8, %v2047_v55  ;;  %v2002_v22 = vpop.f32.mrf.mxu1 }
 0x246   : > { %v7475_v1 = vadd.f32 %v2299_v54, %v2187_v27 }
 0x247   : > { %v1853_v57 = vpop.f32.mrf.mxu0 }
 0x248   : > { %v7478_v24 = vadd.f32 %v1853_v57, %v7179_v21  ;;  %v7480_v56 = vpop.f32.mrf.mxu2  ;;  %v2304_v9 = vpop.f32.mrf.mxu3 }
 0x24c   : > { %v7485_v8 = vpop.f32.mrf.mxu1 }
 0x24f   : > { %v1856_v38 = vpop.f32.mrf.mxu0 }
 0x250   : > { %v1903_v30 = vadd.f32 %v1856_v38, %v7185_v23  ;;  %v2142_v60 = vpop.f32.mrf.mxu2  ;;  %v7494_v57 = vpop.f32.mrf.mxu3 }
 0x251   : > { %8859 = vst [vmem:[#allocation31_spill] sm:$0xff] %v7494_v57  ;;  %v8860_v57 = vld [vmem:[#allocation3_spill] sm:$0xff] }
 0x252   : > { %v2049_v12 = vadd.f32 %v2002_v22, %v1903_v30  ;;  %5489 = vmatmul.msk.bf16.gmra.mxu0 %vm885_vm3, %v6828_v33 }
 0x254   : > { %v2189_v61 = vadd.f32 %v2142_v60, %v2049_v12  ;;  %v2007_v23 = vpop.f32.mrf.mxu1 }
 0x256   : > { %v7487_v54 = vadd.f32 %v2304_v9, %v2189_v61 }
 0x257   : > { %v1858_v55 = vpop.f32.mrf.mxu0 }
 0x258   : > { %v7490_v21 = vadd.f32 %v1858_v55, %v7191_v13  ;;  %v7492_v27 = vpop.f32.mrf.mxu2  ;;  %v2309_v33 = vpop.f32.mrf.mxu3 }
 0x25f   : > { %v1861_v44 = vpop.f32.mrf.mxu0 }
 0x260   : > { %v1905_v22 = vadd.f32 %v1861_v44, %v7197_v49  ;;  %v2147_v38 = vpop.f32.mrf.mxu2 }
 0x262   : > { %v2051_v30 = vadd.f32 %v2007_v23, %v1905_v22  ;;  %5490 = vmatmul.msk.bf16.gmra.mxu0 %vm885_vm3, %v6850_v7  ;;  %v8861_v23 = vld [vmem:[#allocation17_spill] sm:$0xff] }
 0x264   : > { %v2191_v9 = vadd.f32 %v2147_v38, %v2051_v30  ;;  %v8862_v38 = vld [vmem:[#allocation4_spill] sm:$0xff] }
 0x266   : > { %v7499_v60 = vadd.f32 %v2309_v33, %v2191_v9 }
 0x267   : > { %v1863_v12 = vpop.f32.mrf.mxu0 }
 0x268   : > { %v7502_v13 = vadd.f32 %v1863_v12, %v7203_v40 }
 0x26f   : > { %v1866_v61 = vpop.f32.mrf.mxu0 }
 0x270   : > { %v7505_v55 = vadd.f32 %v1866_v61, %v7209_v5  ;;  %v7532_v61 = vld [vmem:[%s8785_s2] ss:$0 sm:$0xff] }
 0x272   : > { %5491 = vmatmul.msk.bf16.gmra.mxu0 %vm885_vm3, %v8860_v57 }
 0x277   : > { %v1868_v49 = vpop.f32.mrf.mxu0 }
 0x278   : > { %v7510_v44 = vadd.f32 %v1868_v49, %v7215_v41 }
 0x27f   : > { %v1871_v7 = vpop.f32.mrf.mxu0 }
 0x280   : > { %v7513_v22 = vadd.f32 %v1871_v7, %v8861_v23 }
 0x282   : > { %5492 = vmatmul.msk.bf16.gmra.mxu0 %vm885_vm3, %v8862_v38 }
 0x287   : > { %v1873_v40 = vpop.f32.mrf.mxu0 }
 0x288   : > { %v7518_v30 = vadd.f32 %v1873_v40, %v7227_v48 }
 0x28f   : > { %v1876_v5 = vpop.f32.mrf.mxu0 }
 0x290   : > { %v7521_v33 = vadd.f32 %v1876_v5, %v7233_v51 }
 0x292   : > { %5493 = vmatmul.msk.bf16.gmra.mxu0 %vm885_vm3, %v6928_v29 }
 0x297   : > { %v1878_v41 = vpop.f32.mrf.mxu0 }
 0x298   : > { %v7526_v57 = vadd.f32 %v1878_v41, %v7239_v4 }
 0x29a   : > { %8863 = vst [vmem:[#allocation3_spill] sm:$0xff] %v7526_v57  ;;  %v8872_v57 = vld [vmem:[#allocation9_spill] sm:$0xff] }
 0x29f   : > { %v2395_v9 = vpop.f32.mrf.mxu0 }
 0x2a0   : > { %v2475_v12 = vadd.f32 %v2395_v9, %v7252_v63 }
 0x2a2   : > { %5494 = vmatmul.msk.bf16.gmra.mxu0 %vm885_vm3, %v6958_v32  ;;  %v2511_v51 = vadd.f32 %v7532_v61, %v2475_v12 }
 0x2a4   : > { %v2575_v49 = vmul.f32 0.2, %v2511_v51  ;;  %vm2543_vm8 = vcmp.ge.f32.partialorder %v2511_v51, 0.0 }
 0x2a6   : > { %v2607_v63 = vsel %vm2543_vm8, %v2511_v51, %v2575_v49 }
 0x2a7   : > { %v2397_v48 = vpop.f32.mrf.mxu0 }
 0x2a8   : > { %v2476_v29 = vadd.f32 %v2397_v48, %v7262_v36  ;;  %v8864_v36 = vld [vmem:[#allocation18_spill] sm:$0xff] }
 0x2aa   : > { %v2512_v4 = vadd.f32 %v7532_v61, %v2476_v29 }
 0x2ac   : > { %vm2544_vm9 = vcmp.ge.f32.partialorder %v2512_v4, 0.0  ;;  %v2576_v7 = vmul.f32 0.2, %v2512_v4 }
 0x2ae   : > { %v2608_v23 = vsel %vm2544_vm9, %v2512_v4, %v2576_v7 }
 0x2af   : > { %v7539_v38 = vpack.c.bf16 %v2608_v23, %v2607_v63  ;;  %v2400_v40 = vpop.f32.mrf.mxu0  ;;  %v8866_v23 = vld [vmem:[#allocation8_spill] sm:$0xff] }
 0x2b0   : > { %v2477_v5 = vadd.f32 %v2400_v40, %v7267_v26  ;;  %v8865_v26 = vld [vmem:[#allocation19_spill] sm:$0xff] }
 0x2b2   : > { %5495 = vmatmul.msk.bf16.gmra.mxu0 %vm885_vm3, %v6988_v46  ;;  %v2513_v32 = vadd.f32 %v7532_v61, %v2477_v5  ;;  %v8867_v5 = vld [vmem:[#allocation5_spill] sm:$0xff] }
 0x2b4   : > { %v2577_v12 = vmul.f32 0.2, %v2513_v32  ;;  %vm2545_vm10 = vcmp.ge.f32.partialorder %v2513_v32, 0.0 }
 0x2b6   : > { %v2609_v29 = vsel %vm2545_vm10, %v2513_v32, %v2577_v12 }
 0x2b7   : > { %v2402_v41 = vpop.f32.mrf.mxu0 }
 0x2b8   : > { %v2478_v9 = vadd.f32 %v2402_v41, %v8864_v36 }
 0x2ba   : > { %v2514_v48 = vadd.f32 %v7532_v61, %v2478_v9 }
 0x2bc   : > { %vm2546_vm11 = vcmp.ge.f32.partialorder %v2514_v48, 0.0  ;;  %v2578_v51 = vmul.f32 0.2, %v2514_v48 }
 0x2be   : > { %v2610_v49 = vsel %vm2546_vm11, %v2514_v48, %v2578_v51 }
 0x2bf   : > { %v7547_v4 = vpack.c.bf16 %v2610_v49, %v2609_v29  ;;  %v2405_v7 = vpop.f32.mrf.mxu0  ;;  %v8868_v49 = vld [vmem:[#allocation6_spill] sm:$0xff] }
 0x2c0   : > { %v2479_v63 = vadd.f32 %v2405_v7, %v8865_v26  ;;  %v8869_v26 = vld [vmem:[#allocation12_spill] sm:$0xff] }
 0x2c2   : > { %5496 = vmatmul.msk.bf16.gmra.mxu0 %vm885_vm3, %v8866_v23  ;;  %v2515_v46 = vadd.f32 %v7532_v61, %v2479_v63 }
 0x2c4   : > { %v2579_v36 = vmul.f32 0.2, %v2515_v46  ;;  %vm2547_vm12 = vcmp.ge.f32.partialorder %v2515_v46, 0.0 }
 0x2c6   : > { %v2611_v12 = vsel %vm2547_vm12, %v2515_v46, %v2579_v36  ;;  %v2036_v36 = vadd.f32 %v7312_v58, %v7342_v47  ;;  %v2037_v58 = vadd.f32 %v8872_v57, %v7361_v43 }
 0x2c7   : > { %v2407_v40 = vpop.f32.mrf.mxu0 }
 0x2c8   : > { %v2480_v41 = vadd.f32 %v2407_v40, %v8867_v5 }
 0x2ca   : > { %v2516_v9 = vadd.f32 %v7532_v61, %v2480_v41 }
 0x2cc   : > { %vm2548_vm13 = vcmp.ge.f32.partialorder %v2516_v9, 0.0  ;;  %v2580_v32 = vmul.f32 0.2, %v2516_v9 }
 0x2ce   : > { %v2612_v48 = vsel %vm2548_vm13, %v2516_v9, %v2580_v32 }
 0x2cf   : > { %v7555_v51 = vpack.c.bf16 %v2612_v48, %v2611_v12  ;;  %v2410_v29 = vpop.f32.mrf.mxu0 }
 0x2d0   : > { %v2481_v7 = vadd.f32 %v2410_v29, %v8868_v49  ;;  %v2176_v49 = vadd.f32 %v7344_v42, %v2036_v36 }
 0x2d2   : > { %5497 = vmatmul.msk.bf16.gmra.mxu0 %vm885_vm3, %v8869_v26  ;;  %v2517_v63 = vadd.f32 %v7532_v61, %v2481_v7  ;;  %v8870_v7 = vld [vmem:[#allocation15_spill] sm:$0xff] }
 0x2d4   : > { %v2581_v5 = vmul.f32 0.2, %v2517_v63  ;;  %vm2549_vm14 = vcmp.ge.f32.partialorder %v2517_v63, 0.0 }
 0x2d6   : > { %v2613_v9 = vsel %vm2549_vm14, %v2517_v63, %v2581_v5 }
 0x2d7   : > { %v2412_v23 = vpop.f32.mrf.mxu0 }
 0x2d8   : > { %v2482_v40 = vadd.f32 %v2412_v23, %v7316_v62  ;;  %v8871_v62 = vld [vmem:[#allocation7_spill] sm:$0xff] }
 0x2d9   : > { %v2338_v26 = vadd.f32 %v8871_v62, %v2176_v49  ;;  %v8874_v49 = vld [vmem:[#allocation20_spill] sm:$0xff] }
 0x2da   : > { %v2518_v41 = vadd.f32 %v7532_v61, %v2482_v40 }
 0x2dc   : > { %vm2550_vm15 = vcmp.ge.f32.partialorder %v2518_v41, 0.0  ;;  %v2582_v46 = vmul.f32 0.2, %v2518_v41 }
 0x2de   : > { %v2614_v32 = vsel %vm2550_vm15, %v2518_v41, %v2582_v46  ;;  %v2038_v41 = vadd.f32 %v7356_v35, %v7382_v15  ;;  %v2039_v35 = vadd.f32 %v7372_v52, %v7401_v31  ;;  %v8877_v52 = vld [vmem:[#allocation16_spill] sm:$0xff] }
 0x2df   : > { %v7565_v12 = vpack.c.bf16 %v2614_v32, %v2613_v9  ;;  %v2415_v48 = vpop.f32.mrf.mxu0 }
 0x2e0   : > { %v2483_v29 = vadd.f32 %v2415_v48, %v7329_v19  ;;  %v2177_v19 = vadd.f32 %v7363_v6, %v2037_v58  ;;  %v8873_v48 = vld [vmem:[#allocation13_spill] sm:$0xff]  ;;  %v2178_v43 = vadd.f32 %v7384_v2, %v2038_v41 }
 0x2e1   : > { %v8875_v58 = vld [vmem:[#allocation21_spill] sm:$0xff] }
 0x2e2   : > { %5498 = vmatmul.msk.bf16.gmra.mxu0 %vm885_vm3, %v8870_v7  ;;  %v2519_v23 = vadd.f32 %v7532_v61, %v2483_v29  ;;  %v2339_v29 = vadd.f32 %v8873_v48, %v2177_v19  ;;  %v2340_v6 = vadd.f32 %v8874_v49, %v2178_v43 }
 0x2e4   : > { %v2583_v63 = vmul.f32 0.2, %v2519_v23  ;;  %vm2551_vm0 = vcmp.ge.f32.partialorder %v2519_v23, 0.0 }
 0x2e6   : > { %v2615_v46 = vsel %vm2551_vm0, %v2519_v23, %v2583_v63 }
 0x2e7   : > { %v2417_v40 = vpop.f32.mrf.mxu0 }
 0x2e8   : > { %v2484_v47 = vadd.f32 %v2417_v40, %v2338_v26  ;;  %v2179_v40 = vadd.f32 %v7403_v45, %v2039_v35  ;;  %v8878_v45 = vld [vmem:[#allocation10_spill] sm:$0xff] }
 0x2ea   : > { %v2520_v5 = vadd.f32 %v7532_v61, %v2484_v47  ;;  %v2341_v31 = vadd.f32 %v8877_v52, %v2179_v40  ;;  %v8880_v40 = vld [vmem:[#allocation23_spill] sm:$0xff]  ;;  %v8883_v52 = vld [vmem:[#allocation24_spill] sm:$0xff] }
 0x2ec   : > { %vm2552_vm1 = vcmp.ge.f32.partialorder %v2520_v5, 0.0  ;;  %v2584_v42 = vmul.f32 0.2, %v2520_v5 }
 0x2ee   : > { %v2616_v36 = vsel %vm2552_vm1, %v2520_v5, %v2584_v42  ;;  %v8876_v42 = vld [vmem:[#allocation11_spill] sm:$0xff] }
 0x2ef   : > { %v7579_v9 = vpack.c.bf16 %v2616_v36, %v2615_v46  ;;  %v2420_v32 = vpop.f32.mrf.mxu0  ;;  %v2364_v41 = vrot.slane %v8876_v42, 5 }
 0x2f0   : > { %v2485_v57 = vadd.f32 %v2420_v32, %v2339_v29  ;;  %v5479_v32 = vrot.slane %v8878_v45, 9  ;;  %v8879_v29 = vld [vmem:[#allocation14_spill] sm:$0xff] }
 0x2f1   : > { %v2366_v48 = vrot.slane %v2364_v41, 4 }
 0x2f2   : > { %5499 = vmatmul.msk.bf16.gmra.mxu0 %vm885_vm3, %v7127_v53  ;;  %v2521_v7 = vadd.f32 %v7532_v61, %v2485_v57  ;;  %v2040_v53 = vadd.f32 %v8875_v58, %v7417_v0  ;;  %v2367_v0 = vrot.slane %v8879_v29, 5 }
 0x2f4   : > { %v2585_v26 = vmul.f32 0.2, %v2521_v7  ;;  %vm2553_vm2 = vcmp.ge.f32.partialorder %v2521_v7, 0.0  ;;  %v2180_v46 = vadd.f32 %v7419_v20, %v2040_v53  ;;  %v2368_v20 = vsel %vm6697_vm4, %v2366_v48, %v2367_v0  ;;  %v8884_v48 = vld [vmem:[#allocation26_spill] sm:$0xff] }
 0x2f5   : > { %v2044_v29 = vadd.f32 %v8884_v48, %v7450_v28  ;;  %v8885_v28 = vld [vmem:[#allocation27_spill] sm:$0xff] }
 0x2f6   : > { %v2617_v47 = vsel %vm2553_vm2, %v2521_v7, %v2585_v26  ;;  %v2342_v43 = vadd.f32 %v7405_v59, %v2180_v46  ;;  %v2041_v7 = vadd.f32 %v7411_v37, %v7428_v14  ;;  %v2373_v26 = vunpack.c.l.b16 %v2368_v20  ;;  %v8881_v14 = vld [vmem:[#allocation22_spill] sm:$0xff] }
 0x2f7   : > { %v2422_v62 = vpop.f32.mrf.mxu0  ;;  %v2184_v20 = vadd.f32 %v7452_v11, %v2044_v29 }
 0x2f8   : > { %v2486_v15 = vadd.f32 %v2422_v62, %v2340_v6  ;;  %v2365_v6 = vsel %vm6697_vm4, %v5479_v32, %v2364_v41  ;;  %v2181_v59 = vadd.f32 %v7430_v18, %v2041_v7 }
 0x2f9   : > { %v2346_v7 = vadd.f32 %v8885_v28, %v2184_v20 }
 0x2fa   : > { %v2522_v23 = vadd.f32 %v7532_v61, %v2486_v15  ;;  %v2372_v15 = vunpack.c.l.b16 %v2365_v6 }
 0x2fc   : > { %vm2554_vm5 = vcmp.ge.f32.partialorder %v2522_v23, 0.0  ;;  %v2586_v2 = vmul.f32 0.2, %v2522_v23  ;;  %v2374_v53 = vpack.c.b16 %v2373_v26, %v2372_v15  ;;  %v8886_v26 = vld [vmem:[#allocation28_spill] sm:$0xff] }
 0x2fe   : > { %v2618_v63 = vsel %vm2554_vm5, %v2522_v23, %v2586_v2  ;;  %v2042_v2 = vadd.f32 %v8880_v40, %v7436_v17 }
 0x2ff   : > { %v7593_v5 = vpack.c.bf16 %v2618_v63, %v2617_v47  ;;  %v2425_v19 = vpop.f32.mrf.mxu0  ;;  %v2343_v63 = vadd.f32 %v8881_v14, %v2181_v59  ;;  %v2046_v59 = vadd.f32 %v8886_v26, %v7464_v25  ;;  %v8887_v25 = vld [vmem:[#allocation29_spill] sm:$0xff] }
 0x300   : > { %v2487_v36 = vadd.f32 %v2425_v19, %v2341_v31  ;;  %v8882_v19 = vld [vmem:[#allocation25_spill] sm:$0xff] }
 0x301   : > { %v2182_v42 = vadd.f32 %v8882_v19, %v2042_v2 }
 0x302   : > { %5500 = vmatmul.msk.bf16.gmra.mxu0 %vm885_vm3, %v7409_v10  ;;  %v2523_v57 = vadd.f32 %v7532_v61, %v2487_v36 }
 0x303   : > { %v2344_v18 = vadd.f32 %v8883_v52, %v2182_v42 }
 0x304   : > { %v2587_v62 = vmul.f32 0.2, %v2523_v57  ;;  %vm2555_vm6 = vcmp.ge.f32.partialorder %v2523_v57, 0.0 }
 0x306   : > { %v2619_v58 = vsel %vm2555_vm6, %v2523_v57, %v2587_v62 }
 0x307   : > { %v2427_v49 = vpop.f32.mrf.mxu0 }
 0x308   : > { %v2488_v10 = vadd.f32 %v2427_v49, %v2342_v43 }
 0x30a   : > { %v2524_v35 = vadd.f32 %v7532_v61, %v2488_v10 }
 0x30c   : > { %vm2556_vm7 = vcmp.ge.f32.partialorder %v2524_v35, 0.0  ;;  %v2588_v23 = vmul.f32 0.2, %v2524_v35 }
 0x30e   : > { %v2620_v16 = vsel %vm2556_vm7, %v2524_v35, %v2588_v23 }
 0x30f   : > { %v7614_v47 = vpack.c.bf16 %v2620_v16, %v2619_v58  ;;  %v2430_v37 = vpop.f32.mrf.mxu0 }
 0x310   : > { %v2489_v41 = vadd.f32 %v2430_v37, %v2343_v63 }
 0x312   : > { %5501 = vmatmul.msk.bf16.gmra.mxu0 %vm885_vm3, %v2374_v53  ;;  %v2525_v31 = vadd.f32 %v7532_v61, %v2489_v41  ;;  %v2186_v53 = vadd.f32 %v7466_v34, %v2046_v59  ;;  %v2048_v41 = vadd.f32 %v7469_v39, %v7478_v24 }
 0x314   : > { %v2589_v17 = vmul.f32 0.2, %v2525_v31  ;;  %vm2557_vm4 = vcmp.ge.f32.partialorder %v2525_v31, 0.0  ;;  %v2348_v37 = vadd.f32 %v8887_v25, %v2186_v53 }
 0x316   : > { %v2621_v0 = vsel %vm2557_vm4, %v2525_v31, %v2589_v17  ;;  %v2188_v17 = vadd.f32 %v7480_v56, %v2048_v41 }
 0x317   : > { %v2432_v46 = vpop.f32.mrf.mxu0 }
 0x318   : > { %v2490_v36 = vadd.f32 %v2432_v46, %v2344_v18 }
 0x31a   : > { %v2526_v45 = vadd.f32 %v7532_v61, %v2490_v36 }
 0x31c   : > { %vm2558_vm8 = vcmp.ge.f32.partialorder %v2526_v45, 0.0  ;;  %v2590_v32 = vmul.f32 0.2, %v2526_v45 }
 0x31e   : > { %v2622_v43 = vsel %vm2558_vm8, %v2526_v45, %v2590_v32  ;;  %v8888_v45 = vld [vmem:[#allocation30_spill] sm:$0xff] }
 0x31f   : > { %v7624_v57 = vpack.c.bf16 %v2622_v43, %v2621_v0  ;;  %v2435_v49 = vpop.f32.mrf.mxu0  ;;  %v2350_v32 = vadd.f32 %v8888_v45, %v2188_v17 }
 0x320   : > { %v2491_v6 = vadd.f32 %v2435_v49, %v7447_v50  ;;  %v2050_v49 = vadd.f32 %v7485_v8, %v7490_v21  ;;  %v6406_v8 = vld [vmem:[%s8786_s3 + $0x4] sm:$0xf0]  ;;  %v2311_v21 = vpop.f32.mrf.mxu3 }
 0x321   : > { %2703 = vmatpush.bf16.msra.mxu1 %v7624_v57  ;;  %2822 = vmatpush.bf16.msra.mxu3 %v7624_v57 }
 0x322   : > { %3459 = vmatpush.bf16.msrb.mxu0 %v7624_v57  ;;  %v2527_v10 = vadd.f32 %v7532_v61, %v2491_v6 }
 0x324   : > { %v2591_v35 = vmul.f32 0.2, %v2527_v10  ;;  %vm2559_vm3 = vcmp.ge.f32.partialorder %v2527_v10, 0.0 }
 0x325   : > { %2704 = vmatpush.bf16.msra.mxu1 %v7614_v47  ;;  %2823 = vmatpush.bf16.msra.mxu3 %v7614_v47 }
 0x326   : > { %3460 = vmatpush.bf16.msrb.mxu0 %v7614_v47  ;;  %v2623_v23 = vsel %vm2559_vm3, %v2527_v10, %v2591_v35  ;;  %v2190_v10 = vadd.f32 %v7492_v27, %v2050_v49  ;;  %vm2917_vm3 = vcmask 523264  }
 0x327   : > { %v2437_v62 = vpop.f32.mrf.mxu0 }
 0x328   : > { %v2492_v50 = vadd.f32 %v2437_v62, %v2346_v7  ;;  %v2149_v62 = vpop.f32.mrf.mxu2 }
 0x329   : > { %2705 = vmatpush.bf16.msra.mxu1 %v7593_v5  ;;  %2824 = vmatpush.bf16.msra.mxu3 %v7593_v5 }
 0x32a   : > { %v2528_v11 = vadd.f32 %v7532_v61, %v2492_v50  ;;  %3461 = vmatpush.bf16.msrb.mxu0 %v7593_v5  ;;  %v8889_v50 = vld [vmem:[#allocation31_spill] sm:$0xff] }
 0x32b   : > { %v2352_v35 = vadd.f32 %v8889_v50, %v2190_v10 }
 0x32c   : > { %vm2560_vm9 = vcmp.ge.f32.partialorder %v2528_v11, 0.0  ;;  %v2592_v15 = vmul.f32 0.2, %v2528_v11 }
 0x32d   : > { %2706 = vmatpush.bf16.msra.mxu1 %v7579_v9  ;;  %2825 = vmatpush.bf16.msra.mxu3 %v7579_v9 }
 0x32e   : > { %v2624_v40 = vsel %vm2560_vm9, %v2528_v11, %v2592_v15  ;;  %3462 = vmatpush.bf16.msrb.mxu0 %v7579_v9  ;;  %v5504_v15 = vld [vmem:[%s8786_s3] sm:$0xf] }
 0x32f   : > { %v7645_v2 = vpack.c.bf16 %v2624_v40, %v2623_v23  ;;  %v2440_v58 = vpop.f32.mrf.mxu0  ;;  %v5505_v59 = vor.u32 %v6406_v8, %v5504_v15 }
 0x330   : > { %v2493_v16 = vadd.f32 %v2440_v58, %v7461_v3 }
 0x331   : > { %2707 = vmatpush.bf16.msra.mxu1 %v7565_v12  ;;  %2826 = vmatpush.bf16.msra.mxu3 %v7565_v12 }
 0x332   : > { %3463 = vmatpush.bf16.msrb.mxu0 %v7565_v12  ;;  %v2529_v14 = vadd.f32 %v7532_v61, %v2493_v16  ;;  %v2152_v16 = vpop.f32.mrf.mxu2 }
 0x334   : > { %v2593_v19 = vmul.f32 0.2, %v2529_v14  ;;  %vm2561_vm10 = vcmp.ge.f32.partialorder %v2529_v14, 0.0 }
 0x335   : > { %2708 = vmatpush.bf16.msra.mxu1 %v7555_v51  ;;  %2827 = vmatpush.bf16.msra.mxu3 %v7555_v51 }
 0x336   : > { %3464 = vmatpush.bf16.msrb.mxu0 %v7555_v51  ;;  %v2625_v52 = vsel %vm2561_vm10, %v2529_v14, %v2593_v19  ;;  %v2314_v19 = vpop.f32.mrf.mxu3 }
 0x337   : > { %v2442_v63 = vpop.f32.mrf.mxu0 }
 0x338   : > { %v2494_v3 = vadd.f32 %v2442_v63, %v2348_v37 }
 0x339   : > { %2709 = vmatpush.bf16.msra.mxu1 %v7547_v4  ;;  %2828 = vmatpush.bf16.msra.mxu3 %v7547_v4 }
 0x33a   : > { %v2530_v34 = vadd.f32 %v7532_v61, %v2494_v3  ;;  %3465 = vmatpush.bf16.msrb.mxu0 %v7547_v4 }
 0x33c   : > { %vm2562_vm11 = vcmp.ge.f32.partialorder %v2530_v34, 0.0  ;;  %v2594_v42 = vmul.f32 0.2, %v2530_v34 }
 0x33d   : > { %2710 = vmatpush.bf16.msra.mxu1 %v7539_v38  ;;  %2829 = vmatpush.bf16.msra.mxu3 %v7539_v38 }
 0x33e   : > { %v2626_v18 = vsel %vm2562_vm11, %v2530_v34, %v2594_v42  ;;  %3466 = vmatpush.bf16.msrb.mxu0 %v7539_v38 }
 0x33f   : > { %v7666_v31 = vpack.c.bf16 %v2626_v18, %v2625_v52  ;;  %v2445_v46 = vpop.f32.mrf.mxu0  ;;  %v5512_v18 = vld [vmem:[%s8786_s3 + $0x10] sm:$0xf] }
 0x340   : > { %v2495_v36 = vadd.f32 %v2445_v46, %v7475_v1  ;;  %v2009_v1 = vpop.f32.mrf.mxu1  ;;  %2711 = vmatmul.bf16.vlgmr.msra.gmra.mxu1 %v5505_v59  ;;  %v2154_v46 = vpop.f32.mrf.mxu2 }
 0x341   : > { %v2052_v53 = vadd.f32 %v2009_v1, %v7502_v13  ;;  %v6408_v13 = vld [vmem:[%s8786_s3 + $0x14] sm:$0xf0] }
 0x342   : > { %v2531_v48 = vadd.f32 %v7532_v61, %v2495_v36  ;;  %v5513_v17 = vor.u32 %v6408_v13, %v5512_v18 }
 0x343   : > { %v2192_v34 = vadd.f32 %v2149_v62, %v2052_v53 }
 0x344   : > { %v2595_v43 = vmul.f32 0.2, %v2531_v48  ;;  %vm2563_vm12 = vcmp.ge.f32.partialorder %v2531_v48, 0.0 }
 0x345   : > { %v2354_v41 = vadd.f32 %v2311_v21, %v2192_v34  ;;  %v5520_v21 = vld [vmem:[%s8786_s3 + $0x20] sm:$0xf] }
 0x346   : > { %v2627_v6 = vsel %vm2563_vm12, %v2531_v48, %v2595_v43  ;;  %v6454_v48 = vld [vmem:[%s8786_s3 + $0x104] sm:$0xf0] }
 0x347   : > { %v2447_v29 = vpop.f32.mrf.mxu0 }
 0x348   : > { %v2496_v0 = vadd.f32 %v2447_v29, %v2350_v32  ;;  %v5768_v32 = vld [vmem:[%s8786_s3 + $0x100] sm:$0xf]  ;;  %v2157_v62 = vpop.f32.mrf.mxu2 }
 0x349   : > { %v5769_v43 = vor.u32 %v6454_v48, %v5768_v32  ;;  %v5528_v32 = vld [vmem:[%s8786_s3 + $0x30] sm:$0xf] }
 0x34a   : > { %v2532_v39 = vadd.f32 %v7532_v61, %v2496_v0 }
 0x34b   : > { %3467 = vmatmul.bf16.vlgmr.msrb.gmra.mxu0 %v5769_v43 }
 0x34c   : > { %vm2564_vm13 = vcmp.ge.f32.partialorder %v2532_v39, 0.0  ;;  %v2596_v24 = vmul.f32 0.2, %v2532_v39 }
 0x34e   : > { %v2628_v20 = vsel %vm2564_vm13, %v2532_v39, %v2596_v24  ;;  %v2316_v39 = vpop.f32.mrf.mxu3 }
 0x34f   : > { %v7675_v28 = vpack.c.bf16 %v2628_v20, %v2627_v6  ;;  %v2450_v56 = vpop.f32.mrf.mxu0 }
 0x350   : > { %v2497_v7 = vadd.f32 %v2450_v56, %v7487_v54  ;;  %v2012_v54 = vpop.f32.mrf.mxu1  ;;  %2716 = vmatmul.bf16.gmra.mxu1 %v5513_v17 }
 0x351   : > { %v2053_v45 = vadd.f32 %v2012_v54, %v7505_v55 }
 0x352   : > { %v2533_v11 = vadd.f32 %v7532_v61, %v2497_v7 }
 0x353   : > { %v2193_v24 = vadd.f32 %v2152_v16, %v2053_v45 }
 0x354   : > { %v2597_v27 = vmul.f32 0.2, %v2533_v11  ;;  %vm2565_vm14 = vcmp.ge.f32.partialorder %v2533_v11, 0.0 }
 0x355   : > { %v2355_v10 = vadd.f32 %v2314_v19, %v2193_v24  ;;  %v5784_v24 = vld [vmem:[%s8786_s3 + $0x120] sm:$0xf] }
 0x356   : > { %v2629_v25 = vsel %vm2565_vm14, %v2533_v11, %v2597_v27  ;;  %v2319_v11 = vpop.f32.mrf.mxu3 }
 0x357   : > { %v2452_v26 = vpop.f32.mrf.mxu0 }
 0x358   : > { %v2498_v23 = vadd.f32 %v2452_v26, %v2352_v35  ;;  %v2014_v42 = vpop.f32.mrf.mxu1 }
 0x359   : > { %v2054_v6 = vadd.f32 %v2014_v42, %v7510_v44  ;;  %v6410_v44 = vld [vmem:[%s8786_s3 + $0x24] sm:$0xf0] }
 0x35a   : > { %v2534_v40 = vadd.f32 %v7532_v61, %v2498_v23  ;;  %v5521_v23 = vor.u32 %v6410_v44, %v5520_v21  ;;  %v5544_v44 = vld [vmem:[%s8786_s3 + $0x40] sm:$0xf] }
 0x35b   : > { %v2194_v50 = vadd.f32 %v2154_v46, %v2054_v6 }
 0x35c   : > { %vm2566_vm15 = vcmp.ge.f32.partialorder %v2534_v40, 0.0  ;;  %v2598_v58 = vmul.f32 0.2, %v2534_v40 }
 0x35d   : > { %v2356_v15 = vadd.f32 %v2316_v39, %v2194_v50 }
 0x35e   : > { %v2630_v37 = vsel %vm2566_vm15, %v2534_v40, %v2598_v58  ;;  %v5776_v40 = vld [vmem:[%s8786_s3 + $0x110] sm:$0xf]  ;;  %v6456_v58 = vld [vmem:[%s8786_s3 + $0x114] sm:$0xf0]  ;;  %v2321_v42 = vpop.f32.mrf.mxu3 }
 0x35f   : > { %v7689_v14 = vpack.c.bf16 %v2630_v37, %v2629_v25  ;;  %v2455_v63 = vpop.f32.mrf.mxu0  ;;  %v5777_v25 = vor.u32 %v6456_v58, %v5776_v40  ;;  %v2159_v37 = vpop.f32.mrf.mxu2 }
 0x360   : > { %v2499_v3 = vadd.f32 %v2455_v63, %v7499_v60  ;;  %v2017_v55 = vpop.f32.mrf.mxu1  ;;  %2721 = vmatmul.bf16.gmra.mxu1 %v5521_v23 }
 0x361   : > { %v2055_v54 = vadd.f32 %v2017_v55, %v7513_v22  ;;  %3472 = vmatmul.bf16.gmra.mxu0 %v5777_v25  ;;  %v5792_v25 = vld [vmem:[%s8786_s3 + $0x130] sm:$0xf] }
 0x362   : > { %v2535_v52 = vadd.f32 %v7532_v61, %v2499_v3 }
 0x363   : > { %v2195_v63 = vadd.f32 %v2157_v62, %v2055_v54 }
 0x364   : > { %v2599_v29 = vmul.f32 0.2, %v2535_v52  ;;  %vm2567_vm0 = vcmp.ge.f32.partialorder %v2535_v52, 0.0 }
 0x365   : > { %v2357_v18 = vadd.f32 %v2319_v11, %v2195_v63 }
 0x366   : > { %v2631_v20 = vsel %vm2567_vm0, %v2535_v52, %v2599_v29  ;;  %v2324_v39 = vpop.f32.mrf.mxu3 }
 0x367   : > { %v2457_v36 = vpop.f32.mrf.mxu0  ;;  %v2162_v17 = vpop.f32.mrf.mxu2 }
 0x368   : > { %v2500_v60 = vadd.f32 %v2457_v36, %v2354_v41  ;;  %v2019_v26 = vpop.f32.mrf.mxu1 }
 0x369   : > { %v2056_v22 = vadd.f32 %v2019_v26, %v7518_v30  ;;  %v6412_v30 = vld [vmem:[%s8786_s3 + $0x34] sm:$0xf0]  ;;  %v6418_v26 = vld [vmem:[%s8786_s3 + $0x44] sm:$0xf0] }
 0x36a   : > { %v2536_v0 = vadd.f32 %v7532_v61, %v2500_v60  ;;  %v5529_v29 = vor.u32 %v6412_v30, %v5528_v32  ;;  %v6405_v32 = vld [vmem:[%s8786_s3 + $0x4] sm:$0xf]  ;;  %v5506_v30 = vld [vmem:[%s8786_s3 + $0x8] sm:$0xf0] }
 0x36b   : > { %v2196_v46 = vadd.f32 %v2159_v37, %v2056_v22  ;;  %v6460_v37 = vld [vmem:[%s8786_s3 + $0x134] sm:$0xf0] }
 0x36c   : > { %vm2568_vm1 = vcmp.ge.f32.partialorder %v2536_v0, 0.0  ;;  %v2600_v49 = vmul.f32 0.2, %v2536_v0  ;;  %v5793_v22 = vor.u32 %v6460_v37, %v5792_v25  ;;  %v6411_v25 = vld [vmem:[%s8786_s3 + $0x34] sm:$0xf] }
 0x36d   : > { %v2358_v45 = vadd.f32 %v2321_v42, %v2196_v46  ;;  %v5560_v46 = vld [vmem:[%s8786_s3 + $0x60] sm:$0xf]  ;;  %v5530_v37 = vld [vmem:[%s8786_s3 + $0x38] sm:$0xf0] }
 0x36e   : > { %v2632_v1 = vsel %vm2568_vm1, %v2536_v0, %v2600_v49  ;;  %v6458_v49 = vld [vmem:[%s8786_s3 + $0x124] sm:$0xf0] }
 0x36f   : > { %v7708_v56 = vpack.c.bf16 %v2632_v1, %v2631_v20  ;;  %v2460_v7 = vpop.f32.mrf.mxu0  ;;  %v5785_v20 = vor.u32 %v6458_v49, %v5784_v24  ;;  %v2164_v11 = vpop.f32.mrf.mxu2  ;;  %v5509_v24 = vor.u32 %v6405_v32, %v5506_v30  ;;  %v6434_v32 = vld [vmem:[%s8786_s3 + $0xa4] sm:$0xf0] }
 0x370   : > { %v2501_v35 = vadd.f32 %v2460_v7, %v2355_v10  ;;  %v2022_v13 = vpop.f32.mrf.mxu1  ;;  %2726 = vmatmul.bf16.gmra.mxu1 %v5529_v29  ;;  %v8890_v10 = vld [vmem:[#allocation3_spill] sm:$0xff] }
 0x371   : > { %v2057_v0 = vadd.f32 %v2022_v13, %v7521_v33  ;;  %3477 = vmatmul.bf16.gmra.mxu0 %v5785_v20  ;;  %v6420_v13 = vld [vmem:[%s8786_s3 + $0x54] sm:$0xf0]  ;;  %v6465_v29 = vld [vmem:[%s8786_s3 + $0x144] sm:$0xf]  ;;  %v5568_v20 = vld [vmem:[%s8786_s3 + $0x70] sm:$0xf] }
 0x372   : > { %v2537_v8 = vadd.f32 %v7532_v61, %v2501_v35 }
 0x373   : > { %v2197_v7 = vadd.f32 %v2162_v17, %v2057_v0  ;;  %v5838_v0 = vld [vmem:[%s8786_s3 + $0x148] sm:$0xf0] }
 0x374   : > { %v2601_v16 = vmul.f32 0.2, %v2537_v8  ;;  %vm2569_vm2 = vcmp.ge.f32.partialorder %v2537_v8, 0.0  ;;  %v5841_v49 = vor.u32 %v6465_v29, %v5838_v0  ;;  %v6416_v29 = vld [vmem:[%s8787_s4 + $0x18] sm:$0xff]  ;;  %v6415_v0 = vld [vmem:[%s8787_s4 + $0x10] sm:$0xff] }
 0x375   : > { %v2359_v21 = vadd.f32 %v2324_v39, %v2197_v7  ;;  %v6426_v7 = vld [vmem:[%s8787_s4 + $0x28] sm:$0xff]  ;;  %2999 = vmatpush.bf16.msrb.mxu3 %v6416_v29 }
 0x376   : > { %v2633_v19 = vsel %vm2569_vm2, %v2537_v8, %v2601_v16 }
 0x377   : > { %v2462_v59 = vpop.f32.mrf.mxu0 }
 0x378   : > { %v2502_v27 = vadd.f32 %v2462_v59, %v2356_v15  ;;  %v2024_v1 = vpop.f32.mrf.mxu1  ;;  %v5545_v59 = vor.u32 %v6418_v26, %v5544_v44 }
 0x379   : > { %v2058_v62 = vadd.f32 %v2024_v1, %v8890_v10  ;;  %v6424_v1 = vld [vmem:[%s8786_s3 + $0x74] sm:$0xf0]  ;;  %v6486_v10 = vld [vmem:[%s8787_s4 + $0xc8] sm:$0xff]  ;;  %3000 = vmatpush.bf16.msrb.mxu3 %v6415_v0 }
 0x37a   : > { %v2538_v53 = vadd.f32 %v7532_v61, %v2502_v27  ;;  %v2326_v27 = vpop.f32.mrf.mxu3  ;;  %2830 = vmatmul.bf16.vlgmr.msra.gmra.mxu3 %v5545_v59  ;;  %v6421_v59 = vld [vmem:[%s8786_s3 + $0x64] sm:$0xf] }
 0x37b   : > { %v2198_v23 = vadd.f32 %v2164_v11, %v2058_v62  ;;  %v6425_v62 = vld [vmem:[%s8787_s4 + $0x20] sm:$0xff]  ;;  %v5554_v11 = vld [vmem:[%s8786_s3 + $0x58] sm:$0xf0] }
 0x37c   : > { %vm2570_vm5 = vcmp.ge.f32.partialorder %v2538_v53, 0.0  ;;  %v2602_v3 = vmul.f32 0.2, %v2538_v53 }
 0x37d   : > { %v2360_v40 = vadd.f32 %v2326_v27, %v2198_v23  ;;  %v5562_v23 = vld [vmem:[%s8786_s3 + $0x68] sm:$0xf0] }
 0x37e   : > { %v2634_v34 = vsel %vm2570_vm5, %v2538_v53, %v2602_v3  ;;  %v5522_v27 = vld [vmem:[%s8786_s3 + $0x28] sm:$0xf0] }
 0x37f   : > { %v7726_v41 = vpack.c.bf16 %v2634_v34, %v2633_v19  ;;  %v2465_v52 = vpop.f32.mrf.mxu0 }
 0x380   : > { %v2503_v36 = vadd.f32 %v2465_v52, %v2357_v18  ;;  %v5552_v18 = vld [vmem:[%s8786_s3 + $0x50] sm:$0xf] }
 0x381   : > { %3482 = vmatmul.bf16.gmra.mxu0 %v5793_v22 }
 0x382   : > { %v2539_v60 = vadd.f32 %v7532_v61, %v2503_v36  ;;  %v6422_v36 = vld [vmem:[%s8786_s3 + $0x64] sm:$0xf0] }
 0x383   : > { %v5561_v17 = vor.u32 %v6422_v36, %v5560_v46  ;;  %v6432_v46 = vld [vmem:[%s8786_s3 + $0x94] sm:$0xf0] }
 0x384   : > { %v2603_v55 = vmul.f32 0.2, %v2539_v60  ;;  %vm2571_vm6 = vcmp.ge.f32.partialorder %v2539_v60, 0.0 }
 0x386   : > { %v2635_v50 = vsel %vm2571_vm6, %v2539_v60, %v2603_v55  ;;  %v5546_v60 = vld [vmem:[%s8786_s3 + $0x48] sm:$0xf0]  ;;  %v6427_v55 = vld [vmem:[%s8787_s4 + $0x30] sm:$0xff] }
 0x387   : > { %v2467_v48 = vpop.f32.mrf.mxu0 }
 0x388   : > { %v2504_v43 = vadd.f32 %v2467_v48, %v2358_v45  ;;  %v6417_v45 = vld [vmem:[%s8786_s3 + $0x44] sm:$0xf]  ;;  %v6428_v48 = vld [vmem:[%s8787_s4 + $0x38] sm:$0xff] }
 0x389   : > { %v5549_v39 = vor.u32 %v6417_v45, %v5546_v60  ;;  %v5648_v60 = vld [vmem:[%s8786_s3 + $0xa0] sm:$0xf] }
 0x38a   : > { %v2540_v6 = vadd.f32 %v7532_v61, %v2504_v43  ;;  %v6488_v43 = vld [vmem:[%s8787_s4 + $0xd8] sm:$0xff]  ;;  %v5649_v30 = vor.u32 %v6434_v32, %v5648_v60 }
 0x38c   : > { %vm2572_vm7 = vcmp.ge.f32.partialorder %v2540_v6, 0.0  ;;  %v2604_v33 = vmul.f32 0.2, %v2540_v6 }
 0x38e   : > { %v2636_v35 = vsel %vm2572_vm7, %v2540_v6, %v2604_v33  ;;  %v6487_v6 = vld [vmem:[%s8787_s4 + $0xd0] sm:$0xff]  ;;  %v5569_v33 = vor.u32 %v6424_v1, %v5568_v20  ;;  %vm5161_vm7 = vcmask 0  }
 0x38f   : > { %v7744_v15 = vpack.c.bf16 %v2636_v35, %v2635_v50  ;;  %v2470_v8 = vpop.f32.mrf.mxu0  ;;  %v6485_v50 = vld [vmem:[%s8787_s4 + $0xc0] sm:$0xff]  ;;  %v6419_v35 = vld [vmem:[%s8786_s3 + $0x54] sm:$0xf] }
 0x390   : > { %v2505_v54 = vadd.f32 %v2470_v8, %v2359_v21  ;;  %v6407_v8 = vld [vmem:[%s8786_s3 + $0x14] sm:$0xf]  ;;  %v5514_v21 = vld [vmem:[%s8786_s3 + $0x18] sm:$0xf0]  ;;  %v5557_v44 = vor.u32 %v6419_v35, %v5554_v11 }
 0x391   : > { %v5517_v26 = vor.u32 %v6407_v8, %v5514_v21 }
 0x392   : > { %v2541_v58 = vadd.f32 %v7532_v61, %v2505_v54  ;;  %v6409_v54 = vld [vmem:[%s8786_s3 + $0x24] sm:$0xf] }
 0x394   : > { %v2605_v63 = vmul.f32 0.2, %v2541_v58  ;;  %vm2573_vm4 = vcmp.ge.f32.partialorder %v2541_v58, 0.0 }
 0x396   : > { %v2637_v34 = vsel %vm2573_vm4, %v2541_v58, %v2605_v63  ;;  %v5525_v58 = vor.u32 %v6409_v54, %v5522_v27 }
 0x397   : > { %v2472_v16 = vpop.f32.mrf.mxu0 }
 0x398   : > { %v2506_v53 = vadd.f32 %v2472_v16, %v2360_v40  ;;  %v5565_v40 = vor.u32 %v6421_v59, %v5562_v23  ;;  %v6423_v16 = vld [vmem:[%s8786_s3 + $0x74] sm:$0xf]  ;;  %v5708_v59 = vld [vmem:[%s8786_s3 + $0xd0] sm:$0xf]  ;;  %v6444_v23 = vld [vmem:[%s8786_s3 + $0xd4] sm:$0xf0] }
 0x39a   : > { %v2542_v3 = vadd.f32 %v7532_v61, %v2506_v53  ;;  %v5553_v61 = vor.u32 %v6420_v13, %v5552_v18  ;;  %v5570_v53 = vld [vmem:[%s8786_s3 + $0x78] sm:$0xf0] }
 0x39b   : > { %v5573_v63 = vor.u32 %v6423_v16, %v5570_v53 }
 0x39c   : > { %vm2574_vm8 = vcmp.ge.f32.partialorder %v2542_v3, 0.0  ;;  %v2606_v19 = vmul.f32 0.2, %v2542_v3  ;;  %2835 = vmatmul.bf16.gmra.mxu3 %v5553_v61  ;;  %v5640_v61 = vld [vmem:[%s8786_s3 + $0x90] sm:$0xf] }
 0x39d   : > { %v5641_v36 = vor.u32 %v6432_v46, %v5640_v61  ;;  %v5716_v61 = vld [vmem:[%s8786_s3 + $0xe0] sm:$0xf]  ;;  %v6446_v46 = vld [vmem:[%s8786_s3 + $0xe4] sm:$0xf0] }
 0x39e   : > { %v2638_v42 = vsel %vm2574_vm8, %v2542_v3, %v2606_v19  ;;  %v5533_v3 = vor.u32 %v6411_v25, %v5530_v37  ;;  %v6476_v37 = vld [vmem:[%s8787_s4 + $0xb8] sm:$0xff]  ;;  %v5717_v32 = vor.u32 %v6446_v46, %v5716_v61 }
 0x39f   : > { %v7760_v52 = vpack.c.bf16 %v2638_v42, %v2637_v34  ;;  %v5632_v34 = vld [vmem:[%s8786_s3 + $0x80] sm:$0xf]  ;;  %v6430_v42 = vld [vmem:[%s8786_s3 + $0x84] sm:$0xf0]  ;;  %v6464_v61 = vld [vmem:[%s8787_s4 + $0x98] sm:$0xff] }
 0x3a0   : > { %v5633_v18 = vor.u32 %v6430_v42, %v5632_v34  ;;  %v6475_v34 = vld [vmem:[%s8787_s4 + $0xb0] sm:$0xff] }
 0x3a1   : > { %2732 = vmatpush.bf16.msra.mxu2 %v7760_v52  ;;  %2851 = vmatpush.bf16.msrb.mxu1 %v7760_v52 }
 0x3a2   : > { %3681 = vmatpush.bf16.msra.mxu0 %v7760_v52 }
 0x3a5   : > { %2733 = vmatpush.bf16.msra.mxu2 %v7744_v15  ;;  %2852 = vmatpush.bf16.msrb.mxu1 %v7744_v15 }
 0x3a6   : > { %3682 = vmatpush.bf16.msra.mxu0 %v7744_v15 }
 0x3a9   : > { %2734 = vmatpush.bf16.msra.mxu2 %v7726_v41  ;;  %2853 = vmatpush.bf16.msrb.mxu1 %v7726_v41 }
 0x3aa   : > { %3683 = vmatpush.bf16.msra.mxu0 %v7726_v41 }
 0x3ac   : > { %2840 = vmatmul.bf16.gmra.mxu3 %v5561_v17 }
 0x3ad   : > { %2735 = vmatpush.bf16.msra.mxu2 %v7708_v56  ;;  %2854 = vmatpush.bf16.msrb.mxu1 %v7708_v56 }
 0x3ae   : > { %3684 = vmatpush.bf16.msra.mxu0 %v7708_v56 }
 0x3b1   : > { %2736 = vmatpush.bf16.msra.mxu2 %v7689_v14  ;;  %2855 = vmatpush.bf16.msrb.mxu1 %v7689_v14 }
 0x3b2   : > { %3685 = vmatpush.bf16.msra.mxu0 %v7689_v14 }
 0x3b5   : > { %2737 = vmatpush.bf16.msra.mxu2 %v7675_v28  ;;  %2856 = vmatpush.bf16.msrb.mxu1 %v7675_v28 }
 0x3b6   : > { %3686 = vmatpush.bf16.msra.mxu0 %v7675_v28 }
 0x3b9   : > { %2738 = vmatpush.bf16.msra.mxu2 %v7666_v31  ;;  %2857 = vmatpush.bf16.msrb.mxu1 %v7666_v31 }
 0x3ba   : > { %3687 = vmatpush.bf16.msra.mxu0 %v7666_v31 }
 0x3bc   : > { %2845 = vmatmul.bf16.gmra.mxu3 %v5569_v33  ;;  %v6442_v33 = vld [vmem:[%s8786_s3 + $0xc4] sm:$0xf0] }
 0x3bd   : > { %2739 = vmatpush.bf16.msra.mxu2 %v7645_v2  ;;  %2858 = vmatpush.bf16.msrb.mxu1 %v7645_v2  ;;  %v7911_v22 = vpop.f32.mrf.mxu1 }
 0x3be   : > { %3688 = vmatpush.bf16.msra.mxu0 %v7645_v2 }
 0x3c0   : > { %2859 = vmatmul.bf16.vlgmr.msrb.gmra.mxu1 %v5549_v39  ;;  %2740 = vmatmul.bf16.vlgmr.msra.gmra.mxu2 %v5509_v24  ;;  %v5656_v39 = vld [vmem:[%s8786_s3 + $0xb0] sm:$0xf]  ;;  %v6436_v24 = vld [vmem:[%s8786_s3 + $0xb4] sm:$0xf0] }
 0x3c1   : > { %2934 = vmatpush.bf16.msrb.mxu2 %v6428_v48  ;;  %3073 = vmatpush.bf16.msra.mxu1 %v7624_v57 }
 0x3c2   : > { %3956 = vmatpush.bf16.msrb.mxu0 %v6488_v43  ;;  %v6414_v43 = vld [vmem:[%s8787_s4 + $0x8] sm:$0xff] }
 0x3c3   : > { %3689 = vmatmul.bf16.vlgmr.msra.gmra.mxu0 %v5841_v49  ;;  %3001 = vmatpush.bf16.msrb.mxu3 %v6414_v43  ;;  %v6473_v43 = vld [vmem:[%s8787_s4 + $0xa0] sm:$0xff] }
 0x3c5   : > { %2935 = vmatpush.bf16.msrb.mxu2 %v6427_v55  ;;  %3074 = vmatpush.bf16.msra.mxu1 %v7614_v47  ;;  %v2714_v19 = vpop.f32.mrf.mxu1  ;;  %v5657_v55 = vor.u32 %v6436_v24, %v5656_v39 }
 0x3c6   : > { %3957 = vmatpush.bf16.msrb.mxu0 %v6487_v6  ;;  %v6413_v6 = vld [vmem:[%s8787_s4] sm:$0xff] }
 0x3c7   : > { %3002 = vmatpush.bf16.msrb.mxu3 %v6413_v6 }
 0x3c9   : > { %2936 = vmatpush.bf16.msrb.mxu2 %v6426_v7  ;;  %3075 = vmatpush.bf16.msra.mxu1 %v7593_v5  ;;  %v5700_v7 = vld [vmem:[%s8786_s3 + $0xc0] sm:$0xf] }
 0x3ca   : > { %3958 = vmatpush.bf16.msrb.mxu0 %v6486_v10 }
 0x3cd   : > { %2937 = vmatpush.bf16.msrb.mxu2 %v6425_v62  ;;  %3076 = vmatpush.bf16.msra.mxu1 %v7579_v9  ;;  %v7923_v13 = vpop.f32.mrf.mxu1 }
 0x3ce   : > { %3959 = vmatpush.bf16.msrb.mxu0 %v6485_v50  ;;  %v5701_v50 = vor.u32 %v6442_v33, %v5700_v7  ;;  %v5724_v7 = vld [vmem:[%s8786_s3 + $0xf0] sm:$0xf]  ;;  %v6448_v33 = vld [vmem:[%s8786_s3 + $0xf4] sm:$0xf0] }
 0x3d0   : > { %2864 = vmatmul.bf16.gmra.mxu1 %v5557_v44  ;;  %2745 = vmatmul.bf16.gmra.mxu2 %v5517_v26 }
 0x3d1   : > { %3102 = vmatpush.bf16.msra.mxu2 %v7760_v52  ;;  %3077 = vmatpush.bf16.msra.mxu1 %v7565_v12 }
 0x3d2   : > { %4231 = vmatpush.bf16.msra.mxu0 %v7624_v57 }
 0x3d5   : > { %3103 = vmatpush.bf16.msra.mxu2 %v7744_v15  ;;  %3078 = vmatpush.bf16.msra.mxu1 %v7555_v51  ;;  %v7933_v17 = vpop.f32.mrf.mxu1 }
 0x3d6   : > { %4232 = vmatpush.bf16.msra.mxu0 %v7614_v47 }
 0x3d9   : > { %3104 = vmatpush.bf16.msra.mxu2 %v7726_v41  ;;  %3079 = vmatpush.bf16.msra.mxu1 %v7547_v4 }
 0x3da   : > { %4233 = vmatpush.bf16.msra.mxu0 %v7593_v5 }
 0x3dd   : > { %3105 = vmatpush.bf16.msra.mxu2 %v7708_v56  ;;  %3080 = vmatpush.bf16.msra.mxu1 %v7539_v38  ;;  %v7938_v45 = vpop.f32.mrf.mxu1 }
 0x3de   : > { %4234 = vmatpush.bf16.msra.mxu0 %v7579_v9 }
 0x3e0   : > { %2869 = vmatmul.bf16.gmra.mxu1 %v5565_v40  ;;  %2750 = vmatmul.bf16.gmra.mxu2 %v5525_v58  ;;  %v5709_v58 = vor.u32 %v6444_v23, %v5708_v59 }
 0x3e1   : > { %3106 = vmatpush.bf16.msra.mxu2 %v7689_v14  ;;  %3266 = vmatpush.bf16.msrb.mxu1 %v7624_v57 }
 0x3e2   : > { %4235 = vmatpush.bf16.msra.mxu0 %v7565_v12 }
 0x3e5   : > { %3107 = vmatpush.bf16.msra.mxu2 %v7675_v28  ;;  %3267 = vmatpush.bf16.msrb.mxu1 %v7614_v47  ;;  %v7948_v48 = vpop.f32.mrf.mxu1 }
 0x3e6   : > { %4236 = vmatpush.bf16.msra.mxu0 %v7555_v51 }
 0x3e9   : > { %3108 = vmatpush.bf16.msra.mxu2 %v7666_v31  ;;  %3268 = vmatpush.bf16.msrb.mxu1 %v7593_v5 }
 0x3ea   : > { %4237 = vmatpush.bf16.msra.mxu0 %v7547_v4 }
 0x3ed   : > { %3109 = vmatpush.bf16.msra.mxu2 %v7645_v2  ;;  %3269 = vmatpush.bf16.msrb.mxu1 %v7579_v9  ;;  %v7965_v49 = vpop.f32.mrf.mxu1 }
 0x3ee   : > { %4238 = vmatpush.bf16.msra.mxu0 %v7539_v38 }
 0x3f0   : > { %2874 = vmatmul.bf16.gmra.mxu1 %v5573_v63  ;;  %2755 = vmatmul.bf16.gmra.mxu2 %v5533_v3 }
 0x3f1   : > { %3270 = vmatpush.bf16.msrb.mxu1 %v7565_v12 }
 0x3f5   : > { %3271 = vmatpush.bf16.msrb.mxu1 %v7555_v51  ;;  %v7970_v1 = vpop.f32.mrf.mxu1 }
 0x3f9   : > { %3272 = vmatpush.bf16.msrb.mxu1 %v7547_v4 }
 0x3fd   : > { %3273 = vmatpush.bf16.msrb.mxu1 %v7539_v38  ;;  %v2831_v20 = vpop.f32.mrf.mxu3 }
 0x400   : > { %3081 = vmatmul.bf16.vlgmr.msra.gmra.mxu1 %v5633_v18 }
 0x401   : > { %3488 = vmatpush.bf16.msra.mxu1 %v7760_v52 }
 0x405   : > { %3489 = vmatpush.bf16.msra.mxu1 %v7744_v15  ;;  %v2833_v10 = vpop.f32.mrf.mxu3 }
 0x409   : > { %3490 = vmatpush.bf16.msra.mxu1 %v7726_v41 }
 0x40d   : > { %3491 = vmatpush.bf16.msra.mxu1 %v7708_v56 }
 0x410   : > { %3086 = vmatmul.bf16.gmra.mxu1 %v5641_v36  ;;  %v6474_v36 = vld [vmem:[%s8787_s4 + $0xa8] sm:$0xff] }
 0x411   : > { %3492 = vmatpush.bf16.msra.mxu1 %v7689_v14 }
 0x415   : > { %3493 = vmatpush.bf16.msra.mxu1 %v7675_v28 }
 0x419   : > { %3494 = vmatpush.bf16.msra.mxu1 %v7666_v31 }
 0x41d   : > { %3495 = vmatpush.bf16.msra.mxu1 %v7645_v2 }
 0x41f   : > { %v2836_v11 = vpop.f32.mrf.mxu3 }
 0x420   : > { %3091 = vmatmul.bf16.gmra.mxu1 %v5649_v30 }
 0x427   : > { %v2838_v53 = vpop.f32.mrf.mxu3 }
 0x42f   : > { %v2841_v42 = vpop.f32.mrf.mxu3 }
 0x430   : > { %3096 = vmatmul.bf16.gmra.mxu1 %v5657_v55 }
 0x437   : > { %v2843_v24 = vpop.f32.mrf.mxu3 }
 0x43d   : > { %v2860_v62 = vpop.f32.mrf.mxu1 }
 0x43e   : > { %v2861_v21 = vadd.f32 %v2860_v62, %v2831_v20  ;;  %v5725_v62 = vor.u32 %v6448_v33, %v5724_v7  ;;  %v5778_v7 = vld [vmem:[%s8786_s3 + $0x118] sm:$0xf0] }
 0x440   : > { %3274 = vmatmul.bf16.vlgmr.msrb.gmra.mxu1 %v5701_v50 }
 0x441   : > { %3763 = vmatpush.bf16.msrb.mxu1 %v6476_v37 }
 0x443   : > { %v2741_v35 = vpop.f32.mrf.mxu2 }
 0x444   : > { %v2742_v27 = vadd.f32 %v2741_v35, %v7911_v22 }
 0x445   : > { %v2862_v8 = vpop.f32.mrf.mxu1  ;;  %3764 = vmatpush.bf16.msrb.mxu1 %v6475_v34  ;;  %v5642_v34 = vld [vmem:[%s8786_s3 + $0x98] sm:$0xf0] }
 0x446   : > { %v2863_v44 = vadd.f32 %v2862_v8, %v2833_v10  ;;  %v2846_v10 = vpop.f32.mrf.mxu3 }
 0x448   : > { %v2880_v26 = vpack.c.bf16 %v2863_v44, %v2861_v21 }
 0x449   : > { %3765 = vmatpush.bf16.msrb.mxu1 %v6474_v36  ;;  %v6463_v36 = vld [vmem:[%s8787_s4 + $0x90] sm:$0xff] }
 0x44a   : > { %5598 = vmatmul.msk.bf16.vlgmr.msrb.gmra.mxu2 %vm2917_vm3, %v2880_v26 }
 0x44b   : > { %3295 = vmatpush.bf16.msrb.mxu2 %v7760_v52  ;;  %v2743_v54 = vpop.f32.mrf.mxu2 }
 0x44c   : > { %v2744_v40 = vadd.f32 %v2743_v54, %v2714_v19 }
 0x44d   : > { %v2865_v16 = vpop.f32.mrf.mxu1  ;;  %3766 = vmatpush.bf16.msrb.mxu1 %v6473_v43  ;;  %v6461_v43 = vld [vmem:[%s8787_s4 + $0x80] sm:$0xff] }
 0x44e   : > { %v2761_v25 = vpack.c.bf16 %v2744_v40, %v2742_v27  ;;  %v2866_v22 = vadd.f32 %v2865_v16, %v2836_v11  ;;  %v2848_v26 = vpop.f32.mrf.mxu3  ;;  %v6453_v40 = vld [vmem:[%s8786_s3 + $0x104] sm:$0xf] }
 0x44f   : > { %3296 = vmatpush.bf16.msrb.mxu2 %v7744_v15 }
 0x450   : > { %5618 = vmatmul.msk.bf16.vlgmr.msrb.gmra.mxu3 %vm2917_vm3, %v2761_v25  ;;  %3279 = vmatmul.bf16.gmra.mxu1 %v5709_v58 }
 0x453   : > { %3297 = vmatpush.bf16.msrb.mxu2 %v7726_v41  ;;  %v2746_v63 = vpop.f32.mrf.mxu2 }
 0x454   : > { %v2747_v30 = vadd.f32 %v2746_v63, %v7923_v13  ;;  %v6429_v63 = vld [vmem:[%s8786_s3 + $0x84] sm:$0xf] }
 0x455   : > { %v2867_v3 = vpop.f32.mrf.mxu1 }
 0x456   : > { %v2868_v19 = vadd.f32 %v2867_v3, %v2838_v53  ;;  %v5634_v3 = vld [vmem:[%s8786_s3 + $0x88] sm:$0xf0] }
 0x457   : > { %3298 = vmatpush.bf16.msrb.mxu2 %v7708_v56 }
 0x458   : > { %v2881_v18 = vpack.c.bf16 %v2868_v19, %v2866_v22  ;;  %v6431_v19 = vld [vmem:[%s8786_s3 + $0x94] sm:$0xf] }
 0x45a   : > { %5599 = vmatmul.msk.bf16.gmra.mxu2 %vm2917_vm3, %v2881_v18  ;;  %v5645_v18 = vor.u32 %v6431_v19, %v5642_v34  ;;  %v6439_v19 = vld [vmem:[%s8787_s4 + $0x50] sm:$0xff]  ;;  %v6445_v34 = vld [vmem:[%s8786_s3 + $0xe4] sm:$0xf] }
 0x45b   : > { %3299 = vmatpush.bf16.msrb.mxu2 %v7689_v14  ;;  %v2748_v60 = vpop.f32.mrf.mxu2 }
 0x45c   : > { %v2749_v29 = vadd.f32 %v2748_v60, %v7933_v17  ;;  %v6433_v60 = vld [vmem:[%s8786_s3 + $0xa4] sm:$0xf] }
 0x45d   : > { %v2870_v0 = vpop.f32.mrf.mxu1 }
 0x45e   : > { %v2762_v39 = vpack.c.bf16 %v2749_v29, %v2747_v30  ;;  %v2871_v6 = vadd.f32 %v2870_v0, %v2841_v42  ;;  %v6462_v30 = vld [vmem:[%s8787_s4 + $0x88] sm:$0xff] }
 0x45f   : > { %3300 = vmatpush.bf16.msrb.mxu2 %v7675_v28 }
 0x460   : > { %3284 = vmatmul.bf16.gmra.mxu1 %v5717_v32  ;;  %5619 = vmatmul.msk.bf16.gmra.mxu3 %vm2917_vm3, %v2762_v39  ;;  %v5650_v32 = vld [vmem:[%s8786_s3 + $0xa8] sm:$0xf0] }
 0x461   : > { %v5653_v0 = vor.u32 %v6433_v60, %v5650_v32 }
 0x463   : > { %3301 = vmatpush.bf16.msrb.mxu2 %v7666_v31  ;;  %v2751_v55 = vpop.f32.mrf.mxu2 }
 0x464   : > { %v2752_v11 = vadd.f32 %v2751_v55, %v7938_v45  ;;  %v5770_v45 = vld [vmem:[%s8786_s3 + $0x108] sm:$0xf0]  ;;  %v5658_v55 = vld [vmem:[%s8786_s3 + $0xb8] sm:$0xf0] }
 0x465   : > { %v2872_v13 = vpop.f32.mrf.mxu1 }
 0x466   : > { %v2873_v17 = vadd.f32 %v2872_v13, %v2843_v24  ;;  %v6435_v24 = vld [vmem:[%s8786_s3 + $0xb4] sm:$0xf] }
 0x467   : > { %3302 = vmatpush.bf16.msrb.mxu2 %v7645_v2 }
 0x468   : > { %v2882_v20 = vpack.c.bf16 %v2873_v17, %v2871_v6  ;;  %v5661_v6 = vor.u32 %v6435_v24, %v5658_v55  ;;  %v6437_v24 = vld [vmem:[%s8787_s4 + $0x40] sm:$0xff]  ;;  %v6452_v55 = vld [vmem:[%s8787_s4 + $0x78] sm:$0xff] }
 0x46a   : > { %5600 = vmatmul.msk.bf16.gmra.mxu2 %vm2917_vm3, %v2882_v20  ;;  %v6455_v20 = vld [vmem:[%s8786_s3 + $0x114] sm:$0xf] }
 0x46b   : > { %v2753_v50 = vpop.f32.mrf.mxu2  ;;  %v5781_v33 = vor.u32 %v6455_v20, %v5778_v7  ;;  %v6451_v7 = vld [vmem:[%s8787_s4 + $0x70] sm:$0xff] }
 0x46c   : > { %v2754_v8 = vadd.f32 %v2753_v50, %v7948_v48  ;;  %v5773_v48 = vor.u32 %v6453_v40, %v5770_v45 }
 0x46d   : > { %v2875_v35 = vpop.f32.mrf.mxu1 }
 0x46e   : > { %v2763_v21 = vpack.c.bf16 %v2754_v8, %v2752_v11  ;;  %v2876_v23 = vadd.f32 %v2875_v35, %v2846_v10  ;;  %v6441_v10 = vld [vmem:[%s8786_s3 + $0xc4] sm:$0xf] }
 0x470   : > { %3289 = vmatmul.bf16.gmra.mxu1 %v5725_v62  ;;  %5620 = vmatmul.msk.bf16.gmra.mxu3 %vm2917_vm3, %v2763_v21  ;;  %v5702_v62 = vld [vmem:[%s8786_s3 + $0xc8] sm:$0xf0]  ;;  %v6457_v21 = vld [vmem:[%s8786_s3 + $0x124] sm:$0xf] }
 0x471   : > { %v5705_v35 = vor.u32 %v6441_v10, %v5702_v62  ;;  %v5726_v10 = vld [vmem:[%s8786_s3 + $0xf8] sm:$0xf0] }
 0x473   : > { %v2756_v44 = vpop.f32.mrf.mxu2 }
 0x474   : > { %v2757_v53 = vadd.f32 %v2756_v44, %v7965_v49  ;;  %v5637_v49 = vor.u32 %v6429_v63, %v5634_v3  ;;  %v5786_v44 = vld [vmem:[%s8786_s3 + $0x128] sm:$0xf0]  ;;  %v6459_v63 = vld [vmem:[%s8786_s3 + $0x134] sm:$0xf]  ;;  %v5794_v3 = vld [vmem:[%s8786_s3 + $0x138] sm:$0xf0] }
 0x475   : > { %v2877_v59 = vpop.f32.mrf.mxu1 }
 0x476   : > { %v2878_v54 = vadd.f32 %v2877_v59, %v2848_v26  ;;  %v5789_v26 = vor.u32 %v6457_v21, %v5786_v44 }
 0x478   : > { %v2883_v27 = vpack.c.bf16 %v2878_v54, %v2876_v23  ;;  %v6443_v23 = vld [vmem:[%s8786_s3 + $0xd4] sm:$0xf]  ;;  %v5710_v54 = vld [vmem:[%s8786_s3 + $0xd8] sm:$0xf0] }
 0x47a   : > { %5601 = vmatmul.msk.bf16.gmra.mxu2 %vm2917_vm3, %v2883_v27 }
 0x47b   : > { %v2758_v58 = vpop.f32.mrf.mxu2 }
 0x47c   : > { %v2759_v25 = vadd.f32 %v2758_v58, %v7970_v1 }
 0x47d   : > { %v8034_v16 = vpop.f32.mrf.mxu1 }
 0x47e   : > { %v2764_v37 = vpack.c.bf16 %v2759_v25, %v2757_v53 }
 0x480   : > { %3496 = vmatmul.bf16.vlgmr.msra.gmra.mxu1 %v5773_v48  ;;  %5621 = vmatmul.msk.bf16.gmra.mxu3 %vm2917_vm3, %v2764_v37  ;;  %v5713_v48 = vor.u32 %v6443_v23, %v5710_v54  ;;  %v6440_v37 = vld [vmem:[%s8787_s4 + $0x58] sm:$0xff]  ;;  %v3468_v23 = vpop.f32.mrf.mxu0 }
 0x481   : > { %4038 = vmatpush.bf16.msra.mxu1 %v7624_v57  ;;  %3184 = vmatpush.bf16.msra.mxu3 %v6440_v37 }
 0x485   : > { %4039 = vmatpush.bf16.msra.mxu1 %v7614_v47  ;;  %v8047_v22 = vpop.f32.mrf.mxu1  ;;  %3185 = vmatpush.bf16.msra.mxu3 %v6439_v19 }
 0x488   : > { %v3470_v37 = vpop.f32.mrf.mxu0 }
 0x489   : > { %4040 = vmatpush.bf16.msra.mxu1 %v7593_v5 }
 0x48a   : > { %3110 = vmatmul.bf16.vlgmr.msra.gmra.mxu2 %v5637_v49  ;;  %v5797_v49 = vor.u32 %v6459_v63, %v5794_v3 }
 0x48b   : > { %3570 = vmatpush.bf16.msra.mxu2 %v6464_v61 }
 0x48d   : > { %4041 = vmatpush.bf16.msra.mxu1 %v7579_v9  ;;  %v8051_v1 = vpop.f32.mrf.mxu1 }
 0x48f   : > { %3571 = vmatpush.bf16.msra.mxu2 %v6463_v36 }
 0x490   : > { %3501 = vmatmul.bf16.gmra.mxu1 %v5781_v33  ;;  %v6447_v33 = vld [vmem:[%s8786_s3 + $0xf4] sm:$0xf] }
 0x491   : > { %4042 = vmatpush.bf16.msra.mxu1 %v7565_v12 }
 0x493   : > { %3572 = vmatpush.bf16.msra.mxu2 %v6462_v30 }
 0x495   : > { %4043 = vmatpush.bf16.msra.mxu1 %v7555_v51  ;;  %v8061_v42 = vpop.f32.mrf.mxu1 }
 0x497   : > { %3573 = vmatpush.bf16.msra.mxu2 %v6461_v43 }
 0x499   : > { %4044 = vmatpush.bf16.msra.mxu1 %v7547_v4 }
 0x49a   : > { %3115 = vmatmul.bf16.gmra.mxu2 %v5645_v18  ;;  %v5718_v18 = vld [vmem:[%s8786_s3 + $0xe8] sm:$0xf0] }
 0x49b   : > { %v5721_v30 = vor.u32 %v6445_v34, %v5718_v18 }
 0x49d   : > { %4045 = vmatpush.bf16.msra.mxu1 %v7539_v38  ;;  %v8068_v46 = vpop.f32.mrf.mxu1 }
 0x4a0   : > { %3506 = vmatmul.bf16.gmra.mxu1 %v5789_v26  ;;  %v5729_v26 = vor.u32 %v6447_v33, %v5726_v10 }
 0x4a5   : > { %v8082_v29 = vpop.f32.mrf.mxu1 }
 0x4aa   : > { %3120 = vmatmul.bf16.gmra.mxu2 %v5653_v0  ;;  %v6438_v0 = vld [vmem:[%s8787_s4 + $0x48] sm:$0xff] }
 0x4ab   : > { %3186 = vmatpush.bf16.msra.mxu3 %v6438_v0 }
 0x4ad   : > { %v8087_v39 = vpop.f32.mrf.mxu1 }
 0x4af   : > { %3187 = vmatpush.bf16.msra.mxu3 %v6437_v24 }
 0x4b0   : > { %3511 = vmatmul.bf16.gmra.mxu1 %v5797_v49 }
 0x4b3   : > { %3377 = vmatpush.bf16.msrb.mxu3 %v6452_v55 }
 0x4b5   : > { %v8095_v13 = vpop.f32.mrf.mxu1 }
 0x4b7   : > { %3378 = vmatpush.bf16.msrb.mxu3 %v6451_v7 }
 0x4ba   : > { %3125 = vmatmul.bf16.gmra.mxu2 %v5661_v6 }
 0x4bd   : > { %v8097_v17 = vpop.f32.mrf.mxu1 }
 0x4c5   : > { %v8111_v50 = vpop.f32.mrf.mxu1 }
 0x4ca   : > { %3303 = vmatmul.bf16.vlgmr.msrb.gmra.mxu2 %v5705_v35  ;;  %v6450_v35 = vld [vmem:[%s8787_s4 + $0x68] sm:$0xff] }
 0x4cb   : > { %3845 = vmatpush.bf16.msrb.mxu2 %v7624_v57  ;;  %3379 = vmatpush.bf16.msrb.mxu3 %v6450_v35 }
 0x4cd   : > { %v2939_v11 = vpop.f32.mrf.mxu2  ;;  %v8114_v8 = vpop.f32.mrf.mxu1 }
 0x4cf   : > { %3846 = vmatpush.bf16.msrb.mxu2 %v7614_v47 }
 0x4d3   : > { %v3004_v59 = vpop.f32.mrf.mxu3  ;;  %3847 = vmatpush.bf16.msrb.mxu2 %v7593_v5 }
 0x4d4   : > { %v8130_v27 = vadd.f32 %v3004_v59, %v2939_v11  ;;  %v6449_v59 = vld [vmem:[%s8787_s4 + $0x60] sm:$0xff] }
 0x4d5   : > { %v8132_v40 = vpop.f32.mrf.mxu2  ;;  %v8134_v45 = vpop.f32.mrf.mxu1  ;;  %3380 = vmatpush.bf16.msrb.mxu3 %v6449_v59 }
 0x4d7   : > { %3848 = vmatpush.bf16.msrb.mxu2 %v7579_v9 }
 0x4da   : > { %3308 = vmatmul.bf16.gmra.mxu2 %v5713_v48 }
 0x4db   : > { %v8137_v58 = vpop.f32.mrf.mxu3  ;;  %3849 = vmatpush.bf16.msrb.mxu2 %v7565_v12 }
 0x4dd   : > { %v2944_v53 = vpop.f32.mrf.mxu2  ;;  %v8140_v25 = vpop.f32.mrf.mxu1 }
 0x4df   : > { %3850 = vmatpush.bf16.msrb.mxu2 %v7555_v51 }
 0x4e3   : > { %3851 = vmatpush.bf16.msrb.mxu2 %v7547_v4  ;;  %v3009_v61 = vpop.f32.mrf.mxu3 }
 0x4e4   : > { %v8162_v36 = vadd.f32 %v3009_v61, %v2944_v53 }
 0x4e5   : > { %v8164_v60 = vpop.f32.mrf.mxu2  ;;  %v8166_v32 = vpop.f32.mrf.mxu1 }
 0x4e7   : > { %3852 = vmatpush.bf16.msrb.mxu2 %v7539_v38 }
 0x4ea   : > { %3313 = vmatmul.bf16.gmra.mxu2 %v5721_v30 }
 0x4eb   : > { %v8172_v43 = vpop.f32.mrf.mxu3 }
 0x4ed   : > { %v2949_v6 = vpop.f32.mrf.mxu2  ;;  %v8180_v20 = vpop.f32.mrf.mxu1 }
 0x4f3   : > { %v3014_v62 = vpop.f32.mrf.mxu3 }
 0x4f4   : > { %v8198_v44 = vadd.f32 %v3014_v62, %v2949_v6  ;;  %v3473_v62 = vpop.f32.mrf.mxu0 }
 0x4f5   : > { %v8194_v11 = vpop.f32.mrf.mxu2  ;;  %v8196_v21 = vpop.f32.mrf.mxu1 }
 0x4fa   : > { %3318 = vmatmul.bf16.gmra.mxu2 %v5729_v26 }
 0x4fb   : > { %v8203_v54 = vpop.f32.mrf.mxu3 }
 0x4fd   : > { %v2954_v48 = vpop.f32.mrf.mxu2  ;;  %v3497_v53 = vpop.f32.mrf.mxu1 }
 0x4fe   : > { %v3498_v63 = vadd.f32 %v3497_v53, %v3468_v23  ;;  %v3475_v23 = vpop.f32.mrf.mxu0 }
 0x503   : > { %v3019_v3 = vpop.f32.mrf.mxu3 }
 0x504   : > { %v8207_v34 = vadd.f32 %v3019_v3, %v2954_v48 }
 0x505   : > { %v8205_v49 = vpop.f32.mrf.mxu2  ;;  %v3499_v19 = vpop.f32.mrf.mxu1 }
 0x506   : > { %v3500_v18 = vadd.f32 %v3499_v19, %v3470_v37  ;;  %v3478_v53 = vpop.f32.mrf.mxu0 }
 0x508   : > { %v3517_v61 = vpack.c.bf16 %v3500_v18, %v3498_v63 }
 0x50a   : > { %5822 = vmatmul.msk.bf16.vlgmr.msra.gmra.mxu2 %vm2917_vm3, %v3517_v61 }
 0x50b   : > { %4067 = vmatpush.bf16.msra.mxu2 %v7760_v52 }
 0x50d   : > { %v3111_v30 = vpop.f32.mrf.mxu2  ;;  %v3502_v35 = vpop.f32.mrf.mxu1 }
 0x50e   : > { %v3112_v24 = vadd.f32 %v3111_v30, %v8034_v16  ;;  %v3503_v59 = vadd.f32 %v3502_v35, %v3473_v62  ;;  %v3480_v18 = vpop.f32.mrf.mxu0 }
 0x50f   : > { %4068 = vmatpush.bf16.msra.mxu2 %v7744_v15 }
 0x513   : > { %4069 = vmatpush.bf16.msra.mxu2 %v7726_v41 }
 0x515   : > { %v3113_v0 = vpop.f32.mrf.mxu2  ;;  %v3504_v48 = vpop.f32.mrf.mxu1 }
 0x516   : > { %v3114_v55 = vadd.f32 %v3113_v0, %v8047_v22 }
 0x517   : > { %4070 = vmatpush.bf16.msra.mxu2 %v7708_v56 }
 0x518   : > { %v3131_v6 = vpack.c.bf16 %v3114_v55, %v3112_v24  ;;  %v3483_v55 = vpop.f32.mrf.mxu0 }
 0x51a   : > { %5686 = vmatmul.msk.bf16.vlgmr.msra.gmra.mxu3 %vm2917_vm3, %v3131_v6 }
 0x51b   : > { %3652 = vmatpush.bf16.msra.mxu3 %v7624_v57  ;;  %4071 = vmatpush.bf16.msra.mxu2 %v7689_v14 }
 0x51d   : > { %v3116_v7 = vpop.f32.mrf.mxu2  ;;  %v3507_v37 = vpop.f32.mrf.mxu1 }
 0x51e   : > { %v3117_v22 = vadd.f32 %v3116_v7, %v8051_v1  ;;  %v3508_v19 = vadd.f32 %v3507_v37, %v3478_v53  ;;  %v5844_v53 = vld [vmem:[%s8786_s3 + $0x150] sm:$0xf]  ;;  %v6468_v37 = vld [vmem:[%s8786_s3 + $0x154] sm:$0xf0] }
 0x51f   : > { %3653 = vmatpush.bf16.msra.mxu3 %v7614_v47  ;;  %4072 = vmatpush.bf16.msra.mxu2 %v7675_v28 }
 0x523   : > { %3654 = vmatpush.bf16.msra.mxu3 %v7593_v5  ;;  %4073 = vmatpush.bf16.msra.mxu2 %v7666_v31 }
 0x525   : > { %v3118_v16 = vpop.f32.mrf.mxu2  ;;  %v3509_v61 = vpop.f32.mrf.mxu1 }
 0x526   : > { %v3119_v33 = vadd.f32 %v3118_v16, %v8061_v42  ;;  %v3510_v30 = vadd.f32 %v3509_v61, %v3480_v18 }
 0x527   : > { %3655 = vmatpush.bf16.msra.mxu3 %v7579_v9  ;;  %4074 = vmatpush.bf16.msra.mxu2 %v7645_v2 }
 0x528   : > { %v3132_v57 = vpack.c.bf16 %v3119_v33, %v3117_v22  ;;  %v3519_v0 = vpack.c.bf16 %v3510_v30, %v3508_v19  ;;  %v3485_v33 = vpop.f32.mrf.mxu0  ;;  %v5845_v19 = vor.u32 %v6468_v37, %v5844_v53 }
 0x52a   : > { %5687 = vmatmul.msk.bf16.gmra.mxu3 %vm2917_vm3, %v3132_v57 }
 0x52b   : > { %3656 = vmatpush.bf16.msra.mxu3 %v7565_v12 }
 0x52d   : > { %v3121_v47 = vpop.f32.mrf.mxu2  ;;  %v3512_v6 = vpop.f32.mrf.mxu1 }
 0x52e   : > { %v3122_v10 = vadd.f32 %v3121_v47, %v8068_v46  ;;  %v3505_v46 = vadd.f32 %v3504_v48, %v3475_v23  ;;  %v3513_v16 = vadd.f32 %v3512_v6, %v3483_v55  ;;  %v6469_v23 = vld [vmem:[%s8786_s3 + $0x164] sm:$0xf]  ;;  %v5854_v48 = vld [vmem:[%s8786_s3 + $0x168] sm:$0xf0]  ;;  %v6470_v55 = vld [vmem:[%s8786_s3 + $0x164] sm:$0xf0] }
 0x52f   : > { %3657 = vmatpush.bf16.msra.mxu3 %v7555_v51 }
 0x533   : > { %3658 = vmatpush.bf16.msra.mxu3 %v7547_v4 }
 0x535   : > { %v3123_v5 = vpop.f32.mrf.mxu2  ;;  %v3514_v57 = vpop.f32.mrf.mxu1 }
 0x536   : > { %v3124_v1 = vadd.f32 %v3123_v5, %v8082_v29  ;;  %v3518_v29 = vpack.c.bf16 %v3505_v46, %v3503_v59  ;;  %v3515_v47 = vadd.f32 %v3514_v57, %v3485_v33  ;;  %v5836_v59 = vld [vmem:[%s8786_s3 + $0x140] sm:$0xf]  ;;  %v5857_v46 = vor.u32 %v6469_v23, %v5854_v48  ;;  %v5860_v33 = vld [vmem:[%s8786_s3 + $0x170] sm:$0xf]  ;;  %v6472_v57 = vld [vmem:[%s8786_s3 + $0x174] sm:$0xf0] }
 0x537   : > { %3659 = vmatpush.bf16.msra.mxu3 %v7539_v38  ;;  %v5914_v23 = vld [vmem:[%s8786_s3 + $0x198] sm:$0xf0] }
 0x538   : > { %v3133_v9 = vpack.c.bf16 %v3124_v1, %v3122_v10  ;;  %5823 = vmatmul.msk.bf16.gmra.mxu2 %vm2917_vm3, %v3518_v29  ;;  %v3520_v5 = vpack.c.bf16 %v3515_v47, %v3513_v16  ;;  %v6480_v16 = vld [vmem:[%s8786_s3 + $0x194] sm:$0xf0] }
 0x53a   : > { %5688 = vmatmul.msk.bf16.gmra.mxu3 %vm2917_vm3, %v3133_v9 }
 0x53d   : > { %v3126_v42 = vpop.f32.mrf.mxu2 }
 0x53e   : > { %v3127_v12 = vadd.f32 %v3126_v42, %v8087_v39 }
 0x545   : > { %v3128_v26 = vpop.f32.mrf.mxu2 }
 0x546   : > { %v3129_v51 = vadd.f32 %v3128_v26, %v8095_v13 }
 0x548   : > { %v3134_v4 = vpack.c.bf16 %v3129_v51, %v3127_v12  ;;  %5824 = vmatmul.msk.bf16.gmra.mxu2 %vm2917_vm3, %v3519_v0  ;;  %v6467_v12 = vld [vmem:[%s8786_s3 + $0x154] sm:$0xf] }
 0x54a   : > { %5689 = vmatmul.msk.bf16.gmra.mxu3 %vm2917_vm3, %v3134_v4 }
 0x54d   : > { %v3304_v38 = vpop.f32.mrf.mxu2 }
 0x54e   : > { %v3305_v3 = vadd.f32 %v3304_v38, %v8097_v17 }
 0x555   : > { %v3306_v63 = vpop.f32.mrf.mxu2 }
 0x556   : > { %v3307_v39 = vadd.f32 %v3306_v63, %v8111_v50  ;;  %v3007_v63 = vadd.f32 %v8137_v58, %v8132_v40  ;;  %v5904_v40 = vld [vmem:[%s8786_s3 + $0x180] sm:$0xf]  ;;  %v6478_v58 = vld [vmem:[%s8786_s3 + $0x184] sm:$0xf0] }
 0x557   : > { %v5905_v0 = vor.u32 %v6478_v58, %v5904_v40 }
 0x558   : > { %v3324_v13 = vpack.c.bf16 %v3307_v39, %v3305_v3  ;;  %5825 = vmatmul.msk.bf16.gmra.mxu2 %vm2917_vm3, %v3520_v5 }
 0x55a   : > { %5754 = vmatmul.msk.bf16.vlgmr.msrb.gmra.mxu3 %vm2917_vm3, %v3324_v13  ;;  %v6471_v13 = vld [vmem:[%s8786_s3 + $0x174] sm:$0xf] }
 0x55b   : > { %3874 = vmatpush.bf16.msrb.mxu3 %v7760_v52 }
 0x55d   : > { %v3309_v24 = vpop.f32.mrf.mxu2 }
 0x55e   : > { %v3310_v50 = vadd.f32 %v3309_v24, %v8114_v8  ;;  %v5852_v24 = vld [vmem:[%s8786_s3 + $0x160] sm:$0xf] }
 0x55f   : > { %3875 = vmatpush.bf16.msrb.mxu3 %v7744_v15 }
 0x563   : > { %3876 = vmatpush.bf16.msrb.mxu3 %v7726_v41 }
 0x565   : > { %v3311_v17 = vpop.f32.mrf.mxu2 }
 0x566   : > { %v3312_v7 = vadd.f32 %v3311_v17, %v8134_v45 }
 0x567   : > { %3877 = vmatpush.bf16.msrb.mxu3 %v7708_v56 }
 0x568   : > { %v3325_v22 = vpack.c.bf16 %v3312_v7, %v3310_v50  ;;  %3853 = vmatmul.bf16.vlgmr.msrb.gmra.mxu2 %v5905_v0  ;;  %v5912_v7 = vld [vmem:[%s8786_s3 + $0x190] sm:$0xf]  ;;  %v6483_v0 = vld [vmem:[%s8786_s3 + $0x1b4] sm:$0xf] }
 0x56a   : > { %5755 = vmatmul.msk.bf16.gmra.mxu3 %vm2917_vm3, %v3325_v22  ;;  %v5913_v22 = vor.u32 %v6480_v16, %v5912_v7 }
 0x56b   : > { %3878 = vmatpush.bf16.msrb.mxu3 %v7689_v14 }
 0x56d   : > { %v3314_v10 = vpop.f32.mrf.mxu2 }
 0x56e   : > { %v3315_v45 = vadd.f32 %v3314_v10, %v8140_v25  ;;  %v5846_v25 = vld [vmem:[%s8786_s3 + $0x158] sm:$0xf0] }
 0x56f   : > { %3879 = vmatpush.bf16.msrb.mxu3 %v7675_v28  ;;  %v5849_v51 = vor.u32 %v6467_v12, %v5846_v25 }
 0x571   : > { %3694 = vmatmul.bf16.gmra.mxu0 %v5849_v51  ;;  %v5928_v51 = vld [vmem:[%s8786_s3 + $0x1b0] sm:$0xf] }
 0x573   : > { %3880 = vmatpush.bf16.msrb.mxu3 %v7666_v31 }
 0x575   : > { %v3316_v8 = vpop.f32.mrf.mxu2 }
 0x576   : > { %v3317_v1 = vadd.f32 %v3316_v8, %v8166_v32  ;;  %v5920_v8 = vld [vmem:[%s8786_s3 + $0x1a0] sm:$0xf] }
 0x577   : > { %3881 = vmatpush.bf16.msrb.mxu3 %v7645_v2 }
 0x578   : > { %v3326_v9 = vpack.c.bf16 %v3317_v1, %v3315_v45  ;;  %3858 = vmatmul.bf16.gmra.mxu2 %v5913_v22  ;;  %v6482_v45 = vld [vmem:[%s8786_s3 + $0x1a4] sm:$0xf0] }
 0x57a   : > { %5756 = vmatmul.msk.bf16.gmra.mxu3 %vm2917_vm3, %v3326_v9  ;;  %v5921_v9 = vor.u32 %v6482_v45, %v5920_v8 }
 0x57d   : > { %v3319_v42 = vpop.f32.mrf.mxu2 }
 0x57e   : > { %v3320_v35 = vadd.f32 %v3319_v42, %v8180_v20  ;;  %v6466_v20 = vld [vmem:[%s8786_s3 + $0x144] sm:$0xf0]  ;;  %v6477_v42 = vld [vmem:[%s8786_s3 + $0x184] sm:$0xf] }
 0x57f   : > { %v5837_v4 = vor.u32 %v6466_v20, %v5836_v59  ;;  %v6484_v59 = vld [vmem:[%s8786_s3 + $0x1b4] sm:$0xf0] }
 0x580   : > { %v5929_v20 = vor.u32 %v6484_v59, %v5928_v51 }
 0x581   : > { %3699 = vmatmul.bf16.gmra.mxu0 %v5857_v46 }
 0x585   : > { %v3321_v62 = vpop.f32.mrf.mxu2 }
 0x586   : > { %v3322_v26 = vadd.f32 %v3321_v62, %v8196_v21  ;;  %v8273_v21 = vpop.f32.mrf.mxu3  ;;  %v5906_v62 = vld [vmem:[%s8786_s3 + $0x188] sm:$0xf0] }
 0x588   : > { %v3327_v32 = vpack.c.bf16 %v3322_v26, %v3320_v35  ;;  %3863 = vmatmul.bf16.gmra.mxu2 %v5921_v9  ;;  %v5909_v35 = vor.u32 %v6477_v42, %v5906_v62 }
 0x58a   : > { %5757 = vmatmul.msk.bf16.gmra.mxu3 %vm2917_vm3, %v3327_v32 }
 0x58d   : > { %v3575_v1 = vpop.f32.mrf.mxu2 }
 0x595   : > { %v8343_v26 = vpop.f32.mrf.mxu2 }
 0x598   : > { %3868 = vmatmul.bf16.gmra.mxu2 %v5929_v20 }
 0x59a   : > { %3660 = vmatmul.bf16.vlgmr.msra.gmra.mxu3 %v5837_v4  ;;  %v6479_v4 = vld [vmem:[%s8786_s3 + $0x194] sm:$0xf] }
 0x59d   : > { %v3189_v29 = vpop.f32.mrf.mxu3 }
 0x59e   : > { %v3209_v38 = vadd.f32 %v3189_v29, %v8130_v27  ;;  %v5862_v27 = vld [vmem:[%s8786_s3 + $0x178] sm:$0xf0]  ;;  %v5917_v29 = vor.u32 %v6479_v4, %v5914_v23 }
 0x59f   : > { %v5865_v18 = vor.u32 %v6471_v13, %v5862_v27 }
 0x5a1   : > { %3704 = vmatmul.bf16.gmra.mxu0 %v5865_v18 }
 0x5a5   : > { %v3191_v3 = vpop.f32.mrf.mxu3 }
 0x5a6   : > { %v8290_v39 = vadd.f32 %v3191_v3, %v3007_v63  ;;  %v6481_v3 = vld [vmem:[%s8786_s3 + $0x1a4] sm:$0xf] }
 0x5aa   : > { %3665 = vmatmul.bf16.gmra.mxu3 %v5845_v19  ;;  %v5922_v19 = vld [vmem:[%s8786_s3 + $0x1a8] sm:$0xf0] }
 0x5ab   : > { %v5925_v27 = vor.u32 %v6481_v3, %v5922_v19 }
 0x5ad   : > { %v3194_v61 = vpop.f32.mrf.mxu3 }
 0x5ae   : > { %v3211_v30 = vadd.f32 %v3194_v61, %v8162_v36  ;;  %v5853_v36 = vor.u32 %v6470_v55, %v5852_v24  ;;  %v5930_v24 = vld [vmem:[%s8786_s3 + $0x1b8] sm:$0xf0] }
 0x5b5   : > { %v8311_v6 = vpop.f32.mrf.mxu3 }
 0x5ba   : > { %3670 = vmatmul.bf16.gmra.mxu3 %v5853_v36  ;;  %v5933_v36 = vor.u32 %v6483_v0, %v5930_v24  ;;  %v6493_v24 = vld [vmem:[%s8786_s3 + $0x1e4] sm:$0xf] }
 0x5bb   : > { %v3580_v46 = vpop.f32.mrf.mxu2 }
 0x5bd   : > { %v3199_v17 = vpop.f32.mrf.mxu3 }
 0x5be   : > { %v3213_v50 = vadd.f32 %v3199_v17, %v8198_v44  ;;  %v5861_v44 = vor.u32 %v6472_v57, %v5860_v33 }
 0x5c3   : > { %v8361_v37 = vpop.f32.mrf.mxu2 }
 0x5c5   : > { %v8326_v47 = vpop.f32.mrf.mxu3 }
 0x5ca   : > { %3675 = vmatmul.bf16.gmra.mxu3 %v5861_v44 }
 0x5cb   : > { %v3585_v18 = vpop.f32.mrf.mxu2 }
 0x5cd   : > { %v3204_v5 = vpop.f32.mrf.mxu3 }
 0x5ce   : > { %v3215_v10 = vadd.f32 %v3204_v5, %v8207_v34 }
 0x5d3   : > { %v8375_v58 = vpop.f32.mrf.mxu2 }
 0x5d5   : > { %v8341_v34 = vpop.f32.mrf.mxu3 }
 0x5da   : > { %3882 = vmatmul.bf16.vlgmr.msrb.gmra.mxu3 %v5909_v35 }
 0x5db   : > { %v3590_v7 = vpop.f32.mrf.mxu2 }
 0x5dd   : > { %v3382_v12 = vpop.f32.mrf.mxu3 }
 0x5de   : > { %v3402_v25 = vadd.f32 %v3382_v12, %v3209_v38 }
 0x5e0   : > { %v8345_v32 = vadd.f32 %v3575_v1, %v3402_v25 }
 0x5e5   : > { %v8359_v48 = vpop.f32.mrf.mxu3 }
 0x5ea   : > { %3887 = vmatmul.bf16.gmra.mxu3 %v5917_v29 }
 0x5ed   : > { %v3387_v38 = vpop.f32.mrf.mxu3 }
 0x5ee   : > { %v3404_v53 = vadd.f32 %v3387_v38, %v3211_v30 }
 0x5f0   : > { %v8363_v63 = vadd.f32 %v3580_v46, %v3404_v53 }
 0x5f5   : > { %v8371_v13 = vpop.f32.mrf.mxu3 }
 0x5fa   : > { %3892 = vmatmul.bf16.gmra.mxu3 %v5925_v27 }
 0x5fd   : > { %v3392_v61 = vpop.f32.mrf.mxu3 }
 0x5fe   : > { %v3406_v40 = vadd.f32 %v3392_v61, %v3213_v50  ;;  %v3690_v50 = vpop.f32.mrf.mxu0 }
 0x600   : > { %v8373_v30 = vadd.f32 %v3585_v18, %v3406_v40 }
 0x605   : > { %v8383_v55 = vpop.f32.mrf.mxu3 }
 0x606   : > { %v3692_v57 = vpop.f32.mrf.mxu0 }
 0x60a   : > { %3897 = vmatmul.bf16.gmra.mxu3 %v5933_v36  ;;  %v5990_v36 = vld [vmem:[%s8786_s3 + $0x1e8] sm:$0xf0] }
 0x60d   : > { %v3397_v17 = vpop.f32.mrf.mxu3 }
 0x60e   : > { %v3408_v16 = vadd.f32 %v3397_v17, %v3215_v10  ;;  %v3695_v5 = vpop.f32.mrf.mxu0  ;;  %v5993_v17 = vor.u32 %v6493_v24, %v5990_v36  ;;  %v6040_v36 = vld [vmem:[%s8786_s3 + $0x200] sm:$0xf] }
 0x610   : > { %v8385_v22 = vadd.f32 %v3590_v7, %v3408_v16  ;;  %v5972_v7 = vld [vmem:[%s8786_s3 + $0x1c0] sm:$0xf]  ;;  %v6490_v16 = vld [vmem:[%s8786_s3 + $0x1c4] sm:$0xf0] }
 0x615   : > { %v8387_v33 = vpop.f32.mrf.mxu3 }
 0x616   : > { %v3697_v62 = vpop.f32.mrf.mxu0 }
 0x61d   : > { %v3661_v44 = vpop.f32.mrf.mxu3 }
 0x61e   : > { %v3691_v45 = vadd.f32 %v3690_v50, %v3661_v44  ;;  %v3700_v25 = vpop.f32.mrf.mxu0 }
 0x625   : > { %v3663_v8 = vpop.f32.mrf.mxu3 }
 0x626   : > { %v3693_v1 = vadd.f32 %v3692_v57, %v3663_v8  ;;  %v3702_v20 = vpop.f32.mrf.mxu0  ;;  %v5973_v8 = vor.u32 %v6490_v16, %v5972_v7  ;;  %v6501_v7 = vld [vmem:[%s8786_s3 + $0x204] sm:$0xf]  ;;  %v6042_v16 = vld [vmem:[%s8786_s3 + $0x208] sm:$0xf0] }
 0x628   : > { %v3710_v9 = vpack.c.bf16 %v3693_v1, %v3691_v45 }
 0x62a   : > { %5890 = vmatmul.msk.bf16.vlgmr.msrb.gmra.mxu1 %vm2917_vm3, %v3710_v9 }
 0x62b   : > { %4260 = vmatpush.bf16.msrb.mxu1 %v7760_v52  ;;  %v6489_v52 = vld [vmem:[%s8786_s3 + $0x1c4] sm:$0xf] }
 0x62d   : > { %v3666_v42 = vpop.f32.mrf.mxu3 }
 0x62e   : > { %v3696_v35 = vadd.f32 %v3695_v5, %v3666_v42  ;;  %v3705_v29 = vpop.f32.mrf.mxu0  ;;  %v6495_v42 = vld [vmem:[%s8786_s3 + $0x1f4] sm:$0xf] }
 0x62f   : > { %4261 = vmatpush.bf16.msrb.mxu1 %v7744_v15 }
 0x633   : > { %4262 = vmatpush.bf16.msrb.mxu1 %v7726_v41  ;;  %v5974_v41 = vld [vmem:[%s8786_s3 + $0x1c8] sm:$0xf0] }
 0x634   : > { %v5977_v15 = vor.u32 %v6489_v52, %v5974_v41 }
 0x635   : > { %v3668_v10 = vpop.f32.mrf.mxu3 }
 0x636   : > { %v3698_v12 = vadd.f32 %v3697_v62, %v3668_v10  ;;  %4075 = vmatmul.bf16.vlgmr.msra.gmra.mxu2 %v5977_v15  ;;  %v3707_v27 = vpop.f32.mrf.mxu0  ;;  %v5998_v62 = vld [vmem:[%s8786_s3 + $0x1f8] sm:$0xf0] }
 0x637   : > { %4263 = vmatpush.bf16.msrb.mxu1 %v7708_v56  ;;  %v6001_v10 = vor.u32 %v6495_v42, %v5998_v62  ;;  %v6050_v42 = vld [vmem:[%s8786_s3 + $0x218] sm:$0xf0] }
 0x638   : > { %v3711_v51 = vpack.c.bf16 %v3698_v12, %v3696_v35  ;;  %v5980_v35 = vld [vmem:[%s8786_s3 + $0x1d0] sm:$0xf]  ;;  %v6492_v12 = vld [vmem:[%s8786_s3 + $0x1d4] sm:$0xf0] }
 0x639   : > { %v5981_v52 = vor.u32 %v6492_v12, %v5980_v35 }
 0x63a   : > { %5891 = vmatmul.msk.bf16.gmra.mxu1 %vm2917_vm3, %v3711_v51 }
 0x63b   : > { %4264 = vmatpush.bf16.msrb.mxu1 %v7689_v14  ;;  %v8404_v14 = vpop.f32.mrf.mxu2 }
 0x63d   : > { %v3671_v59 = vpop.f32.mrf.mxu3 }
 0x63e   : > { %v3701_v4 = vadd.f32 %v3700_v25, %v3671_v59 }
 0x63f   : > { %4265 = vmatpush.bf16.msrb.mxu1 %v7675_v28  ;;  %v6491_v28 = vld [vmem:[%s8786_s3 + $0x1d4] sm:$0xf] }
 0x643   : > { %4266 = vmatpush.bf16.msrb.mxu1 %v7666_v31  ;;  %v5982_v31 = vld [vmem:[%s8786_s3 + $0x1d8] sm:$0xf0]  ;;  %v3854_v53 = vpop.f32.mrf.mxu2 }
 0x644   : > { %v5985_v3 = vor.u32 %v6491_v28, %v5982_v31 }
 0x645   : > { %v3673_v56 = vpop.f32.mrf.mxu3 }
 0x646   : > { %v3703_v23 = vadd.f32 %v3702_v20, %v3673_v56  ;;  %4080 = vmatmul.bf16.gmra.mxu2 %v5985_v3 }
 0x647   : > { %4267 = vmatpush.bf16.msrb.mxu1 %v7645_v2 }
 0x648   : > { %v3712_v46 = vpack.c.bf16 %v3703_v23, %v3701_v4  ;;  %v5988_v4 = vld [vmem:[%s8786_s3 + $0x1e0] sm:$0xf]  ;;  %v6494_v23 = vld [vmem:[%s8786_s3 + $0x1e4] sm:$0xf0] }
 0x649   : > { %v5989_v28 = vor.u32 %v6494_v23, %v5988_v4  ;;  %v6499_v4 = vld [vmem:[%s8787_s4 + $0xf0] sm:$0xff]  ;;  %v6498_v23 = vld [vmem:[%s8787_s4 + $0xe8] sm:$0xff] }
 0x64a   : > { %5892 = vmatmul.msk.bf16.gmra.mxu1 %vm2917_vm3, %v3712_v46 }
 0x64b   : > { %v3856_v40 = vpop.f32.mrf.mxu2 }
 0x64d   : > { %v3676_v38 = vpop.f32.mrf.mxu3 }
 0x64e   : > { %v3706_v18 = vadd.f32 %v3705_v29, %v3676_v38 }
 0x653   : > { %v3859_v50 = vpop.f32.mrf.mxu2 }
 0x655   : > { %v3678_v19 = vpop.f32.mrf.mxu3 }
 0x656   : > { %v3708_v2 = vadd.f32 %v3707_v27, %v3678_v19  ;;  %4085 = vmatmul.bf16.gmra.mxu2 %v5993_v17  ;;  %v5996_v19 = vld [vmem:[%s8786_s3 + $0x1f0] sm:$0xf]  ;;  %v6496_v27 = vld [vmem:[%s8786_s3 + $0x1f4] sm:$0xf0]  ;;  %v6502_v17 = vld [vmem:[%s8786_s3 + $0x204] sm:$0xf0] }
 0x658   : > { %v3713_v61 = vpack.c.bf16 %v3708_v2, %v3706_v18 }
 0x65a   : > { %5893 = vmatmul.msk.bf16.gmra.mxu1 %vm2917_vm3, %v3713_v61 }
 0x65b   : > { %v3861_v9 = vpop.f32.mrf.mxu2 }
 0x65d   : > { %v3883_v0 = vpop.f32.mrf.mxu3 }
 0x65e   : > { %v3884_v44 = vadd.f32 %v3883_v0, %v3854_v53  ;;  %v5997_v0 = vor.u32 %v6496_v27, %v5996_v19 }
 0x663   : > { %v3864_v41 = vpop.f32.mrf.mxu2 }
 0x665   : > { %v3885_v57 = vpop.f32.mrf.mxu3 }
 0x666   : > { %v3886_v5 = vadd.f32 %v3885_v57, %v3856_v40  ;;  %4090 = vmatmul.bf16.gmra.mxu2 %v6001_v10  ;;  %v6045_v57 = vor.u32 %v6501_v7, %v6042_v16 }
 0x668   : > { %v3903_v45 = vpack.c.bf16 %v3886_v5, %v3884_v44 }
 0x66a   : > { %5958 = vmatmul.msk.bf16.vlgmr.msrb.gmra.mxu0 %vm2917_vm3, %v3903_v45  ;;  %4046 = vmatmul.bf16.vlgmr.msra.gmra.mxu1 %v5973_v8  ;;  %v6048_v45 = vld [vmem:[%s8786_s3 + $0x210] sm:$0xf] }
 0x66b   : > { %v3866_v56 = vpop.f32.mrf.mxu2 }
 0x66d   : > { %v3888_v1 = vpop.f32.mrf.mxu3 }
 0x66e   : > { %v3889_v51 = vadd.f32 %v3888_v1, %v3859_v50  ;;  %v6041_v50 = vor.u32 %v6502_v17, %v6040_v36  ;;  %v6504_v1 = vld [vmem:[%s8786_s3 + $0x214] sm:$0xf0] }
 0x673   : > { %v3869_v53 = vpop.f32.mrf.mxu2 }
 0x675   : > { %v3890_v25 = vpop.f32.mrf.mxu3 }
 0x676   : > { %v3891_v59 = vadd.f32 %v3890_v25, %v3861_v9  ;;  %v6503_v9 = vld [vmem:[%s8786_s3 + $0x214] sm:$0xf]  ;;  %v6500_v25 = vld [vmem:[%s8787_s4 + $0xf8] sm:$0xff] }
 0x677   : > { %v6053_v62 = vor.u32 %v6503_v9, %v6050_v42  ;;  %4149 = vmatpush.bf16.msra.mxu3 %v6500_v25  ;;  %v3012_v9 = vadd.f32 %v8172_v43, %v8164_v60 }
 0x678   : > { %v3904_v15 = vpack.c.bf16 %v3891_v59, %v3889_v51  ;;  %v6056_v51 = vld [vmem:[%s8786_s3 + $0x220] sm:$0xf]  ;;  %v6506_v59 = vld [vmem:[%s8786_s3 + $0x224] sm:$0xf0] }
 0x67a   : > { %5959 = vmatmul.msk.bf16.gmra.mxu0 %vm2917_vm3, %v3904_v15  ;;  %4051 = vmatmul.bf16.gmra.mxu1 %v5981_v52  ;;  %v6058_v52 = vld [vmem:[%s8786_s3 + $0x228] sm:$0xf0] }
 0x67b   : > { %v3871_v18 = vpop.f32.mrf.mxu2  ;;  %4150 = vmatpush.bf16.msra.mxu3 %v6499_v4 }
 0x67d   : > { %v3893_v20 = vpop.f32.mrf.mxu3 }
 0x67e   : > { %v3894_v29 = vadd.f32 %v3893_v20, %v3864_v41  ;;  %v6057_v41 = vor.u32 %v6506_v59, %v6056_v51 }
 0x67f   : > { %4151 = vmatpush.bf16.msra.mxu3 %v6498_v23 }
 0x685   : > { %v3895_v46 = vpop.f32.mrf.mxu3 }
 0x686   : > { %v3896_v38 = vadd.f32 %v3895_v46, %v3866_v56 }
 0x688   : > { %v3905_v31 = vpack.c.bf16 %v3896_v38, %v3894_v29  ;;  %v6497_v29 = vld [vmem:[%s8787_s4 + $0xe0] sm:$0xff]  ;;  %v6508_v38 = vld [vmem:[%s8786_s3 + $0x234] sm:$0xf0] }
 0x689   : > { %4152 = vmatpush.bf16.msra.mxu3 %v6497_v29 }
 0x68a   : > { %5960 = vmatmul.msk.bf16.gmra.mxu0 %vm2917_vm3, %v3905_v31  ;;  %4056 = vmatmul.bf16.gmra.mxu1 %v5989_v28  ;;  %v6507_v28 = vld [vmem:[%s8786_s3 + $0x234] sm:$0xf]  ;;  %v6066_v31 = vld [vmem:[%s8786_s3 + $0x238] sm:$0xf0] }
 0x68d   : > { %v3898_v3 = vpop.f32.mrf.mxu3 }
 0x68e   : > { %v3899_v61 = vadd.f32 %v3898_v3, %v3869_v53  ;;  %v6069_v3 = vor.u32 %v6507_v28, %v6066_v31  ;;  %v3022_v31 = vadd.f32 %v8273_v21, %v8205_v49 }
 0x695   : > { %v3900_v2 = vpop.f32.mrf.mxu3 }
 0x696   : > { %v3901_v40 = vadd.f32 %v3900_v2, %v3871_v18 }
 0x698   : > { %v3906_v24 = vpack.c.bf16 %v3901_v40, %v3899_v61 }
 0x69a   : > { %5961 = vmatmul.msk.bf16.gmra.mxu0 %vm2917_vm3, %v3906_v24  ;;  %4061 = vmatmul.bf16.gmra.mxu1 %v5997_v0  ;;  %v3403_v24 = vadd.f32 %v8359_v48, %v8290_v39  ;;  %v3212_v39 = vadd.f32 %v8311_v6, %v3012_v9  ;;  %v3017_v6 = vadd.f32 %v8203_v54, %v8194_v11  ;;  %v6510_v54 = vld [vmem:[%s8787_s4 + $0x108] sm:$0xff] }
 0x69c   : > { %v3596_v7 = vadd.f32 %v8343_v26, %v3403_v24  ;;  %v3405_v26 = vadd.f32 %v8371_v13, %v3212_v39  ;;  %v6512_v13 = vld [vmem:[%s8787_s4 + $0x118] sm:$0xff] }
 0x69d   : > { %4342 = vmatpush.bf16.msrb.mxu2 %v6512_v13 }
 0x6a7   : > { %v3768_v44 = vpop.f32.mrf.mxu1 }
 0x6a8   : > { %v3788_v5 = vadd.f32 %v3768_v44, %v8345_v32  ;;  %v6049_v32 = vor.u32 %v6504_v1, %v6048_v45 }
 0x6aa   : > { %4239 = vmatmul.bf16.vlgmr.msra.gmra.mxu0 %v6041_v50  ;;  %4268 = vmatmul.bf16.vlgmr.msrb.gmra.mxu1 %v6045_v57 }
 0x6af   : > { %v3770_v8 = vpop.f32.mrf.mxu1 }
 0x6b0   : > { %v3789_v16 = vadd.f32 %v3770_v8, %v3596_v7 }
 0x6b7   : > { %v3773_v10 = vpop.f32.mrf.mxu1 }
 0x6b8   : > { %v3790_v35 = vadd.f32 %v3773_v10, %v8363_v63  ;;  %v6505_v63 = vld [vmem:[%s8786_s3 + $0x224] sm:$0xf] }
 0x6b9   : > { %v6061_v15 = vor.u32 %v6505_v63, %v6058_v52  ;;  %v4076_v19 = vpop.f32.mrf.mxu2 }
 0x6ba   : > { %4244 = vmatmul.bf16.gmra.mxu0 %v6049_v32  ;;  %4273 = vmatmul.bf16.gmra.mxu1 %v6053_v62  ;;  %v3598_v32 = vadd.f32 %v8361_v37, %v3405_v26  ;;  %v3214_v37 = vadd.f32 %v8326_v47, %v3017_v6 }
 0x6bc   : > { %v3407_v52 = vadd.f32 %v8383_v55, %v3214_v37 }
 0x6bf   : > { %v3775_v12 = vpop.f32.mrf.mxu1 }
 0x6c0   : > { %v3791_v62 = vadd.f32 %v3775_v12, %v3598_v32 }
 0x6c1   : > { %v4078_v61 = vpop.f32.mrf.mxu2 }
 0x6c7   : > { %v3778_v20 = vpop.f32.mrf.mxu1 }
 0x6c8   : > { %v3792_v56 = vadd.f32 %v3778_v20, %v8373_v30  ;;  %v6064_v30 = vld [vmem:[%s8786_s3 + $0x230] sm:$0xf]  ;;  %v3600_v20 = vadd.f32 %v8375_v58, %v3407_v52  ;;  %v3216_v58 = vadd.f32 %v8341_v34, %v3022_v31 }
 0x6c9   : > { %v6065_v53 = vor.u32 %v6508_v38, %v6064_v30  ;;  %v4081_v17 = vpop.f32.mrf.mxu2  ;;  %v6509_v30 = vld [vmem:[%s8787_s4 + $0x100] sm:$0xff] }
 0x6ca   : > { %4249 = vmatmul.bf16.gmra.mxu0 %v6057_v41  ;;  %4278 = vmatmul.bf16.gmra.mxu1 %v6061_v15  ;;  %v6511_v15 = vld [vmem:[%s8787_s4 + $0x110] sm:$0xff] }
 0x6cb   : > { %4343 = vmatpush.bf16.msrb.mxu2 %v6511_v15 }
 0x6cf   : > { %v3780_v46 = vpop.f32.mrf.mxu1  ;;  %4344 = vmatpush.bf16.msrb.mxu2 %v6510_v54 }
 0x6d0   : > { %v3793_v47 = vadd.f32 %v3780_v46, %v3600_v20  ;;  %v6568_v20 = vld [vmem:[%s8788_s5] ss:$0 sm:$0xff] }
 0x6d1   : > { %v4083_v42 = vpop.f32.mrf.mxu2 }
 0x6d3   : > { %4345 = vmatpush.bf16.msrb.mxu2 %v6509_v30 }
 0x6d7   : > { %v3783_v27 = vpop.f32.mrf.mxu1 }
 0x6d8   : > { %v8519_v18 = vadd.f32 %v3783_v27, %v8385_v22 }
 0x6d9   : > { %v4086_v10 = vpop.f32.mrf.mxu2 }
 0x6da   : > { %4254 = vmatmul.bf16.gmra.mxu0 %v6065_v53  ;;  %4283 = vmatmul.bf16.gmra.mxu1 %v6069_v3  ;;  %v3409_v3 = vadd.f32 %v8387_v33, %v3216_v58 }
 0x6dc   : > { %v3602_v27 = vadd.f32 %v8404_v14, %v3409_v3 }
 0x6df   : > { %v8521_v2 = vpop.f32.mrf.mxu1 }
 0x6e1   : > { %v4088_v11 = vpop.f32.mrf.mxu2 }
 0x6e7   : > { %v3961_v40 = vpop.f32.mrf.mxu0  ;;  %v4047_v0 = vpop.f32.mrf.mxu1 }
 0x6e8   : > { %v8525_v36 = vadd.f32 %v3961_v40, %v3788_v5  ;;  %v4077_v22 = vadd.f32 %v4076_v19, %v4047_v0  ;;  %v3795_v40 = vadd.f32 %v8521_v2, %v3602_v27 }
 0x6e9   : > { %v4091_v28 = vpop.f32.mrf.mxu2 }
 0x6ef   : > { %v3963_v50 = vpop.f32.mrf.mxu0  ;;  %v4049_v57 = vpop.f32.mrf.mxu1 }
 0x6f0   : > { %v8528_v44 = vadd.f32 %v3963_v50, %v3789_v16  ;;  %v4079_v45 = vadd.f32 %v4078_v61, %v4049_v57 }
 0x6f1   : > { %v4093_v61 = vpop.f32.mrf.mxu2 }
 0x6f2   : > { %v4096_v1 = vpack.c.bf16 %v4079_v45, %v4077_v22 }
 0x6f4   : > { %6026 = vmatmul.msk.bf16.vlgmr.msra.gmra.mxu3 %vm2917_vm3, %v4096_v1 }
 0x6f7   : > { %v3966_v48 = vpop.f32.mrf.mxu0  ;;  %v4052_v5 = vpop.f32.mrf.mxu1 }
 0x6f8   : > { %v8535_v8 = vadd.f32 %v3966_v48, %v3790_v35  ;;  %v4082_v59 = vadd.f32 %v4081_v17, %v4052_v5 }
 0x6ff   : > { %v3968_v25 = vpop.f32.mrf.mxu0  ;;  %v4054_v51 = vpop.f32.mrf.mxu1 }
 0x700   : > { %v8538_v63 = vadd.f32 %v3968_v25, %v3791_v62  ;;  %v4084_v60 = vadd.f32 %v4083_v42, %v4054_v51 }
 0x702   : > { %v4097_v43 = vpack.c.bf16 %v4084_v60, %v4082_v59 }
 0x704   : > { %6027 = vmatmul.msk.bf16.gmra.mxu3 %vm2917_vm3, %v4097_v43 }
 0x707   : > { %v3971_v35 = vpop.f32.mrf.mxu0  ;;  %v4057_v12 = vpop.f32.mrf.mxu1 }
 0x708   : > { %v8548_v41 = vadd.f32 %v3971_v35, %v3792_v56  ;;  %v4087_v29 = vadd.f32 %v4086_v10, %v4057_v12 }
 0x70f   : > { %v3973_v4 = vpop.f32.mrf.mxu0  ;;  %v4059_v23 = vpop.f32.mrf.mxu1 }
 0x710   : > { %v8557_v55 = vadd.f32 %v3973_v4, %v3793_v47  ;;  %v4089_v56 = vadd.f32 %v4088_v11, %v4059_v23 }
 0x712   : > { %v4098_v38 = vpack.c.bf16 %v4089_v56, %v4087_v29 }
 0x714   : > { %6028 = vmatmul.msk.bf16.gmra.mxu3 %vm2917_vm3, %v4098_v38 }
 0x717   : > { %v3976_v46 = vpop.f32.mrf.mxu0  ;;  %v4062_v53 = vpop.f32.mrf.mxu1 }
 0x718   : > { %v8568_v19 = vadd.f32 %v3976_v46, %v8519_v18  ;;  %v4092_v17 = vadd.f32 %v4091_v28, %v4062_v53 }
 0x71f   : > { %v3978_v0 = vpop.f32.mrf.mxu0  ;;  %v4064_v24 = vpop.f32.mrf.mxu1 }
 0x720   : > { %v8572_v49 = vadd.f32 %v3978_v0, %v3795_v40  ;;  %v4094_v21 = vadd.f32 %v4093_v61, %v4064_v24 }
 0x722   : > { %v4099_v7 = vpack.c.bf16 %v4094_v21, %v4092_v17 }
 0x724   : > { %6029 = vmatmul.msk.bf16.gmra.mxu3 %vm2917_vm3, %v4099_v7 }
 0x727   : > { %v4240_v34 = vpop.f32.mrf.mxu0  ;;  %v4269_v16 = vpop.f32.mrf.mxu1 }
 0x728   : > { %v4270_v18 = vadd.f32 %v4269_v16, %v4240_v34 }
 0x72f   : > { %v4242_v33 = vpop.f32.mrf.mxu0  ;;  %v4271_v50 = vpop.f32.mrf.mxu1 }
 0x730   : > { %v4272_v57 = vadd.f32 %v4271_v50, %v4242_v33 }
 0x732   : > { %v4289_v22 = vpack.c.bf16 %v4272_v57, %v4270_v18 }
 0x734   : > { %6094 = vmatmul.msk.bf16.vlgmr.msrb.gmra.mxu2 %vm2917_vm3, %v4289_v22 }
 0x737   : > { %v4245_v14 = vpop.f32.mrf.mxu0  ;;  %v4274_v2 = vpop.f32.mrf.mxu1 }
 0x738   : > { %v4275_v9 = vadd.f32 %v4274_v2, %v4245_v14 }
 0x73f   : > { %v4247_v45 = vpop.f32.mrf.mxu0  ;;  %v4276_v1 = vpop.f32.mrf.mxu1 }
 0x740   : > { %v4277_v42 = vadd.f32 %v4276_v1, %v4247_v45 }
 0x742   : > { %v4290_v39 = vpack.c.bf16 %v4277_v42, %v4275_v9 }
 0x744   : > { %6095 = vmatmul.msk.bf16.gmra.mxu2 %vm2917_vm3, %v4290_v39 }
 0x747   : > { %v4250_v48 = vpop.f32.mrf.mxu0  ;;  %v4279_v5 = vpop.f32.mrf.mxu1 }
 0x748   : > { %v4280_v62 = vadd.f32 %v4279_v5, %v4250_v48 }
 0x74f   : > { %v4252_v26 = vpop.f32.mrf.mxu0  ;;  %v4281_v32 = vpop.f32.mrf.mxu1 }
 0x750   : > { %v4282_v10 = vadd.f32 %v4281_v32, %v4252_v26 }
 0x752   : > { %v4291_v25 = vpack.c.bf16 %v4282_v10, %v4280_v62 }
 0x754   : > { %6096 = vmatmul.msk.bf16.gmra.mxu2 %vm2917_vm3, %v4291_v25 }
 0x757   : > { %v4255_v51 = vpop.f32.mrf.mxu0  ;;  %v4284_v59 = vpop.f32.mrf.mxu1 }
 0x758   : > { %v4285_v6 = vadd.f32 %v4284_v59, %v4255_v51 }
 0x75f   : > { %v4257_v60 = vpop.f32.mrf.mxu0  ;;  %v4286_v43 = vpop.f32.mrf.mxu1 }
 0x760   : > { %v4287_v13 = vadd.f32 %v4286_v43, %v4257_v60 }
 0x762   : > { %v4292_v37 = vpack.c.bf16 %v4287_v13, %v4285_v6 }
 0x764   : > { %6097 = vmatmul.msk.bf16.gmra.mxu2 %vm2917_vm3, %v4292_v37  ;;  %v6528_v37 = vld [vmem:[%s8789_s6 + $0x18] sm:$0xff] }
 0x777   : > { %v4154_v35 = vpop.f32.mrf.mxu3 }
 0x778   : > { %v4174_v12 = vadd.f32 %v4154_v35, %v8525_v36  ;;  %v6533_v35 = vld [vmem:[%s8789_s6 + $0x20] sm:$0xff] }
 0x77f   : > { %v4156_v52 = vpop.f32.mrf.mxu3 }
 0x780   : > { %v4175_v47 = vadd.f32 %v4156_v52, %v8528_v44  ;;  %v6538_v52 = vld [vmem:[%s8789_s6 + $0x28] sm:$0xff] }
 0x787   : > { %v4159_v54 = vpop.f32.mrf.mxu3 }
 0x788   : > { %v4176_v53 = vadd.f32 %v4159_v54, %v8535_v8  ;;  %v6553_v54 = vld [vmem:[%s8789_s6 + $0x40] sm:$0xff] }
 0x78f   : > { %v4161_v38 = vpop.f32.mrf.mxu3 }
 0x790   : > { %v4177_v44 = vadd.f32 %v4161_v38, %v8538_v63  ;;  %v6517_v38 = vld [vmem:[%s8790_s7 + $0x18] sm:$0xff] }
 0x797   : > { %v4164_v27 = vpop.f32.mrf.mxu3 }
 0x798   : > { %v4178_v8 = vadd.f32 %v4164_v27, %v8548_v41  ;;  %v6537_v27 = vld [vmem:[%s8790_s7 + $0x98] sm:$0xff] }
 0x79f   : > { %v4166_v16 = vpop.f32.mrf.mxu3 }
 0x7a0   : > { %v4179_v57 = vadd.f32 %v4166_v16, %v8557_v55 }
 0x7a7   : > { %v4169_v2 = vpop.f32.mrf.mxu3 }
 0x7a8   : > { %v4180_v26 = vadd.f32 %v4169_v2, %v8568_v19  ;;  %v6523_v19 = vld [vmem:[%s8789_s6 + $0x10] sm:$0xff]  ;;  %v6530_v2 = vld [vmem:[%s8790_s7 + $0x68] sm:$0xff] }
 0x7af   : > { %v4171_v41 = vpop.f32.mrf.mxu3 }
 0x7b0   : > { %v4181_v62 = vadd.f32 %v4171_v41, %v8572_v49  ;;  %v6513_v49 = vld [vmem:[%s8789_s6] sm:$0xff] }
 0x7b7   : > { %v4347_v15 = vpop.f32.mrf.mxu2 }
 0x7b8   : > { %v4367_v11 = vadd.f32 %v4347_v15, %v4174_v12  ;;  %v6518_v12 = vld [vmem:[%s8789_s6 + $0x8] sm:$0xff]  ;;  %v6543_v15 = vld [vmem:[%s8789_s6 + $0x30] sm:$0xff] }
 0x7ba   : > { %v4379_v4 = vadd.f32 %v6568_v20, %v4367_v11  ;;  %v6548_v11 = vld [vmem:[%s8789_s6 + $0x38] sm:$0xff] }
 0x7bc   : > { %v4395_v56 = vmul.f32 0.2, %v4379_v4  ;;  %vm4387_vm9 = vcmp.ge.f32.partialorder %v4379_v4, 0.0 }
 0x7be   : > { %v4403_v36 = vsel %vm4387_vm9, %v4379_v4, %v4395_v56  ;;  %v6520_v4 = vld [vmem:[%s8790_s7 + $0x28] sm:$0xff]  ;;  %v6526_v56 = vld [vmem:[%s8790_s7 + $0x50] sm:$0xff] }
 0x7bf   : > { %v4349_v23 = vpop.f32.mrf.mxu2 }
 0x7c0   : > { %v4368_v29 = vadd.f32 %v4349_v23, %v4175_v47  ;;  %v6521_v47 = vld [vmem:[%s8790_s7 + $0x30] sm:$0xff]  ;;  %v6527_v23 = vld [vmem:[%s8790_s7 + $0x58] sm:$0xff] }
 0x7c1   : > { %4631 = vmatpush.bf16.msra.mxu1 %v6527_v23 }
 0x7c2   : > { %v4380_v30 = vadd.f32 %v6568_v20, %v4368_v29  ;;  %v6519_v29 = vld [vmem:[%s8790_s7 + $0x20] sm:$0xff] }
 0x7c4   : > { %vm4388_vm10 = vcmp.ge.f32.partialorder %v4380_v30, 0.0  ;;  %v4396_v28 = vmul.f32 0.2, %v4380_v30 }
 0x7c5   : > { %4632 = vmatpush.bf16.msra.mxu1 %v6526_v56 }
 0x7c6   : > { %v4404_v31 = vsel %vm4388_vm10, %v4380_v30, %v4396_v28  ;;  %v6525_v28 = vld [vmem:[%s8790_s7 + $0x48] sm:$0xff] }
 0x7c7   : > { %v8584_v58 = vpack.c.bf16 %v4404_v31, %v4403_v36  ;;  %v4352_v46 = vpop.f32.mrf.mxu2  ;;  %v6516_v36 = vld [vmem:[%s8790_s7 + $0x10] sm:$0xff]  ;;  %v6524_v31 = vld [vmem:[%s8790_s7 + $0x40] sm:$0xff] }
 0x7c8   : > { %v4369_v3 = vadd.f32 %v4352_v46, %v4176_v53  ;;  %v6515_v46 = vld [vmem:[%s8790_s7 + $0x8] sm:$0xff] }
 0x7c9   : > { %4633 = vmatpush.bf16.msra.mxu1 %v6525_v28 }
 0x7ca   : > { %v4381_v61 = vadd.f32 %v6568_v20, %v4369_v3 }
 0x7cc   : > { %v4397_v24 = vmul.f32 0.2, %v4381_v61  ;;  %vm4389_vm11 = vcmp.ge.f32.partialorder %v4381_v61, 0.0 }
 0x7cd   : > { %4634 = vmatpush.bf16.msra.mxu1 %v6524_v31 }
 0x7ce   : > { %v4405_v7 = vsel %vm4389_vm11, %v4381_v61, %v4397_v24  ;;  %v6536_v61 = vld [vmem:[%s8790_s7 + $0x90] sm:$0xff]  ;;  %v6535_v24 = vld [vmem:[%s8790_s7 + $0x88] sm:$0xff] }
 0x7cf   : > { %v4354_v40 = vpop.f32.mrf.mxu2 }
 0x7d0   : > { %v4370_v0 = vadd.f32 %v4354_v40, %v4177_v44  ;;  %v6514_v44 = vld [vmem:[%s8790_s7] sm:$0xff] }
 0x7d1   : > { %4787 = vmatpush.bf16.msrb.mxu1 %v6537_v27 }
 0x7d2   : > { %v4382_v17 = vadd.f32 %v6568_v20, %v4370_v0 }
 0x7d4   : > { %vm4390_vm12 = vcmp.ge.f32.partialorder %v4382_v17, 0.0  ;;  %v4398_v21 = vmul.f32 0.2, %v4382_v17 }
 0x7d5   : > { %4788 = vmatpush.bf16.msrb.mxu1 %v6536_v61 }
 0x7d6   : > { %v4406_v34 = vsel %vm4390_vm12, %v4382_v17, %v4398_v21  ;;  %v6534_v17 = vld [vmem:[%s8790_s7 + $0x80] sm:$0xff] }
 0x7d7   : > { %v8588_v33 = vpack.c.bf16 %v4406_v34, %v4405_v7  ;;  %v4357_v50 = vpop.f32.mrf.mxu2  ;;  %v6547_v34 = vld [vmem:[%s8790_s7 + $0xd8] sm:$0xff] }
 0x7d8   : > { %v4371_v18 = vadd.f32 %v4357_v50, %v4178_v8  ;;  %v6532_v8 = vld [vmem:[%s8790_s7 + $0x78] sm:$0xff] }
 0x7d9   : > { %4789 = vmatpush.bf16.msrb.mxu1 %v6535_v24 }
 0x7da   : > { %v4383_v63 = vadd.f32 %v6568_v20, %v4371_v18 }
 0x7dc   : > { %v4399_v45 = vmul.f32 0.2, %v4383_v63  ;;  %vm4391_vm13 = vcmp.ge.f32.partialorder %v4383_v63, 0.0 }
 0x7dd   : > { %4790 = vmatpush.bf16.msrb.mxu1 %v6534_v17 }
 0x7de   : > { %v4407_v42 = vsel %vm4391_vm13, %v4383_v63, %v4399_v45  ;;  %v6557_v45 = vld [vmem:[%s8790_s7 + $0x118] sm:$0xff] }
 0x7df   : > { %v4359_v22 = vpop.f32.mrf.mxu2 }
 0x7e0   : > { %v4372_v14 = vadd.f32 %v4359_v22, %v4179_v57  ;;  %v6545_v57 = vld [vmem:[%s8790_s7 + $0xc8] sm:$0xff]  ;;  %v6531_v22 = vld [vmem:[%s8790_s7 + $0x70] sm:$0xff] }
 0x7e2   : > { %v4384_v1 = vadd.f32 %v6568_v20, %v4372_v14  ;;  %v6544_v14 = vld [vmem:[%s8790_s7 + $0xc0] sm:$0xff] }
 0x7e4   : > { %vm4392_vm14 = vcmp.ge.f32.partialorder %v4384_v1, 0.0  ;;  %v4400_v9 = vmul.f32 0.2, %v4384_v1 }
 0x7e6   : > { %v4408_v39 = vsel %vm4392_vm14, %v4384_v1, %v4400_v9 }
 0x7e7   : > { %v4413_v48 = vpack.c.bf16 %v4408_v39, %v4407_v42  ;;  %v4362_v5 = vpop.f32.mrf.mxu2  ;;  %v6529_v42 = vld [vmem:[%s8790_s7 + $0x60] sm:$0xff] }
 0x7e8   : > { %v4373_v32 = vadd.f32 %v4362_v5, %v4180_v26  ;;  %v6542_v5 = vld [vmem:[%s8790_s7 + $0xb8] sm:$0xff] }
 0x7ea   : > { %v4385_v55 = vadd.f32 %v6568_v20, %v4373_v32  ;;  %v6555_v32 = vld [vmem:[%s8790_s7 + $0x108] sm:$0xff] }
 0x7ec   : > { %v4401_v51 = vmul.f32 0.2, %v4385_v55  ;;  %vm4393_vm15 = vcmp.ge.f32.partialorder %v4385_v55, 0.0 }
 0x7ee   : > { %v4409_v43 = vsel %vm4393_vm15, %v4385_v55, %v4401_v51 }
 0x7ef   : > { %v4364_v10 = vpop.f32.mrf.mxu2 }
 0x7f0   : > { %v4374_v25 = vadd.f32 %v4364_v10, %v4181_v62  ;;  %v6541_v62 = vld [vmem:[%s8790_s7 + $0xb0] sm:$0xff]  ;;  %v6554_v10 = vld [vmem:[%s8790_s7 + $0x100] sm:$0xff] }
 0x7f2   : > { %v4386_v59 = vadd.f32 %v6568_v20, %v4374_v25  ;;  %v6522_v20 = vld [vmem:[%s8790_s7 + $0x38] sm:$0xff]  ;;  %v6540_v25 = vld [vmem:[%s8790_s7 + $0xa8] sm:$0xff] }
 0x7f4   : > { %vm4394_vm0 = vcmp.ge.f32.partialorder %v4386_v59, 0.0  ;;  %v4402_v60 = vmul.f32 0.2, %v4386_v59 }
 0x7f6   : > { %v4410_v6 = vsel %vm4394_vm0, %v4386_v59, %v4402_v60  ;;  %v6539_v59 = vld [vmem:[%s8790_s7 + $0xa0] sm:$0xff] }
 0x7f7   : > { %v4414_v13 = vpack.c.bf16 %v4410_v6, %v4409_v43  ;;  %v6552_v6 = vld [vmem:[%s8790_s7 + $0xf8] sm:$0xff] }
 0x7f9   : > { %4429 = vmatpush.bf16.msrb.mxu3 %v4414_v13  ;;  %4580 = vmatpush.bf16.msrb.mxu0 %v4414_v13 }
 0x7fa   : > { %4658 = vmatpush.bf16.msra.mxu2 %v4414_v13 }
 0x7fd   : > { %4430 = vmatpush.bf16.msrb.mxu3 %v4413_v48  ;;  %4581 = vmatpush.bf16.msrb.mxu0 %v4413_v48 }
 0x7fe   : > { %4659 = vmatpush.bf16.msra.mxu2 %v4413_v48 }
 0x801   : > { %4431 = vmatpush.bf16.msrb.mxu3 %v8588_v33  ;;  %4582 = vmatpush.bf16.msrb.mxu0 %v8588_v33 }
 0x802   : > { %4660 = vmatpush.bf16.msra.mxu2 %v8588_v33 }
 0x805   : > { %4432 = vmatpush.bf16.msrb.mxu3 %v8584_v58  ;;  %4583 = vmatpush.bf16.msrb.mxu0 %v8584_v58 }
 0x806   : > { %4661 = vmatpush.bf16.msra.mxu2 %v8584_v58 }
 0x808   : > { %6158 = vmatmul.msk.bf16.vlgmr.msrb.gmra.mxu0 %vm2917_vm3, %v6523_v19  ;;  %6102 = vmatmul.msk.bf16.vlgmr.msrb.gmra.mxu3 %vm2917_vm3, %v6513_v49  ;;  %v6551_v19 = vld [vmem:[%s8790_s7 + $0xf0] sm:$0xff]  ;;  %v6550_v49 = vld [vmem:[%s8790_s7 + $0xe8] sm:$0xff] }
 0x809   : > { %4463 = vmatpush.bf16.msra.mxu3 %v4414_v13  ;;  %4736 = vmatpush.bf16.msra.mxu0 %v4414_v13 }
 0x80a   : > { %4814 = vmatpush.bf16.msrb.mxu2 %v4414_v13 }
 0x80b   : > { %6190 = vmatmul.msk.bf16.vlgmr.msra.gmra.mxu2 %vm2917_vm3, %v6528_v37 }
 0x80d   : > { %4464 = vmatpush.bf16.msra.mxu3 %v4413_v48  ;;  %4737 = vmatpush.bf16.msra.mxu0 %v4413_v48 }
 0x80e   : > { %4815 = vmatpush.bf16.msrb.mxu2 %v4413_v48 }
 0x811   : > { %4465 = vmatpush.bf16.msra.mxu3 %v8588_v33  ;;  %4738 = vmatpush.bf16.msra.mxu0 %v8588_v33 }
 0x812   : > { %4816 = vmatpush.bf16.msrb.mxu2 %v8588_v33 }
 0x815   : > { %4466 = vmatpush.bf16.msra.mxu3 %v8584_v58  ;;  %4739 = vmatpush.bf16.msra.mxu0 %v8584_v58 }
 0x816   : > { %4817 = vmatpush.bf16.msrb.mxu2 %v8584_v58 }
 0x818   : > { %6222 = vmatmul.msk.bf16.vlgmr.msra.gmra.mxu0 %vm2917_vm3, %v6533_v35  ;;  %6109 = vmatmul.msk.bf16.vlgmr.msra.gmra.mxu3 %vm2917_vm3, %v6518_v12  ;;  %v6549_v35 = vld [vmem:[%s8790_s7 + $0xe0] sm:$0xff] }
 0x819   : > { %4892 = vmatpush.bf16.msrb.mxu0 %v4414_v13  ;;  %4514 = vmatpush.bf16.msrb.mxu3 %v6522_v20 }
 0x81a   : > { %4970 = vmatpush.bf16.msra.mxu2 %v4414_v13 }
 0x81b   : > { %6254 = vmatmul.msk.bf16.vlgmr.msrb.gmra.mxu2 %vm2917_vm3, %v6538_v52 }
 0x81d   : > { %4893 = vmatpush.bf16.msrb.mxu0 %v4413_v48  ;;  %4515 = vmatpush.bf16.msrb.mxu3 %v6521_v47 }
 0x81e   : > { %4971 = vmatpush.bf16.msra.mxu2 %v4413_v48 }
 0x821   : > { %4894 = vmatpush.bf16.msrb.mxu0 %v8588_v33  ;;  %4516 = vmatpush.bf16.msrb.mxu3 %v6520_v4 }
 0x822   : > { %4972 = vmatpush.bf16.msra.mxu2 %v8588_v33 }
 0x825   : > { %4895 = vmatpush.bf16.msrb.mxu0 %v8584_v58  ;;  %4517 = vmatpush.bf16.msrb.mxu3 %v6519_v29 }
 0x826   : > { %4973 = vmatpush.bf16.msra.mxu2 %v8584_v58 }
 0x828   : > { %6286 = vmatmul.msk.bf16.vlgmr.msrb.gmra.mxu0 %vm2917_vm3, %v6543_v15 }
 0x829   : > { %5048 = vmatpush.bf16.msra.mxu0 %v4414_v13  ;;  %4555 = vmatpush.bf16.msra.mxu3 %v6517_v38 }
 0x82b   : > { %6318 = vmatmul.msk.bf16.vlgmr.msra.gmra.mxu2 %vm2917_vm3, %v6548_v11 }
 0x82d   : > { %5049 = vmatpush.bf16.msra.mxu0 %v4413_v48  ;;  %4556 = vmatpush.bf16.msra.mxu3 %v6516_v36  ;;  %v6556_v48 = vld [vmem:[%s8790_s7 + $0x110] sm:$0xff] }
 0x831   : > { %5050 = vmatpush.bf16.msra.mxu0 %v8588_v33  ;;  %4557 = vmatpush.bf16.msra.mxu3 %v6515_v46  ;;  %v6546_v33 = vld [vmem:[%s8790_s7 + $0xd0] sm:$0xff] }
 0x835   : > { %5051 = vmatpush.bf16.msra.mxu0 %v8584_v58  ;;  %4558 = vmatpush.bf16.msra.mxu3 %v6514_v44 }
 0x838   : > { %6350 = vmatmul.msk.bf16.vlgmr.msra.gmra.mxu0 %vm2917_vm3, %v6553_v54 }
 0x885   : > { %v4585_v30 = vpop.f32.mrf.mxu0 }
 0x88b   : > { %v4434_v58 = vpop.f32.mrf.mxu3 }
 0x88d   : > { %v4587_v53 = vpop.f32.mrf.mxu0 }
 0x88e   : > { %v4590_v3 = vpack.c.bf16 %v4587_v53, %v4585_v30  ;;  %v4663_v9 = vpop.f32.mrf.mxu2 }
 0x890   : > { %6183 = vmatmul.msk.bf16.vlgmr.msra.gmra.mxu1 %vm2917_vm3, %v4590_v3 }
 0x891   : > { %4943 = vmatpush.bf16.msra.mxu1 %v6547_v34 }
 0x893   : > { %v4436_v40 = vpop.f32.mrf.mxu3 }
 0x894   : > { %v4439_v26 = vpack.c.bf16 %v4436_v40, %v4434_v58 }
 0x895   : > { %v4741_v0 = vpop.f32.mrf.mxu0  ;;  %4944 = vmatpush.bf16.msra.mxu1 %v6546_v33  ;;  %v6569_v33 = vld [vmem:[%s8791_s8] ss:$0 sm:$0xff] }
 0x896   : > { %v4665_v55 = vpop.f32.mrf.mxu2 }
 0x897   : > { %v4668_v13 = vpack.c.bf16 %v4665_v55, %v4663_v9 }
 0x899   : > { %4945 = vmatpush.bf16.msra.mxu1 %v6545_v57 }
 0x89b   : > { %v4468_v21 = vpop.f32.mrf.mxu3 }
 0x89d   : > { %v4743_v7 = vpop.f32.mrf.mxu0  ;;  %4946 = vmatpush.bf16.msra.mxu1 %v6544_v14 }
 0x89e   : > { %v4746_v16 = vpack.c.bf16 %v4743_v7, %v4741_v0  ;;  %v4819_v43 = vpop.f32.mrf.mxu2 }
 0x8a0   : > { %6247 = vmatmul.msk.bf16.vlgmr.msrb.gmra.mxu1 %vm2917_vm3, %v4746_v16 }
 0x8a1   : > { %5099 = vmatpush.bf16.msrb.mxu1 %v6557_v45 }
 0x8a3   : > { %v4470_v50 = vpop.f32.mrf.mxu3 }
 0x8a4   : > { %v4473_v18 = vpack.c.bf16 %v4470_v50, %v4468_v21 }
 0x8a5   : > { %v4897_v63 = vpop.f32.mrf.mxu0  ;;  %5100 = vmatpush.bf16.msrb.mxu1 %v6556_v48 }
 0x8a6   : > { %6134 = vmatmul.msk.bf16.vlgmr.msrb.gmra.mxu3 %vm2917_vm3, %v4473_v18  ;;  %v4821_v37 = vpop.f32.mrf.mxu2 }
 0x8a7   : > { %4709 = vmatpush.bf16.msrb.mxu3 %v6532_v8  ;;  %v4824_v12 = vpack.c.bf16 %v4821_v37, %v4819_v43 }
 0x8a9   : > { %5101 = vmatpush.bf16.msrb.mxu1 %v6555_v32 }
 0x8ab   : > { %4710 = vmatpush.bf16.msrb.mxu3 %v6531_v22  ;;  %v5123_v22 = vld [vmem:[%s8792_s9] sm:$0xff] }
 0x8ad   : > { %v4899_v1 = vpop.f32.mrf.mxu0  ;;  %5102 = vmatpush.bf16.msrb.mxu1 %v6554_v10 }
 0x8ae   : > { %v4902_v39 = vpack.c.bf16 %v4899_v1, %v4897_v63  ;;  %v4975_v52 = vpop.f32.mrf.mxu2 }
 0x8af   : > { %4711 = vmatpush.bf16.msrb.mxu3 %v6530_v2 }
 0x8b0   : > { %6311 = vmatmul.msk.bf16.vlgmr.msra.gmra.mxu1 %vm2917_vm3, %v4902_v39 }
 0x8b3   : > { %4712 = vmatpush.bf16.msrb.mxu3 %v6529_v42 }
 0x8b5   : > { %v5053_v41 = vpop.f32.mrf.mxu0 }
 0x8b6   : > { %6151 = vmatmul.msk.bf16.vlgmr.msra.gmra.mxu3 %vm2917_vm3, %v4439_v26  ;;  %v4977_v15 = vpop.f32.mrf.mxu2  ;;  %v5124_v26 = vld [vmem:[%s8792_s9 + $0x8] sm:$0xff] }
 0x8b7   : > { %4865 = vmatpush.bf16.msra.mxu3 %v6542_v5  ;;  %v4980_v11 = vpack.c.bf16 %v4977_v15, %v4975_v52 }
 0x8bb   : > { %4866 = vmatpush.bf16.msra.mxu3 %v6541_v62 }
 0x8bd   : > { %v5055_v51 = vpop.f32.mrf.mxu0 }
 0x8be   : > { %v5058_v60 = vpack.c.bf16 %v5055_v51, %v5053_v41 }
 0x8bf   : > { %4867 = vmatpush.bf16.msra.mxu3 %v6540_v25 }
 0x8c0   : > { %6375 = vmatmul.msk.bf16.vlgmr.msrb.gmra.mxu1 %vm2917_vm3, %v5058_v60 }
 0x8c3   : > { %4868 = vmatpush.bf16.msra.mxu3 %v6539_v59 }
 0x8c6   : > { %6215 = vmatmul.msk.bf16.vlgmr.msrb.gmra.mxu3 %vm2917_vm3, %v4668_v13  ;;  %v5140_v13 = vld [vmem:[#allocation2] sm:$0x1] }
 0x8c7   : > { %5021 = vmatpush.bf16.msrb.mxu3 %v6552_v6 }
 0x8cb   : > { %5022 = vmatpush.bf16.msrb.mxu3 %v6551_v19 }
 0x8cf   : > { %5023 = vmatpush.bf16.msrb.mxu3 %v6550_v49 }
 0x8d3   : > { %5024 = vmatpush.bf16.msrb.mxu3 %v6549_v35 }
 0x8d6   : > { %6279 = vmatmul.msk.bf16.vlgmr.msra.gmra.mxu3 %vm2917_vm3, %v4824_v12 }
 0x8e6   : > { %6343 = vmatmul.msk.bf16.vlgmr.msrb.gmra.mxu3 %vm2917_vm3, %v4980_v11 }
 0x90d   : > { %v4636_v20 = vpop.f32.mrf.mxu1 }
 0x915   : > { %v4638_v4 = vpop.f32.mrf.mxu1 }
 0x91d   : > { %v4792_v56 = vpop.f32.mrf.mxu1 }
 0x925   : > { %v4794_v38 = vpop.f32.mrf.mxu1 }
 0x929   : > { %v4519_v54 = vpop.f32.mrf.mxu3 }
 0x92d   : > { %v4948_v36 = vpop.f32.mrf.mxu1 }
 0x931   : > { %v4521_v47 = vpop.f32.mrf.mxu3 }
 0x935   : > { %v4950_v3 = vpop.f32.mrf.mxu1 }
 0x939   : > { %v4560_v23 = vpop.f32.mrf.mxu3 }
 0x93a   : > { %v4561_v31 = vadd.f32 %v4560_v23, %v4519_v54 }
 0x93c   : > { %v4641_v46 = vadd.f32 %v4636_v20, %v4561_v31 }
 0x93d   : > { %v5104_v7 = vpop.f32.mrf.mxu1 }
 0x941   : > { %v4562_v29 = vpop.f32.mrf.mxu3 }
 0x942   : > { %v4563_v27 = vadd.f32 %v4562_v29, %v4521_v47 }
 0x944   : > { %v4642_v40 = vadd.f32 %v4638_v4, %v4563_v27 }
 0x945   : > { %v5106_v1 = vpop.f32.mrf.mxu1 }
 0x949   : > { %v4714_v30 = vpop.f32.mrf.mxu3 }
 0x94a   : > { %v4719_v53 = vadd.f32 %v4714_v30, %v4641_v46 }
 0x94c   : > { %v4797_v61 = vadd.f32 %v4792_v56, %v4719_v53 }
 0x951   : > { %v4716_v28 = vpop.f32.mrf.mxu3 }
 0x952   : > { %v4720_v24 = vadd.f32 %v4716_v28, %v4642_v40 }
 0x954   : > { %v4798_v34 = vadd.f32 %v4794_v38, %v4720_v24 }
 0x959   : > { %v4870_v58 = vpop.f32.mrf.mxu3 }
 0x95a   : > { %v4875_v0 = vadd.f32 %v4870_v58, %v4797_v61 }
 0x95c   : > { %v4953_v17 = vadd.f32 %v4948_v36, %v4875_v0 }
 0x961   : > { %v4872_v44 = vpop.f32.mrf.mxu3 }
 0x962   : > { %v4876_v50 = vadd.f32 %v4872_v44, %v4798_v34 }
 0x964   : > { %v4954_v57 = vadd.f32 %v4950_v3, %v4876_v50 }
 0x969   : > { %v5026_v21 = vpop.f32.mrf.mxu3 }
 0x96a   : > { %v5031_v16 = vadd.f32 %v5026_v21, %v4953_v17 }
 0x96c   : > { %v5109_v8 = vadd.f32 %v5104_v7, %v5031_v16 }
 0x96e   : > { %v5115_v18 = vadd.f32 %v6569_v33, %v5109_v8 }
 0x970   : > { %v5119_v63 = vmul.f32 0.2, %v5115_v18  ;;  %vm5117_vm1 = vcmp.ge.f32.partialorder %v5115_v18, 0.0 }
 0x971   : > { %v5028_v14 = vpop.f32.mrf.mxu3 }
 0x972   : > { %v5032_v2 = vadd.f32 %v5028_v14, %v4954_v57  ;;  %v5121_v45 = vsel %vm5117_vm1, %v5115_v18, %v5119_v63 }
 0x973   : > { %v5125_v9 = vmul.f32 %v5123_v22, %v5121_v45 }
 0x974   : > { %v5110_v42 = vadd.f32 %v5106_v1, %v5032_v2 }
 0x975   : > { %v5127_v39 = vsel %vm2917_vm3, %v5125_v9, 0.0 }
 0x976   : > { %v5116_v48 = vadd.f32 %v6569_v33, %v5110_v42  ;;  %5128 = vadd.xlane.f32.xlu0 %v5127_v39 }
 0x978   : > { %v5120_v5 = vmul.f32 0.2, %v5116_v48  ;;  %vm5118_vm2 = vcmp.ge.f32.partialorder %v5116_v48, 0.0 }
 0x97a   : > { %v5122_v32 = vsel %vm5118_vm2, %v5116_v48, %v5120_v5 }
 0x97b   : > { %v5126_v41 = vmul.f32 %v5124_v26, %v5122_v32 }
 0x97d   : > { %v5130_v62 = vsel %vm2917_vm3, %v5126_v41, 0.0 }
 0x97e   : > { %5131 = vadd.xlane.f32.xlu0 %v5130_v62 }
 0x9e9   : > { %v5129_v55 = vpop.xlane.xlu0 %5128 }
 0x9f1   : > { %v5132_v10 = vpop.xlane.xlu0 %5131 }
 0x9f2   : > { %v5133_v25 = vadd.f32 %v5132_v10, %v5129_v55 }
 0x9f4   : > { %v5134_v51 = vrot.slane %v5133_v25, 4 }
 0x9f6   : > { %v5135_v59 = vadd.f32 %v5134_v51, %v5133_v25 }
 0x9f8   : > { %v5136_v60 = vrot.slane %v5135_v59, 2 }
 0x9fa   : > { %v5137_v43 = vadd.f32 %v5136_v60, %v5135_v59 }
 0x9fc   : > { %v5138_v6 = vrot.slane %v5137_v43, 1 }
 0x9fe   : > { %v5139_v19 = vadd.f32 %v5138_v6, %v5137_v43 }
 0xa00   : > { %v5141_v49 = vadd.f32 %v5140_v13, %v5139_v19 }
 0xa02   : > { %v5142_v37 = vsub.f32 0.0, %v5141_v49 }
 0xa04   : > { %v5143_v35 = vmul.f32 1.442695, %v5142_v37 }
 0xa06   : > { %6570 = vpow2.f32 %v5143_v35 }
 0xa0c   : > { %v6571_v12 = vpop.eup %6570 }
 0xa0d   : > { %v5145_v52 = vadd.f32 1.0, %v6571_v12 }
 0xa0f   : > { %6572 = vrcp.f32 %v5145_v52  ;;  %v5157_v20 = vand.u32 2147483648, %v5145_v52  ;;  %v5155_v4 = vand.u32 2147483647, %v5145_v52  ;;  %vm5151_vm6 = vweird.f32 %v5145_v52 }
 0xa11   : > { %v5158_v29 = vor.u32 1.1754944e-38, %v5157_v20  ;;  %vm5156_vm8 = vcmp.eq.f32.partialorder %v5155_v4, 8.507059e+37 }
 0xa15   : > { %v6573_v15 = vpop.eup %6572 }
 0xa16   : > { %v5147_v11 = vmul.f32 %v6573_v15, %v5145_v52  ;;  %vm5152_vm5 = vweird.f32 %v6573_v15 }
 0xa17   : > { %vm5153_vm4 = vmor %vm5151_vm6, %vm5152_vm5 }
 0xa18   : > { %v5148_v54 = vsub.f32 1.0, %v5147_v11 }
 0xa1a   : > { %v5149_v47 = vmul.f32 %v6573_v15, %v5148_v54 }
 0xa1c   : > { %v5150_v23 = vadd.f32 %v6573_v15, %v5149_v47 }
 0xa1e   : > { %v5154_v56 = vsel %vm5153_vm4, %v6573_v15, %v5150_v23 }
 0xa1f   : > { %v5159_v30 = vsel %vm5156_vm8, %v5158_v29, %v5154_v56 }
 0xa20   : > { %5162 = vst.msk [vmem:[%s384_s17] sm:$0x1] %vm5161_vm7, %v5159_v30 }
 0xa21 PF: > { %s23_s19 = sadd.s32 1, %s6588_s19  }
 0xa22   : > { %p20_p4 = scmp.ge.s32.totalorder %s23_s19, 4  }
 0xa24   :  { %22 = sbr.rel (!%p20_p4) target bundleno = 3 (0x3), region = 134 }

</bundles_post_ra>
